<compile_context>
chip_gen: v7x
topology: tpu7x:2x2x1
jax: 0.10.0
libtpu: 0.0.40
codegen_flags: <defaults>
</compile_context>

<pallas_src>
import functools

import jax
import jax.numpy as jnp
from jax.experimental import pallas as pl
from jax.experimental.pallas import tpu as pltpu

EPS = 1e-5                      # nn.LayerNorm default eps
_MIB = 1024 * 1024


def _cdiv(a, b):
    return -(-a // b)


# ---------------------------------------------------------------------------
# One-time hardware detection (generation-aware VMEM budget, bf16 VPU support).
# ---------------------------------------------------------------------------
def _detect_tpu():
    kind, vmem = "", None
    try:
        kind = jax.devices()[0].device_kind.lower()
    except Exception:
        pass
    try:
        vmem = int(pltpu.get_tpu_info().vmem_capacity_bytes)
    except Exception:
        vmem = None
    return vmem, kind


_VMEM_CAP, _TPU_KIND = _detect_tpu()
if _VMEM_CAP is not None:
    _BIG_VMEM = _VMEM_CAP >= 96 * _MIB
else:
    _BIG_VMEM = (("v5" in _TPU_KIND) or ("v6" in _TPU_KIND)) and ("v7" not in _TPU_KIND)

if _BIG_VMEM:                               # v5e / v6e: 128 MiB physical VMEM
    _VMEM_BUDGET, _VMEM_LIMIT = 96 * _MIB, 112 * _MIB
else:                                       # v7x (64 MiB) or unknown: conservative
    _VMEM_BUDGET, _VMEM_LIMIT = 40 * _MIB, 48 * _MIB

# v5e and older have no bf16 VPU: keep hidden-layer elementwise work in f32 there.
_BF16_VPU = not any(g in _TPU_KIND for g in ("v2", "v3", "v4", "v5"))


def _probe_single_buffer():
    """Resolve pl.Buffered(1) support ONCE, via lowering only (no execution)."""
    try:
        spec = pl.BlockSpec((8, 128), lambda i: (0, 0), pipeline_mode=pl.Buffered(1))

        def _k(a_ref, o_ref):
            o_ref[...] = a_ref[...]

        f = pl.pallas_call(
            _k,
            out_shape=jax.ShapeDtypeStruct((8, 128), jnp.float32),
            grid_spec=pltpu.PrefetchScalarGridSpec(
                num_scalar_prefetch=0, grid=(1,),
                in_specs=[spec],
                out_specs=pl.BlockSpec((8, 128), lambda i: (0, 0))),
        )
        jax.jit(f).lower(jax.ShapeDtypeStruct((8, 128), jnp.float32))
        return True
    except Exception:
        return False


_SINGLE_BUFFER = _probe_single_buffer()


# ---------------------------------------------------------------------------
# Kernel
# ---------------------------------------------------------------------------
def _snn_dt_kernel(c_ref, x_ref, w1_ref, b1_ref, w2_ref, b2_ref,
                   g1_ref, bt1_ref, g2_ref, bt2_ref, o_ref,
                   *, num_layers, mxu_dtype, hidden_dtype):
    """All `num_layers` layers for one (tm, D) row tile, resident in VMEM."""
    tm, d = x_ref.shape
    h4 = w1_ref.shape[1]

    c = c_ref[0, 0]                                   # 1 + scale (folded residual)
    x0 = x_ref[...].astype(jnp.float32)               # (tm, D)

    w1 = w1_ref[...]                                  # (D, 4D)  mxu_dtype
    w2 = w2_ref[...]                                  # (4D, D)  mxu_dtype

    # Hoist every (1, .) -> (tm, .) broadcast out of the layer loop: JAX does
    # not CSE broadcast_in_dim, and the loop may be statically unrolled.
    b1 = jnp.broadcast_to(b1_ref[...].astype(hidden_dtype), (tm, h4))
    b2 = jnp.broadcast_to(b2_ref[...].astype(jnp.float32), (tm, d))
    g1 = jnp.broadcast_to(g1_ref[...].astype(jnp.float32), (tm, d))
    bt1 = jnp.broadcast_to(bt1_ref[...].astype(jnp.float32), (tm, d))
    g2 = jnp.broadcast_to(g2_ref[...].astype(jnp.float32), (tm, d))
    bt2 = jnp.broadcast_to(bt2_ref[...].astype(jnp.float32), (tm, d))

    def layer(x):
        # merged = router(sum_t(pos_mask * rate_spikes)) == x * scale, so the
        # residual x + merged folds into one multiply by c = 1 + scale.
        r = x * c

        # LayerNorm 1: single-traversal moments (var = E[r^2] - E[r]^2), f32.
        mu1 = jnp.mean(r, axis=-1, keepdims=True)
        ms1 = jnp.mean(r * r, axis=-1, keepdims=True)
        var1 = jnp.maximum(ms1 - mu1 * mu1, 0.0)
        xn = (r - mu1) * jax.lax.rsqrt(var1 + EPS) * g1 + bt1

        # FFN: Linear(D,4D) -> ReLU -> Linear(4D,D).  MXU operands in
        # mxu_dtype (f32 accumulation); the big (tm,4D) bias+ReLU block runs
        # in hidden_dtype (bf16 on v6e/v7x -> 2x VPU packing, f32 on v5e).
        # TODO(synk): for very large D (>= ~1.5-2K bf16 on v7x 64 MiB) tile
        # the 4D hidden dim (second 'arbitrary' grid axis / emit_pipeline)
        # instead of holding W1/W2 whole in VMEM.
        h = jnp.dot(xn.astype(mxu_dtype), w1, preferred_element_type=jnp.float32)
        h = jnp.maximum(h.astype(hidden_dtype) + b1, 0.0)
        f = jnp.dot(h.astype(mxu_dtype), w2, preferred_element_type=jnp.float32) + b2

        # LayerNorm 2 of the residual, f32.
        y = xn + f
        mu2 = jnp.mean(y, axis=-1, keepdims=True)
        ms2 = jnp.mean(y * y, axis=-1, keepdims=True)
        var2 = jnp.maximum(ms2 - mu2 * mu2, 0.0)
        return (y - mu2) * jax.lax.rsqrt(var2 + EPS) * g2 + bt2

    if num_layers <= 4:
        x = x0
        for _ in range(num_layers):                    # small static unroll
            x = layer(x)
    else:
        # Bounded live ranges / constant vreg pressure for deep stacks.
        x = jax.lax.fori_loop(0, num_layers, lambda _, xv: layer(xv), x0)

    o_ref[...] = x.astype(o_ref.dtype)


# ---------------------------------------------------------------------------
# Tiling / VMEM sizing
# ---------------------------------------------------------------------------
def _vmem_estimate(tm, d, h4, w_bytes, io_bytes, h_bytes, single_buffer):
    nbuf = 1 if single_buffer else 2                 # Buffered(1) vs default 2
    weights = nbuf * (2 * d * h4 * w_bytes + (h4 + 5 * d) * 4)
    io = 2 * 2 * tm * d * io_bytes                   # x-in + out tiles, 2-buffered
    hidden = tm * h4 * (h_bytes + w_bytes)           # h plus its MXU-dtype cast
    bcast = tm * (h4 * h_bytes + 5 * d * 4)          # hoisted bias / LN broadcasts
    f32_tmp = 6 * tm * d * 4                         # x, r, xn, y, f (+ slack)
    return weights + io + hidden + bcast + f32_tmp


def _choose_tm(rows, d, h4, w_bytes, io_bytes, h_bytes, tm_req, single_buffer):
    if rows <= 8:
        return rows                                   # block == full (tiny) array
    tm_eff = max(8, (min(tm_req, rows) // 8) * 8)
    # v7x has 2 TensorCores sharing the chip: aim for >= 4 grid steps
    # (>= 2 per core) when there are enough rows; >= 2 otherwise.
    target_steps = 4 if rows >= 32 else 2
    while tm_eff > 8 and _cdiv(rows, tm_eff) < target_steps:
        tm_eff = max(8, ((tm_eff // 2) // 8) * 8)
    # Shrink until the working set fits the generation-aware VMEM budget.
    while tm_eff > 8 and _vmem_estimate(tm_eff, d, h4, w_bytes, io_bytes,
                                        h_bytes, single_buffer) > _VMEM_BUDGET:
        tm_eff = max(8, ((tm_eff // 2) // 8) * 8)
    return tm_eff


@functools.lru_cache(maxsize=None)
def _build_call(rows, d, h4, tm, num_layers, mxu_dtype, hidden_dtype, io_dtype,
                single_buffer):
    def const_spec(shape):
        # Constant index_map: block fetched once.  Single-buffering halves the
        # resident weight VMEM when the installed JAX supports pl.Buffered(1).
        if single_buffer:
            return pl.BlockSpec(shape, lambda i: (0, 0),
                                pipeline_mode=pl.Buffered(1))
        return pl.BlockSpec(shape, lambda i: (0, 0))

    kernel = functools.partial(_snn_dt_kernel, num_layers=num_layers,
                               mxu_dtype=mxu_dtype, hidden_dtype=hidden_dtype)
    return pl.pallas_call(
        kernel,
        out_shape=jax.ShapeDtypeStruct((rows, d), io_dtype),
        grid_spec=pltpu.PrefetchScalarGridSpec(
            num_scalar_prefetch=0,
            # cdiv grid: the trailing partial row block is masked by Pallas, so
            # no host-side jnp.pad copy of the activations is needed.  Padded
            # rows only feed row-independent math (LN / per-row matmul rows),
            # so garbage there cannot contaminate valid rows.
            grid=(_cdiv(rows, tm),),
            in_specs=[
                pl.BlockSpec(memory_space=pltpu.MemorySpace.SMEM),  # c (1,1)
                pl.BlockSpec((tm, d), lambda i: (i, 0)),            # x tile
                const_spec((d, h4)),                                # W1
                const_spec((1, h4)),                                # b1
                const_spec((h4, d)),                                # W2
                const_spec((1, d)),                                 # b2
                const_spec((1, d)),                                 # ln1 gamma
                const_spec((1, d)),                                 # ln1 beta
                const_spec((1, d)),                                 # ln2 gamma
                const_spec((1, d)),                                 # ln2 beta
            ],
            out_specs=pl.BlockSpec((tm, d), lambda i: (i, 0)),
        ),
        compiler_params=pltpu.CompilerParams(
            dimension_semantics=("parallel",),
            vmem_limit_bytes=_VMEM_LIMIT),
    )


# ---------------------------------------------------------------------------
# Public wrapper (pure, jit-compatible; no device sync, no per-call probing)
# ---------------------------------------------------------------------------
def snn_dt_forward(x, params, *, num_layers=1, tm=512,
                   mxu_dtype=jnp.bfloat16, io_dtype=None):
    """x: (B, S, D) -> (B, S, D).  One pallas_call, all layers fused.

    io_dtype: optional streaming dtype for x/out HBM traffic (e.g. bf16 for the
    memory-bound num_layers==1 regime); LayerNorms/accumulation stay in f32.
    """
    B, S, D = x.shape
    h4 = params["w1"].shape[1]
    rows = B * S

    mxu_dt = jnp.dtype(mxu_dtype)
    io_dt = jnp.dtype(x.dtype if io_dtype is None else io_dtype)
    hidden_dt = (mxu_dt if (_BF16_VPU and mxu_dt == jnp.dtype(jnp.bfloat16))
                 else jnp.dtype(jnp.float32))

    # PositionalSpikeEncoder / DendriticRouter glue (tiny (H,T)/(H,) math).
    pos_mask = jax.nn.sigmoid(params["pos_logits"])            # (H, T)
    route = jax.nn.softmax(params["router_w"])                 # (H,)
    scale = jnp.sum(route * jnp.sum(pos_mask, axis=-1))
    c = jnp.reshape(1.0 + scale, (1, 1)).astype(jnp.float32)   # fold residual

    tm_eff = _choose_tm(rows, D, h4, mxu_dt.itemsize, io_dt.itemsize,
                        hidden_dt.itemsize, tm, _SINGLE_BUFFER)

    xf = x.reshape(rows, D).astype(io_dt)
    w1 = params["w1"].astype(mxu_dt)
    w2 = params["w2"].astype(mxu_dt)

    call = _build_call(rows, D, h4, tm_eff, int(num_layers), mxu_dt, hidden_dt,
                       io_dt, _SINGLE_BUFFER)
    out = call(c, xf, w1, params["b1"], w2, params["b2"],
               params["ln1_g"], params["ln1_b"], params["ln2_g"], params["ln2_b"])
    return out.reshape(B, S, D).astype(x.dtype)


# ---------------------------------------------------------------------------
# Params + pure-JAX reference
# ---------------------------------------------------------------------------
def make_params(key, embed_dim, num_heads, window_length):
    D, H, T = embed_dim, num_heads, window_length
    ks = jax.random.split(key, 6)
    sc1 = 1.0 / jnp.sqrt(D)
    sc2 = 1.0 / jnp.sqrt(4 * D)
    return {
        "pos_logits": jax.random.normal(ks[0], (H, T), jnp.float32),
        "router_w": jax.random.normal(ks[1], (H,), jnp.float32),
        "w1": jax.random.uniform(ks[2], (D, 4 * D), jnp.float32, -sc1, sc1),
        "b1": jax.random.uniform(ks[3], (1, 4 * D), jnp.float32, -sc1, sc1),
        "w2": jax.random.uniform(ks[4], (4 * D, D), jnp.float32, -sc2, sc2),
        "b2": jax.random.uniform(ks[5], (1, D), jnp.float32, -sc2, sc2),
        "ln1_g": jnp.ones((1, D), jnp.float32),
        "ln1_b": jnp.zeros((1, D), jnp.float32),
        "ln2_g": jnp.ones((1, D), jnp.float32),
        "ln2_b": jnp.zeros((1, D), jnp.float32),
    }


def _reference(x, params, num_layers=1):
    """Pure-JAX reference mirroring the PyTorch forward (3-D input path)."""
    B, S, D = x.shape
    pos_mask = jax.nn.sigmoid(params["pos_logits"])            # (H, T)
    route = jax.nn.softmax(params["router_w"])                 # (H,)
    H, T = pos_mask.shape
    for _ in range(num_layers):
        rate = jnp.broadcast_to(x[..., None], (B, S, D, T))
        expanded = jnp.broadcast_to(rate[:, :, None], (B, S, H, D, T))
        masked = expanded * pos_mask[None, None, :, None, :]
        y_sum = masked.sum(-1)                                 # (B,S,H,D)
        merged = jnp.einsum("bshd,h->bsd", y_sum, route)
        r = x + merged
        mu = r.mean(-1, keepdims=True)
        var = ((r - mu) ** 2).mean(-1, keepdims=True)
        xn = (r - mu) / jnp.sqrt(var + EPS) * params["ln1_g"][0] + params["ln1_b"][0]
        h = jnp.maximum(xn @ params["w1"] + params["b1"][0], 0.0)
        f = h @ params["w2"] + params["b2"][0]
        y = xn + f
        mu2 = y.mean(-1, keepdims=True)
        var2 = ((y - mu2) ** 2).mean(-1, keepdims=True)
        x = (y - mu2) / jnp.sqrt(var2 + EPS) * params["ln2_g"][0] + params["ln2_b"][0]
    return x


if __name__ == "__main__":
    # Make the f32 matmuls accurate on both the reference and the kernel side
    # so the exact-path comparison is meaningful.
    jax.config.update("jax_default_matmul_precision", "highest")

    B, S = 2, 8
    embed_dim, num_heads, window_length = 128, 4, 10

    key = jax.random.PRNGKey(0)
    k_in, k_par = jax.random.split(key)
    x = jax.random.normal(k_in, (B, S, embed_dim), jnp.float32)
    params = make_params(k_par, embed_dim, num_heads, window_length)

    fwd = jax.jit(snn_dt_forward,
                  static_argnames=("num_layers", "tm", "mxu_dtype", "io_dtype"))

    ref1 = _reference(x, params, num_layers=1)

    # Exact-precision path (f32 MXU operands) vs pure-JAX reference.
    out_f32 = jax.block_until_ready(
        fwd(x, params, num_layers=1, mxu_dtype=jnp.float32))
    assert out_f32.shape == (B, S, embed_dim)
    assert jnp.allclose(out_f32, ref1, atol=5e-3, rtol=5e-3)

    # Fused multi-layer path (single pallas_call, layer loop inside kernel).
    out_2l = jax.block_until_ready(
        fwd(x, params, num_layers=2, mxu_dtype=jnp.float32))
    assert jnp.allclose(out_2l, _reference(x, params, num_layers=2),
                        atol=1e-2, rtol=1e-2)

    # Default perf path: bf16 MXU operands (+ bf16 hidden bias/ReLU on v6e/v7x),
    # f32 accumulation / LayerNorms.
    out_bf16 = jax.block_until_ready(fwd(x, params, num_layers=1))
    assert out_bf16.shape == (B, S, embed_dim)
    assert jnp.allclose(out_bf16, ref1, atol=5e-2, rtol=5e-2)

    print("KERNEL_OK")
</pallas_src>

<mosaic_0001>
module attributes {stable_mosaic.version = 11 : i64} {
  func.func @_snn_dt_kernel(%arg0: i32, %arg1: memref<1x1xf32, #tpu.memory_space<smem>>, %arg2: memref<8x128xf32, #tpu.memory_space<vmem>>, %arg3: memref<128x512xf32, #tpu.memory_space<vmem>>, %arg4: memref<1x512xf32, #tpu.memory_space<vmem>>, %arg5: memref<512x128xf32, #tpu.memory_space<vmem>>, %arg6: memref<1x128xf32, #tpu.memory_space<vmem>>, %arg7: memref<1x128xf32, #tpu.memory_space<vmem>>, %arg8: memref<1x128xf32, #tpu.memory_space<vmem>>, %arg9: memref<1x128xf32, #tpu.memory_space<vmem>>, %arg10: memref<1x128xf32, #tpu.memory_space<vmem>>, %arg11: memref<8x128xf32, #tpu.memory_space<vmem>>) attributes {dimension_semantics = [#tpu.dimension_semantics<parallel>], iteration_bounds = array<i64: 2>, scalar_prefetch = 0 : i64, scratch_operands = 0 : i64, tpu.core_type = #tpu.core_type<tc>, window_params = [{transform_indices = @transform_0, window_bounds = array<i64: 1, 1>}, {transform_indices = @transform_1, window_bounds = array<i64: 8, 128>}, {pipeline_mode = #tpu.pipeline_mode<synchronous>, transform_indices = @transform_2, window_bounds = array<i64: 128, 512>}, {pipeline_mode = #tpu.pipeline_mode<synchronous>, transform_indices = @transform_3, window_bounds = array<i64: 1, 512>}, {pipeline_mode = #tpu.pipeline_mode<synchronous>, transform_indices = @transform_4, window_bounds = array<i64: 512, 128>}, {pipeline_mode = #tpu.pipeline_mode<synchronous>, transform_indices = @transform_5, window_bounds = array<i64: 1, 128>}, {pipeline_mode = #tpu.pipeline_mode<synchronous>, transform_indices = @transform_6, window_bounds = array<i64: 1, 128>}, {pipeline_mode = #tpu.pipeline_mode<synchronous>, transform_indices = @transform_7, window_bounds = array<i64: 1, 128>}, {pipeline_mode = #tpu.pipeline_mode<synchronous>, transform_indices = @transform_8, window_bounds = array<i64: 1, 128>}, {pipeline_mode = #tpu.pipeline_mode<synchronous>, transform_indices = @transform_9, window_bounds = array<i64: 1, 128>}, {transform_indices = @transform_10, window_bounds = array<i64: 8, 128>}]} {
    %c0 = arith.constant 0 : index
    %c0_0 = arith.constant 0 : index
    %0 = memref.load %arg1[%c0, %c0_0] : memref<1x1xf32, #tpu.memory_space<smem>>
    %c0_1 = arith.constant 0 : index
    %c0_2 = arith.constant 0 : index
    %1 = vector.load %arg2[%c0_1, %c0_2] : memref<8x128xf32, #tpu.memory_space<vmem>>, vector<8x128xf32>
    %c0_3 = arith.constant 0 : index
    %c0_4 = arith.constant 0 : index
    %2 = vector.load %arg3[%c0_3, %c0_4] : memref<128x512xf32, #tpu.memory_space<vmem>>, vector<128x512xf32>
    %c0_5 = arith.constant 0 : index
    %c0_6 = arith.constant 0 : index
    %3 = vector.load %arg5[%c0_5, %c0_6] : memref<512x128xf32, #tpu.memory_space<vmem>>, vector<512x128xf32>
    %c0_7 = arith.constant 0 : index
    %c0_8 = arith.constant 0 : index
    %4 = vector.load %arg4[%c0_7, %c0_8] : memref<1x512xf32, #tpu.memory_space<vmem>>, vector<1x512xf32>
    %5 = vector.shape_cast %4 : vector<1x512xf32> to vector<1x512xf32>
    %6 = vector.broadcast %5 : vector<1x512xf32> to vector<8x512xf32>
    %c0_9 = arith.constant 0 : index
    %c0_10 = arith.constant 0 : index
    %7 = vector.load %arg6[%c0_9, %c0_10] : memref<1x128xf32, #tpu.memory_space<vmem>>, vector<1x128xf32>
    %8 = vector.shape_cast %7 : vector<1x128xf32> to vector<1x128xf32>
    %9 = vector.broadcast %8 : vector<1x128xf32> to vector<8x128xf32>
    %c0_11 = arith.constant 0 : index
    %c0_12 = arith.constant 0 : index
    %10 = vector.load %arg7[%c0_11, %c0_12] : memref<1x128xf32, #tpu.memory_space<vmem>>, vector<1x128xf32>
    %11 = vector.shape_cast %10 : vector<1x128xf32> to vector<1x128xf32>
    %12 = vector.broadcast %11 : vector<1x128xf32> to vector<8x128xf32>
    %c0_13 = arith.constant 0 : index
    %c0_14 = arith.constant 0 : index
    %13 = vector.load %arg8[%c0_13, %c0_14] : memref<1x128xf32, #tpu.memory_space<vmem>>, vector<1x128xf32>
    %14 = vector.shape_cast %13 : vector<1x128xf32> to vector<1x128xf32>
    %15 = vector.broadcast %14 : vector<1x128xf32> to vector<8x128xf32>
    %c0_15 = arith.constant 0 : index
    %c0_16 = arith.constant 0 : index
    %16 = vector.load %arg9[%c0_15, %c0_16] : memref<1x128xf32, #tpu.memory_space<vmem>>, vector<1x128xf32>
    %17 = vector.shape_cast %16 : vector<1x128xf32> to vector<1x128xf32>
    %18 = vector.broadcast %17 : vector<1x128xf32> to vector<8x128xf32>
    %c0_17 = arith.constant 0 : index
    %c0_18 = arith.constant 0 : index
    %19 = vector.load %arg10[%c0_17, %c0_18] : memref<1x128xf32, #tpu.memory_space<vmem>>, vector<1x128xf32>
    %20 = vector.shape_cast %19 : vector<1x128xf32> to vector<1x128xf32>
    %21 = vector.broadcast %20 : vector<1x128xf32> to vector<8x128xf32>
    %22 = vector.broadcast %0 : f32 to vector<8x128xf32>
    %23 = arith.mulf %1, %22 : vector<8x128xf32>
    %cst = arith.constant dense<0.000000e+00> : vector<8xf32>
    %24 = vector.multi_reduction <add>, %23, %cst [1] : vector<8x128xf32> to vector<8xf32>
    %25 = vector.shape_cast %24 : vector<8xf32> to vector<8x1xf32>
    %cst_19 = arith.constant 1.280000e+02 : f32
    %26 = vector.broadcast %cst_19 : f32 to vector<8x1xf32>
    %27 = arith.divf %25, %26 : vector<8x1xf32>
    %28 = arith.mulf %23, %23 : vector<8x128xf32>
    %cst_20 = arith.constant dense<0.000000e+00> : vector<8xf32>
    %29 = vector.multi_reduction <add>, %28, %cst_20 [1] : vector<8x128xf32> to vector<8xf32>
    %30 = vector.shape_cast %29 : vector<8xf32> to vector<8x1xf32>
    %cst_21 = arith.constant 1.280000e+02 : f32
    %31 = vector.broadcast %cst_21 : f32 to vector<8x1xf32>
    %32 = arith.divf %30, %31 : vector<8x1xf32>
    %33 = arith.mulf %27, %27 : vector<8x1xf32>
    %34 = arith.subf %32, %33 : vector<8x1xf32>
    %cst_22 = arith.constant 0.000000e+00 : f32
    %35 = vector.broadcast %cst_22 : f32 to vector<8x1xf32>
    %36 = arith.maximumf %34, %35 : vector<8x1xf32>
    %37 = vector.broadcast %27 : vector<8x1xf32> to vector<8x128xf32>
    %38 = arith.subf %23, %37 : vector<8x128xf32>
    %cst_23 = arith.constant 9.99999974E-6 : f32
    %39 = vector.broadcast %cst_23 : f32 to vector<8x1xf32>
    %40 = arith.addf %36, %39 : vector<8x1xf32>
    %41 = math.rsqrt %40 : vector<8x1xf32>
    %42 = vector.broadcast %41 : vector<8x1xf32> to vector<8x128xf32>
    %43 = arith.mulf %38, %42 : vector<8x128xf32>
    %44 = arith.mulf %43, %12 : vector<8x128xf32>
    %45 = arith.addf %44, %15 : vector<8x128xf32>
    %cst_24 = arith.constant dense<0.000000e+00> : vector<8x512xf32>
    %46 = tpu.matmul %45, %2, %cst_24 {dimension_numbers = #tpu.dot_dimension_numbers<[1], [0], [0], [1], [0, 0, 1, 1], [], []>, precision = #tpu.contract_precision<fp32>} : vector<8x128xf32>, vector<128x512xf32>, vector<8x512xf32> -> vector<8x512xf32>
    %47 = arith.addf %46, %6 : vector<8x512xf32>
    %cst_25 = arith.constant 0.000000e+00 : f32
    %48 = vector.broadcast %cst_25 : f32 to vector<8x512xf32>
    %49 = arith.maximumf %47, %48 : vector<8x512xf32>
    %cst_26 = arith.constant dense<0.000000e+00> : vector<8x128xf32>
    %50 = tpu.matmul %49, %3, %cst_26 {dimension_numbers = #tpu.dot_dimension_numbers<[1], [0], [0], [1], [0, 0, 1, 1], [], []>, precision = #tpu.contract_precision<fp32>} : vector<8x512xf32>, vector<512x128xf32>, vector<8x128xf32> -> vector<8x128xf32>
    %51 = arith.addf %50, %9 : vector<8x128xf32>
    %52 = arith.addf %45, %51 : vector<8x128xf32>
    %cst_27 = arith.constant dense<0.000000e+00> : vector<8xf32>
    %53 = vector.multi_reduction <add>, %52, %cst_27 [1] : vector<8x128xf32> to vector<8xf32>
    %54 = vector.shape_cast %53 : vector<8xf32> to vector<8x1xf32>
    %cst_28 = arith.constant 1.280000e+02 : f32
    %55 = vector.broadcast %cst_28 : f32 to vector<8x1xf32>
    %56 = arith.divf %54, %55 : vector<8x1xf32>
    %57 = arith.mulf %52, %52 : vector<8x128xf32>
    %cst_29 = arith.constant dense<0.000000e+00> : vector<8xf32>
    %58 = vector.multi_reduction <add>, %57, %cst_29 [1] : vector<8x128xf32> to vector<8xf32>
    %59 = vector.shape_cast %58 : vector<8xf32> to vector<8x1xf32>
    %cst_30 = arith.constant 1.280000e+02 : f32
    %60 = vector.broadcast %cst_30 : f32 to vector<8x1xf32>
    %61 = arith.divf %59, %60 : vector<8x1xf32>
    %62 = arith.mulf %56, %56 : vector<8x1xf32>
    %63 = arith.subf %61, %62 : vector<8x1xf32>
    %cst_31 = arith.constant 0.000000e+00 : f32
    %64 = vector.broadcast %cst_31 : f32 to vector<8x1xf32>
    %65 = arith.maximumf %63, %64 : vector<8x1xf32>
    %66 = vector.broadcast %56 : vector<8x1xf32> to vector<8x128xf32>
    %67 = arith.subf %52, %66 : vector<8x128xf32>
    %cst_32 = arith.constant 9.99999974E-6 : f32
    %68 = vector.broadcast %cst_32 : f32 to vector<8x1xf32>
    %69 = arith.addf %65, %68 : vector<8x1xf32>
    %70 = math.rsqrt %69 : vector<8x1xf32>
    %71 = vector.broadcast %70 : vector<8x1xf32> to vector<8x128xf32>
    %72 = arith.mulf %67, %71 : vector<8x128xf32>
    %73 = arith.mulf %72, %18 : vector<8x128xf32>
    %74 = arith.addf %73, %21 : vector<8x128xf32>
    %c0_33 = arith.constant 0 : index
    %c0_34 = arith.constant 0 : index
    %75 = vector.load %arg11[%c0_33, %c0_34] : memref<8x128xf32, #tpu.memory_space<vmem>>, vector<8x128xf32>
    tpu.vector_store %arg11[%c0_33, %c0_34], %74 {strides = array<i32>} : memref<8x128xf32, #tpu.memory_space<vmem>>, vector<8x128xf32>,
    return
  }
  func.func @transform_0(%arg0: i32) -> (i32, i32) {
    %c0_i32 = arith.constant 0 : i32
    %c0_i32_0 = arith.constant 0 : i32
    %c0_i32_1 = arith.constant 0 : i32
    return %c0_i32, %c0_i32_0 : i32, i32
  }
  func.func @transform_1(%arg0: i32) -> (i32, i32) {
    %c0_i32 = arith.constant 0 : i32
    %c0_i32_0 = arith.constant 0 : i32
    return %arg0, %c0_i32 : i32, i32
  }
  func.func @transform_2(%arg0: i32) -> (i32, i32) {
    %c0_i32 = arith.constant 0 : i32
    %c0_i32_0 = arith.constant 0 : i32
    %c0_i32_1 = arith.constant 0 : i32
    return %c0_i32, %c0_i32_0 : i32, i32
  }
  func.func @transform_3(%arg0: i32) -> (i32, i32) {
    %c0_i32 = arith.constant 0 : i32
    %c0_i32_0 = arith.constant 0 : i32
    %c0_i32_1 = arith.constant 0 : i32
    return %c0_i32, %c0_i32_0 : i32, i32
  }
  func.func @transform_4(%arg0: i32) -> (i32, i32) {
    %c0_i32 = arith.constant 0 : i32
    %c0_i32_0 = arith.constant 0 : i32
    %c0_i32_1 = arith.constant 0 : i32
    return %c0_i32, %c0_i32_0 : i32, i32
  }
  func.func @transform_5(%arg0: i32) -> (i32, i32) {
    %c0_i32 = arith.constant 0 : i32
    %c0_i32_0 = arith.constant 0 : i32
    %c0_i32_1 = arith.constant 0 : i32
    return %c0_i32, %c0_i32_0 : i32, i32
  }
  func.func @transform_6(%arg0: i32) -> (i32, i32) {
    %c0_i32 = arith.constant 0 : i32
    %c0_i32_0 = arith.constant 0 : i32
    %c0_i32_1 = arith.constant 0 : i32
    return %c0_i32, %c0_i32_0 : i32, i32
  }
  func.func @transform_7(%arg0: i32) -> (i32, i32) {
    %c0_i32 = arith.constant 0 : i32
    %c0_i32_0 = arith.constant 0 : i32
    %c0_i32_1 = arith.constant 0 : i32
    return %c0_i32, %c0_i32_0 : i32, i32
  }
  func.func @transform_8(%arg0: i32) -> (i32, i32) {
    %c0_i32 = arith.constant 0 : i32
    %c0_i32_0 = arith.constant 0 : i32
    %c0_i32_1 = arith.constant 0 : i32
    return %c0_i32, %c0_i32_0 : i32, i32
  }
  func.func @transform_9(%arg0: i32) -> (i32, i32) {
    %c0_i32 = arith.constant 0 : i32
    %c0_i32_0 = arith.constant 0 : i32
    %c0_i32_1 = arith.constant 0 : i32
    return %c0_i32, %c0_i32_0 : i32, i32
  }
  func.func @transform_10(%arg0: i32) -> (i32, i32) {
    %c0_i32 = arith.constant 0 : i32
    %c0_i32_0 = arith.constant 0 : i32
    return %arg0, %c0_i32 : i32, i32
  }
}

</mosaic_0001>

<bundles_post_ra>
// kernel: snn_dt_forward.1
= control target key start
LH: loop header
LB: loop body
LE: loop exit
PB: predicated region body
PF: predicated region fallthrough
CT: control target
= control target key end

     0   :  { %s8491_s0 = inlined_call_operand.<no memory space> [shape: f32[1,1], index: 0, kind: input, shape index: {}]   ;;  %s8492_s1 = inlined_call_operand.vmem [shape: f32[16,128], index: 1, kind: input, shape index: {}]   ;;  %s8493_s2 = inlined_call_operand.hbm [shape: f32[128,512], index: 2, kind: input, shape index: {}]   ;;  %s8494_s3 = inlined_call_operand.vmem [shape: f32[1,512], index: 3, kind: input, shape index: {}]   ;;  %s8495_s4 = inlined_call_operand.hbm [shape: f32[512,128], index: 4, kind: input, shape index: {}]   ;;  %s8496_s5 = inlined_call_operand.vmem [shape: f32[1,128], index: 5, kind: input, shape index: {}]   ;;  %s8497_s6 = inlined_call_operand.vmem [shape: f32[1,128], index: 6, kind: input, shape index: {}]   ;;  %s8498_s7 = inlined_call_operand.vmem [shape: f32[1,128], index: 7, kind: input, shape index: {}]   ;;  %s8499_s8 = inlined_call_operand.vmem [shape: f32[1,128], index: 8, kind: input, shape index: {}]   ;;  %s8500_s9 = inlined_call_operand.vmem [shape: f32[1,128], index: 9, kind: input, shape index: {}]   ;;  %s8501_s10 = inlined_call_operand.hbm [shape: f32[16,128], index: 10, kind: output, shape index: {}]  }
   0x1   :  { %15 = sst [smem:[#allocation2]] %s8491_s0 }
   0x2   :  { %16 = vsyncpa [#allocation4], 0 }
   0x3   :  { %17 = vsyncpa [#allocation7], 0 }
   0x4   :  { %18 = vsyncpa [#allocation5], 0 }
   0x5   :  { %20 = vsyncpa [#allocation5 + $0x1], 0  ;;  %s5637_s15 = smov 0   ;;  %s5639_s16 = smov 0  }
   0x6   :  { %s5641_s17 = smov 0   ;;  %s5643_s18 = smov 0  }
   0x7 LB: > { %8876 = sst [smem:[#allocation12_spill]] %s5565_s17  ;;  %s5658_s0 = sadd.s32 4294967295, %s5569_s18   ;;  %s5569_s18 = sphi %s5643_s18, %s9585_s18   ;;  %s5565_s17 = sphi %s5641_s17, %s9587_s17   ;;  %s5561_s16 = sphi %s5639_s16, %s9589_s16   ;;  %s5557_s15 = sphi %s5637_s15, %s9588_s15  }
   0x8   : > { %s4143_s19 = sadd.s32 4294967294, %s5569_s18   ;;  %s5662_s20 = sadd.s32 1, %s5569_s18  }
   0x9   : > { %8877 = sst [smem:[#allocation13_spill]] %s5662_s20  ;;  %s248_s21 = sadd.s32 1, %s5565_s17 }
   0xa   : > { %s245_s22 = ssub.s32 %s5569_s18, %s5662_s20  ;;  %p258_p0 = scmp.ne.s32.totalorder %s5565_s17, %s5561_s16 }
   0xb   : > { %p246_p1 = scmp.eq.s32.totalorder %s245_s22, 0  ;;  %p259_p2 = scmp.eq.s32.totalorder %s5658_s0, 1 }
   0xc   : > { %p264_p3 = scmp.ne.s32.totalorder %s5561_s16, %s5557_s15  ;;  %p265_p4 = scmp.eq.s32.totalorder %s4143_s19, 1 }
   0xd   : > { %s5673_s23 = scalar_select %p246_p1, %s5565_s17, %s248_s21  }
   0xe   : > { %p5675_p5 = por %p259_p2, %p258_p0  ;;  %p5679_p6 = por %p265_p4, %p264_p3 }
   0xf   : > { %8878 = sst [smem:[#allocation14_spill]] %s5673_s23  ;;  %p4144_p7 = scmp.ge.s32.totalorder %s5569_s18, 1 }
  0x10   : > { %s8879_s24 = scalar_select %p5675_p5, 1, 0 }
  0x11   : > { %s8880_s25 = scalar_select %p5679_p6, 1, 0 }
  0x12   : > { %p272_p8 = scmp.lt.s32.totalorder %s5569_s18, 3  ;;  %p8502_p9 = scmp.eq.s32.totalorder %s5658_s0, 0 }
  0x13   : > { %s5571_s27 = smov [#allocation3]   ;;  %s5572_s30 = smov [#allocation6]  }
  0x14   : > { %p5686_p10 = pnand %p4144_p7, %p272_p8  ;;  %s287_s28 = sshll.u32 %s5571_s27, 4  ;;  %s288_s28 = int_to_ptr.vmem [resolvable:$true] %s287_s28 }
  0x15   : > { %s303_s11 = sshll.u32 %s5572_s30, 4  ;;  %s5443_s14 = scalar_lea.hbm %s8493_s2, 8192  ;;  %s5698_s11 = int_to_ptr.vmem [resolvable:$true] %s303_s11 }
  0x16   : > { %s8881_s26 = scalar_select %p5686_p10, 1, 0 }
  0x17   : > { %p5384_p11 = pneg %p5686_p10  ;;  %p5444_p13 = scmp.ne.s32.totalorder %s8493_s2, %s5443_s14 }
  0x18   : > { %p5450_p3 = scmp.lt.u32.totalorder %s5443_s14, %s8493_s2 }
  0x19   : > { %p5694_p12 = pnand %p8502_p9, %p5384_p11 }
  0x1b   : > { %p5445_p0 = pneg %p5694_p12 }
  0x1d   : > { %p5446_p1 = pnand %p5445_p0, %p5444_p13 }
  0x1f   : > { %p5447_p2 = pneg %p5446_p1 }
  0x21   : > { %p5452_p4 = pnand %p5450_p3, %p5447_p2 }
  0x23   : > { %5455 = shalt.err (!%p5452_p4)
}
  0x24   : > { %s5456_s30 = scalar_lea.vmem %s288_s28, 8192  ;;  %p5464_p9 = scmp.lt.s32.totalorder %s288_s28, %s288_s28 }
  0x25   : > { %p5457_p7 = scmp.ne.s32.totalorder %s288_s28, %s5456_s30  ;;  %p5465_p6 = scmp.lt.s32.totalorder %s5456_s30, %s5456_s30 }
  0x27   : > { %p5459_p8 = pnand %p5457_p7, %p5445_p0  ;;  %p5466_p5 = por %p5465_p6, %p5464_p9 }
  0x29   : > { %p5460_p11 = pneg %p5459_p8 }
  0x2b   : > { %p5467_p10 = pnand %p5466_p5, %p5460_p11 }
  0x2d   : > { %5470 = shalt.err (!%p5467_p10)
}
  0x2e   : > { %s5573_s12 = smov 512   ;;  %s5574_s13 = smov 32  }
  0x2f   : > { %5387 = dma.hbm_to_vmem [thread:$0]  (!%p5694_p12), %s8493_s2, 8192, %s288_s28, [#allocation4], %s5573_s12, %s5573_s12, %s5574_s13  }
  0x30   : > { %s5471_s27 = scalar_lea.hbm %s8495_s4, 8192 }
  0x31   : > { %p5472_p13 = scmp.ne.s32.totalorder %s8495_s4, %s5471_s27  ;;  %p5478_p9 = scmp.lt.u32.totalorder %s5471_s27, %s8495_s4 }
  0x33   : > { %p5474_p5 = pnand %p5472_p13, %p5445_p0 }
  0x35   : > { %p5475_p6 = pneg %p5474_p5 }
  0x37   : > { %p5480_p10 = pnand %p5478_p9, %p5475_p6 }
  0x39   : > { %5483 = shalt.err (!%p5480_p10)
}
  0x3a   : > { %s5484_s28 = scalar_lea.vmem %s5698_s11, 8192  ;;  %p5492_p4 = scmp.lt.s32.totalorder %s5698_s11, %s5698_s11 }
  0x3b   : > { %p5485_p1 = scmp.ne.s32.totalorder %s5698_s11, %s5484_s28  ;;  %p5493_p7 = scmp.lt.s32.totalorder %s5484_s28, %s5484_s28 }
  0x3d   : > { %p5487_p2 = pnand %p5485_p1, %p5445_p0  ;;  %p5494_p8 = por %p5493_p7, %p5492_p4 }
  0x3f   : > { %p5488_p3 = pneg %p5487_p2 }
  0x41   : > { %p5495_p11 = pnand %p5494_p8, %p5488_p3 }
  0x43   : > { %5498 = shalt.err (!%p5495_p11)
}
  0x44   : > { %s5575_s17 = smov 128   ;;  %s5576_s20 = smov 8  }
  0x45   : > { %5390 = dma.hbm_to_vmem [thread:$0]  (!%p5694_p12), %s8495_s4, 8192, %s5698_s11, [#allocation7], %s5575_s17, %s5575_s17, %s5576_s20  }
  0x46   : > { %p8883_p13 = scmp.ne.s32.totalorder %s8881_s26, 0 }
  0x48   : > { %341 = sbr.rel (%p8883_p13) target bundleno = 1238 (0x4d6), region = 60 }
  0x4f   : > { %p8884_p0 = scmp.eq.s32.totalorder %s5658_s0, 0 }
  0x51   : > { %5544 = dma.done.wait (%p8884_p0), [#allocation4], 8192   ;;  %p8885_p5 = pmov %p8884_p0 }
  0x52   : > { %p8886_p6 = pmov %p8884_p0 }
  0x53   : > { %5546 = vsyncadd (%p8885_p5), [#allocation4], 4294959104 }
  0x54   : > { %5548 = dma.done.wait (%p8886_p6), [#allocation7], 8192   ;;  %p8887_p9 = pmov %p8884_p0 }
  0x55   : > { %p382_p10 = scmp.lt.s32.totalorder %s5658_s0, 1  ;;  %s386_s29 = sld [smem:[#allocation2]]  ;;  %v5767_v4 = vld [vmem:[#allocation3 + $0x8] sm:$0xff]  ;;  %v5771_v6 = vld [vmem:[#allocation3 + $0x18] sm:$0xff]  ;;  %v5779_v12 = vld [vmem:[#allocation3] sm:$0xff] }
  0x56   : > { %5550 = vsyncadd (%p8887_p9), [#allocation7], 4294959104  ;;  %v5769_v5 = vld [vmem:[#allocation3 + $0x28] sm:$0xff]  ;;  %v8539_v7 = vand.u32 4294901760, %v5767_v4  ;;  %v5775_v9 = vld [vmem:[#allocation3 + $0x38] sm:$0xff]  ;;  %v8535_v10 = vand.u32 4294901760, %v5771_v6 }
  0x57   : > { %s383_s11 = scalar_select %p382_p10, %s5658_s0, 1  ;;  %v8538_v8 = vand.u32 4294901760, %v5769_v5  ;;  %v8534_v11 = vand.u32 4294901760, %v5775_v9  ;;  %v5781_v13 = vld [vmem:[#allocation3 + $0x20] sm:$0xff]  ;;  %v5783_v14 = vld [vmem:[#allocation3 + $0x10] sm:$0xff]  ;;  %v8533_v16 = vand.u32 4294901760, %v5779_v12 }
  0x58   : > { %v8532_v17 = vand.u32 4294901760, %v5781_v13  ;;  %v5793_v18 = vld [vmem:[#allocation3 + $0x30] sm:$0xff]  ;;  %v8529_v19 = vand.u32 4294901760, %v5783_v14  ;;  %v5803_v22 = vld [vmem:[#allocation3 + $0x48] sm:$0xff]  ;;  %v5807_v24 = vld [vmem:[#allocation3 + $0x58] sm:$0xff]  ;;  %s379_s12 = sand.u32 1, %s5561_s16  }
  0x59   : > { %s4152_s13 = sshll.u32 %s383_s11, 3  ;;  %v5789_v15 = vpack.c.bf16 %v8538_v8, %v8539_v7  ;;  %v5800_v20 = vpack.c.bf16 %v8534_v11, %v8535_v10  ;;  %v8526_v21 = vand.u32 4294901760, %v5793_v18  ;;  %v5805_v23 = vld [vmem:[#allocation3 + $0x68] sm:$0xff]  ;;  %v8523_v26 = vand.u32 4294901760, %v5803_v22  ;;  %v5818_v28 = vld [vmem:[#allocation3 + $0x78] sm:$0xff]  ;;  %v5821_v30 = vld [vmem:[#allocation3 + $0x40] sm:$0xff] }
  0x5a   : > { %s385_s19 = scalar_lea.vmem %s8492_s1, %s4152_s13  ;;  %v5814_v25 = vpack.c.bf16 %v8532_v17, %v8533_v16  ;;  %v8522_v27 = vand.u32 4294901760, %v5805_v23  ;;  %v8521_v29 = vand.u32 4294901760, %v5807_v24  ;;  %v5823_v31 = vld [vmem:[#allocation3 + $0x60] sm:$0xff]  ;;  %v8520_v33 = vand.u32 4294901760, %v5818_v28  ;;  %v5835_v36 = vld [vmem:[#allocation3 + $0x50] sm:$0xff]  ;;  %v5861_v43 = vld [vmem:[#allocation3 + $0x88] sm:$0xff] }
  0x5b   : > { %v387_v0 = vld [vmem:[%s385_s19] sm:$0xff]  ;;  %v573_v1 = vstv %s386_s29  ;;  %8889 = vst [vmem:[#allocation16_spill] sm:$0xff] %v5789_v15  ;;  %8890 = vst [vmem:[#allocation17_spill] sm:$0xff] %v5800_v20  ;;  %4583 = vmatprep.subr.bf16.mxu0 %v5789_v15  ;;  %4775 = vmatprep.subr.bf16.mxu1 %v5800_v20  ;;  %v5830_v32 = vpack.c.bf16 %v8526_v21, %v8529_v19  ;;  %v8519_v34 = vand.u32 4294901760, %v5821_v30  ;;  %v8518_v35 = vand.u32 4294901760, %v5823_v31  ;;  %v5837_v37 = vld [vmem:[#allocation3 + $0x70] sm:$0xff] }
  0x5c   : > { %v5762_v2 = vmul.f32 %v573_v1, %v387_v0  ;;  %8891 = vst [vmem:[#allocation18_spill] sm:$0xff] %v5814_v25  ;;  %4585 = vmatpush1.bf16.msra.mxu0 %v5814_v25  ;;  %v5844_v38 = vpack.c.bf16 %v8522_v27, %v8523_v26  ;;  %v8515_v39 = vand.u32 4294901760, %v5835_v36  ;;  %v8514_v40 = vand.u32 4294901760, %v5837_v37  ;;  %v5863_v44 = vld [vmem:[#allocation3 + $0xa8] sm:$0xff]  ;;  %v5865_v45 = vld [vmem:[#allocation3 + $0x98] sm:$0xff]  ;;  %v5879_v51 = vld [vmem:[#allocation3 + $0x80] sm:$0xff] }
  0x5d   : > { %8892 = vst [vmem:[#allocation19_spill] sm:$0xff] %v5830_v32  ;;  %4777 = vmatpush1.bf16.msra.mxu1 %v5830_v32  ;;  %v5853_v41 = vpack.c.bf16 %v8520_v33, %v8521_v29  ;;  %v5859_v42 = vpack.c.bf16 %v8518_v35, %v8519_v34  ;;  %v8513_v47 = vand.u32 4294901760, %v5861_v43  ;;  %v8512_v48 = vand.u32 4294901760, %v5863_v44  ;;  %v5876_v49 = vld [vmem:[#allocation3 + $0xb8] sm:$0xff]  ;;  %v5881_v52 = vld [vmem:[#allocation3 + $0xa0] sm:$0xff]  ;;  %v5887_v56 = vld [vmem:[#allocation3 + $0x90] sm:$0xff] }
  0x5e   : > { %8888 = vst [vmem:[#allocation15_spill] sm:$0xff] %v5762_v2  ;;  %575 = vadd.xlane.f32.xlu0 %v5762_v2  ;;  %v579_v3 = vmul.f32 %v5762_v2, %v5762_v2  ;;  %8893 = vst [vmem:[#allocation20_spill] sm:$0xff] %v5844_v38  ;;  %4587 = vmatprep.subr.bf16.mxu0 %v5844_v38  ;;  %v5872_v46 = vpack.c.bf16 %v8514_v40, %v8515_v39  ;;  %v8509_v50 = vand.u32 4294901760, %v5865_v45  ;;  %v5889_v57 = vld [vmem:[#allocation3 + $0xb0] sm:$0xff]  ;;  %v5913_v63 = vld [vmem:[#allocation3 + $0xc8] sm:$0xff]  ;;  %s4151_s29 = sshll.u32 %s379_s12, 3 }
  0x5f   : > { %8894 = vst [vmem:[#allocation21_spill] sm:$0xff] %v5853_v41  ;;  %8895 = vst [vmem:[#allocation22_spill] sm:$0xff] %v5859_v42  ;;  %4779 = vmatprep.subr.bf16.mxu1 %v5853_v41  ;;  %v8508_v53 = vand.u32 4294901760, %v5876_v49  ;;  %v8511_v54 = vand.u32 4294901760, %v5879_v51  ;;  %v8510_v55 = vand.u32 4294901760, %v5881_v52  ;;  %v5896_v58 = vpack.c.bf16 %v8512_v48, %v8513_v47  ;;  %v5915_v0 = vld [vmem:[#allocation3 + $0xe8] sm:$0xff] }
  0x60   : > { %8896 = vst [vmem:[#allocation23_spill] sm:$0xff] %v5872_v46  ;;  %4589 = vmatpush1.bf16.msra.mxu0 %v5859_v42  ;;  %v8517_v59 = vand.u32 4294901760, %v5887_v56  ;;  %v8516_v60 = vand.u32 4294901760, %v5889_v57  ;;  %v5917_v1 = vld [vmem:[#allocation3 + $0xd8] sm:$0xff]  ;;  %v5931_v48 = vld [vmem:[#allocation3 + $0xc0] sm:$0xff]  ;;  %v5941_v35 = vld [vmem:[#allocation3 + $0xf0] sm:$0xff] }
  0x61   : > { %8897 = vst [vmem:[#allocation24_spill] sm:$0xff] %v5896_v58  ;;  %4781 = vmatpush1.bf16.msra.mxu1 %v5872_v46  ;;  %v5905_v61 = vpack.c.bf16 %v8508_v53, %v8509_v50  ;;  %v5911_v62 = vpack.c.bf16 %v8510_v55, %v8511_v54  ;;  %4591 = vmatprep.subr.bf16.mxu0 %v5896_v58  ;;  %v8525_v53 = vand.u32 4294901760, %v5913_v63  ;;  %v8524_v50 = vand.u32 4294901760, %v5915_v0  ;;  %v5928_v55 = vld [vmem:[#allocation3 + $0xf8] sm:$0xff]  ;;  %v5933_v47 = vld [vmem:[#allocation3 + $0xe0] sm:$0xff]  ;;  %v5993_v8 = vld [vmem:[#allocation3 + $0x130] sm:$0xff] }
  0x62   : > { %580 = vadd.xlane.f32.xlu0 %v579_v3  ;;  %v5924_v3 = vpack.c.bf16 %v8516_v60, %v8517_v59  ;;  %v8528_v54 = vand.u32 4294901760, %v5917_v1  ;;  %v8527_v40 = vand.u32 4294901760, %v5928_v55  ;;  %v8531_v39 = vand.u32 4294901760, %v5931_v48  ;;  %v5939_v59 = vld [vmem:[#allocation3 + $0xd0] sm:$0xff]  ;;  %v5969_v21 = vld [vmem:[#allocation3 + $0x118] sm:$0xff]  ;;  %v5983_v17 = vld [vmem:[#allocation3 + $0x100] sm:$0xff] }
  0x63   : > { %8898 = vst [vmem:[#allocation25_spill] sm:$0xff] %v5905_v61  ;;  %8899 = vst [vmem:[#allocation26_spill] sm:$0xff] %v5911_v62  ;;  %4783 = vmatprep.subr.bf16.mxu1 %v5905_v61  ;;  %v8530_v60 = vand.u32 4294901760, %v5933_v47  ;;  %v5948_v34 = vpack.c.bf16 %v8524_v50, %v8525_v53  ;;  %v8537_v33 = vand.u32 4294901760, %v5939_v59  ;;  %v8536_v29 = vand.u32 4294901760, %v5941_v35  ;;  %v5965_v50 = vld [vmem:[#allocation3 + $0x108] sm:$0xff] }
  0x64   : > { %8900 = vst [vmem:[#allocation27_spill] sm:$0xff] %v5924_v3  ;;  %4593 = vmatpush1.bf16.msra.mxu0 %v5911_v62  ;;  %v5957_v27 = vpack.c.bf16 %v8527_v40, %v8528_v54  ;;  %v5967_v53 = vld [vmem:[#allocation3 + $0x128] sm:$0xff]  ;;  %v8549_v54 = vand.u32 4294901760, %v5965_v50  ;;  %v5985_v16 = vld [vmem:[#allocation3 + $0x120] sm:$0xff]  ;;  %v8918_v32 = vand.u32 4294901760, %v5767_v4  ;;  %v8920_v20 = vand.u32 4294901760, %v5769_v5 }
  0x65   : > { %8901 = vst [vmem:[#allocation28_spill] sm:$0xff] %v5948_v34  ;;  %4785 = vmatpush1.bf16.msra.mxu1 %v5924_v3  ;;  %v5963_v26 = vpack.c.bf16 %v8530_v60, %v8531_v39  ;;  %4595 = vmatprep.subr.bf16.mxu0 %v5948_v34  ;;  %v5976_v40 = vpack.c.bf16 %v8536_v29, %v8537_v33  ;;  %v8548_v19 = vand.u32 4294901760, %v5967_v53  ;;  %v5980_v60 = vld [vmem:[#allocation3 + $0x138] sm:$0xff]  ;;  %v5991_v33 = vld [vmem:[#allocation3 + $0x110] sm:$0xff]  ;;  %v8906_v29 = vand.u32 4294901760, %v5969_v21  ;;  %v6036_v61 = vld [vmem:[#allocation3 + $0x160] sm:$0xff] }
  0x66   : > { %8902 = vst [vmem:[#allocation29_spill] sm:$0xff] %v5957_v27  ;;  %4787 = vmatprep.subr.bf16.mxu1 %v5957_v27  ;;  %v8907_v10 = vand.u32 4294901760, %v5980_v60  ;;  %v8910_v34 = vand.u32 4294901760, %v5985_v16  ;;  %v6021_v39 = vld [vmem:[#allocation3 + $0x158] sm:$0xff]  ;;  %v8912_v11 = vand.u32 4294901760, %v5991_v33  ;;  %8915 = vst [vmem:[#allocation36_spill] sm:$0xff] %v6036_v61  ;;  %v6055_v25 = vsub.f32 %v5767_v4, %v8918_v32 }
  0x67   : > { %8903 = vst [vmem:[#allocation30_spill] sm:$0xff] %v5963_v26  ;;  %8904 = vst [vmem:[#allocation31_spill] sm:$0xff] %v5976_v40  ;;  %v6000_v7 = vpack.c.bf16 %v8548_v19, %v8549_v54  ;;  %v6017_v19 = vld [vmem:[#allocation3 + $0x148] sm:$0xff]  ;;  %v638_v41 = vand.u32 4294901760, %v6036_v61  ;;  %v6060_v15 = vsub.f32 %v5769_v5, %v8920_v20  ;;  %v8924_v61 = vand.u32 4294901760, %v5775_v9  ;;  %s4159_s19 = sshll.u32 %s5658_s0, 7 }
  0x68   : > { %4597 = vmatpush1.bf16.msra.mxu0 %v5963_v26  ;;  %v6009_v27 = vpack.c.bf16 %v8907_v10, %v8906_v29  ;;  %v8909_v26 = vand.u32 4294901760, %v5983_v17  ;;  %v6019_v54 = vld [vmem:[#allocation3 + $0x168] sm:$0xff]  ;;  %v632_v29 = vand.u32 4294901760, %v6017_v19  ;;  %8919 = vst [vmem:[#allocation39_spill] sm:$0xff] %v6055_v25  ;;  %v8926_v4 = vand.u32 4294901760, %v5779_v12  ;;  %s381_s21 = scalar_lea.vmem [#allocation8], %s4151_s29  ;;  %s8449_s28 = scalar_lea.hbm %s8501_s10, %s4159_s19 }
  0x69   : > { %8905 = vst [vmem:[#allocation32_spill] sm:$0xff] %v6000_v7  ;;  %4789 = vmatpush1.bf16.msra.mxu1 %v5976_v40  ;;  %4599 = vmatprep.subr.bf16.mxu0 %v6000_v7  ;;  %v8913_v40 = vand.u32 4294901760, %v5993_v8  ;;  %v636_v62 = vand.u32 4294901760, %v6019_v54  ;;  %v1487_v7 = vand.u32 4294901760, %v6021_v39  ;;  %8921 = vst [vmem:[#allocation40_spill] sm:$0xff] %v6060_v15  ;;  %v8928_v5 = vand.u32 4294901760, %v5781_v13 }
  0x6a   : > { %8908 = vst [vmem:[#allocation33_spill] sm:$0xff] %v6009_v27  ;;  %v6015_v3 = vpack.c.bf16 %v8910_v34, %v8909_v26  ;;  %v6032_v26 = vld [vmem:[#allocation3 + $0x178] sm:$0xff]  ;;  %v6034_v34 = vld [vmem:[#allocation3 + $0x140] sm:$0xff]  ;;  %4791 = vmatprep.subr.bf16.mxu1 %v6009_v27  ;;  %v6076_v32 = vsub.f32 %v5779_v12, %v8926_v4  ;;  %v8932_v12 = vand.u32 4294901760, %v5803_v22  ;;  %s4062_s22 = sshll.u32 %s381_s21, 4  ;;  %s4049_s17 = scalar_lea.sflag [#allocation5], %s379_s12  ;;  %s8451_s22 = int_to_ptr.vmem [resolvable:$true] %s4062_s22 }
  0x6b   : > { %v6028_v10 = vpack.c.bf16 %v8913_v40, %v8912_v11  ;;  %v1491_v58 = vand.u32 4294901760, %v6032_v26  ;;  %v634_v46 = vand.u32 4294901760, %v6034_v34  ;;  %v6042_v11 = vld [vmem:[#allocation3 + $0x150] sm:$0xff]  ;;  %v6047_v42 = vpack.c.bf16 %v636_v62, %v632_v29  ;;  %s5499_s20 = scalar_lea.vmem %s8451_s22, 128  ;;  %p9583_p1 = scmp.ne.s32.totalorder %s8879_s24, 0 }
  0x6c   : > { %8911 = vst [vmem:[#allocation34_spill] sm:$0xff] %v6015_v3  ;;  %8916 = vst [vmem:[#allocation37_spill] sm:$0xff] %v6042_v11  ;;  %v6044_v40 = vld [vmem:[#allocation3 + $0x170] sm:$0xff]  ;;  %4601 = vmatpush1.bf16.msra.mxu0 %v6015_v3  ;;  %v1489_v38 = vand.u32 4294901760, %v6042_v11  ;;  %v8922_v3 = vand.u32 4294901760, %v5771_v6  ;;  %v6070_v11 = vsub.f32 %v5775_v9, %v8924_v61  ;;  %v6081_v20 = vsub.f32 %v5781_v13, %v8928_v5  ;;  %p5500_p12 = scmp.ne.s32.totalorder %s8451_s22, %s5499_s20  ;;  %s5578_s0 = smov [#allocation8]  }
  0x6d   : > { %8914 = vst [vmem:[#allocation35_spill] sm:$0xff] %v6028_v10  ;;  %8917 = vst [vmem:[#allocation38_spill] sm:$0xff] %v6047_v42  ;;  %v1493_v27 = vand.u32 4294901760, %v6044_v40  ;;  %4793 = vmatpush1.bf16.msra.mxu1 %v6028_v10  ;;  %v8931_v9 = vand.u32 4294901760, %v5793_v18  ;;  %4603 = vmatprep.subr.bf16.mxu0 %v6047_v42  ;;  %v6097_v4 = vsub.f32 %v5803_v22, %v8932_v12  ;;  %v8933_v13 = vand.u32 4294901760, %v5805_v23  ;;  %v441_v10 = vld [vmem:[#allocation3 + $0x1a8] sm:$0xff] }
  0x6e   : > { %v6065_v2 = vsub.f32 %v5771_v6, %v8922_v3  ;;  %8925 = vst [vmem:[#allocation42_spill] sm:$0xff] %v6070_v11  ;;  %8927 = vst [vmem:[#allocation43_spill] sm:$0xff] %v6076_v32  ;;  %v8930_v6 = vand.u32 4294901760, %v5783_v14  ;;  %v8936_v42 = vand.u32 4294901760, %v5821_v30  ;;  %v8937_v12 = vand.u32 4294901760, %v5823_v31  ;;  %p5501_p2 = pnand %p5500_p12, %p9583_p1  ;;  %s5503_s23 = sshll.u32 %s5578_s0, 4  ;;  %s5504_s23 = int_to_ptr.vmem [resolvable:$false] %s5503_s23 }
  0x6f   : > { %8929 = vst [vmem:[#allocation44_spill] sm:$0xff] %v6081_v20  ;;  %v6091_v61 = vsub.f32 %v5793_v18, %v8931_v9  ;;  %v6102_v5 = vsub.f32 %v5805_v23, %v8933_v13  ;;  %v8935_v18 = vand.u32 4294901760, %v5818_v28  ;;  %v8938_v13 = vand.u32 4294901760, %v5835_v36  ;;  %s5505_s29 = scalar_lea.vmem %s5504_s23, 256  ;;  %p5506_p4 = scmp.lt.s32.totalorder %s8451_s22, %s5504_s23 }
  0x70   : > { %8923 = vst [vmem:[#allocation41_spill] sm:$0xff] %v6065_v2  ;;  %v6086_v3 = vsub.f32 %v5783_v14, %v8930_v6  ;;  %v8934_v14 = vand.u32 4294901760, %v5807_v24  ;;  %v6117_v22 = vsub.f32 %v5821_v30, %v8936_v42  ;;  %v6122_v23 = vsub.f32 %v5823_v31, %v8937_v12  ;;  %p5502_p3 = pneg %p5501_p2  ;;  %p5507_p7 = scmp.lt.s32.totalorder %s5505_s29, %s5499_s20 }
  0x71   : > { %v6112_v9 = vsub.f32 %v5818_v28, %v8935_v18  ;;  %v8940_v18 = vand.u32 4294901760, %v5861_v43  ;;  %v8941_v42 = vand.u32 4294901760, %v5863_v44  ;;  %v8942_v12 = vand.u32 4294901760, %v5865_v45 }
  0x72   : > { %v6107_v6 = vsub.f32 %v5807_v24, %v8934_v14  ;;  %v6127_v24 = vsub.f32 %v5835_v36, %v8938_v13  ;;  %v8939_v14 = vand.u32 4294901760, %v5837_v37  ;;  %v8943_v13 = vand.u32 4294901760, %v5876_v49  ;;  %p5508_p8 = por %p5507_p7, %p5506_p4 }
  0x73   : > { %v6137_v30 = vsub.f32 %v5861_v43, %v8940_v18  ;;  %v6142_v31 = vsub.f32 %v5863_v44, %v8941_v42  ;;  %v6147_v36 = vsub.f32 %v5865_v45, %v8942_v12  ;;  %v8945_v18 = vand.u32 4294901760, %v5881_v52 }
  0x74   : > { %v6132_v28 = vsub.f32 %v5837_v37, %v8939_v14  ;;  %v6152_v37 = vsub.f32 %v5876_v49, %v8943_v13  ;;  %v8944_v14 = vand.u32 4294901760, %v5879_v51  ;;  %v8946_v42 = vand.u32 4294901760, %v5887_v56  ;;  %p5509_p11 = pnand %p5508_p8, %p5502_p3 }
  0x75   : > { %v6162_v44 = vsub.f32 %v5881_v52, %v8945_v18  ;;  %v8947_v12 = vand.u32 4294901760, %v5889_v57  ;;  %v8948_v13 = vand.u32 4294901760, %v5913_v63  ;;  %v8950_v18 = vand.u32 4294901760, %v5917_v1 }
  0x76   : > { %v6157_v43 = vsub.f32 %v5879_v51, %v8944_v14  ;;  %v6167_v45 = vsub.f32 %v5887_v56, %v8946_v42  ;;  %v8949_v14 = vand.u32 4294901760, %v5915_v0  ;;  %v8952_v42 = vand.u32 4294901760, %v5928_v55 }
  0x77   : > { %v6172_v49 = vsub.f32 %v5889_v57, %v8947_v12  ;;  %v6177_v51 = vsub.f32 %v5913_v63, %v8948_v13  ;;  %v6187_v56 = vsub.f32 %v5917_v1, %v8950_v18  ;;  %v8953_v12 = vand.u32 4294901760, %v5931_v48 }
  0x78   : > { %v6182_v52 = vsub.f32 %v5915_v0, %v8949_v14  ;;  %v6192_v57 = vsub.f32 %v5928_v55, %v8952_v42  ;;  %v8955_v13 = vand.u32 4294901760, %v5933_v47  ;;  %v8957_v14 = vand.u32 4294901760, %v5939_v59 }
  0x79   : > { %8951 = vst [vmem:[#allocation45_spill] sm:$0xff] %v6187_v56  ;;  %v6197_v63 = vsub.f32 %v5931_v48, %v8953_v12  ;;  %v8959_v18 = vand.u32 4294901760, %v5941_v35  ;;  %v8960_v42 = vand.u32 4294901760, %v5965_v50  ;;  %v8962_v12 = vand.u32 4294901760, %v5967_v53 }
  0x7a   : > { %v6202_v0 = vsub.f32 %v5933_v47, %v8955_v13  ;;  %v6207_v1 = vsub.f32 %v5939_v59, %v8957_v14  ;;  %v8964_v13 = vand.u32 4294901760, %v5969_v21  ;;  %v8966_v14 = vand.u32 4294901760, %v5980_v60 }
  0x7b   : > { %8954 = vst [vmem:[#allocation46_spill] sm:$0xff] %v6197_v63  ;;  %v6212_v55 = vsub.f32 %v5941_v35, %v8959_v18  ;;  %v6217_v48 = vsub.f32 %v5965_v50, %v8960_v42  ;;  %v6222_v47 = vsub.f32 %v5967_v53, %v8962_v12  ;;  %v8968_v18 = vand.u32 4294901760, %v5983_v17 }
  0x7c   : > { %8956 = vst [vmem:[#allocation47_spill] sm:$0xff] %v6202_v0  ;;  %8958 = vst [vmem:[#allocation48_spill] sm:$0xff] %v6207_v1  ;;  %v6227_v59 = vsub.f32 %v5969_v21, %v8964_v13  ;;  %v6232_v35 = vsub.f32 %v5980_v60, %v8966_v14  ;;  %v8970_v42 = vand.u32 4294901760, %v5985_v16  ;;  %v8972_v12 = vand.u32 4294901760, %v5991_v33  ;;  %v437_v14 = vld [vmem:[#allocation3 + $0x188] sm:$0xff] }
  0x7d   : > { %8961 = vst [vmem:[#allocation49_spill] sm:$0xff] %v6217_v48  ;;  %8963 = vst [vmem:[#allocation50_spill] sm:$0xff] %v6222_v47  ;;  %v6237_v50 = vsub.f32 %v5983_v17, %v8968_v18  ;;  %v8974_v13 = vand.u32 4294901760, %v5993_v8  ;;  %v6255_v17 = vsub.f32 %v6017_v19, %v632_v29  ;;  %v6258_v18 = vsub.f32 %v6019_v54, %v636_v62  ;;  %v8983_v19 = vld [vmem:[#allocation36_spill] sm:$0xff]  ;;  %v440_v54 = vld [vmem:[#allocation3 + $0x1a0] sm:$0xff] }
  0x7e   : > { %8965 = vst [vmem:[#allocation51_spill] sm:$0xff] %v6227_v59  ;;  %8967 = vst [vmem:[#allocation52_spill] sm:$0xff] %v6232_v35  ;;  %v6242_v53 = vsub.f32 %v5985_v16, %v8970_v42  ;;  %v6247_v21 = vsub.f32 %v5991_v33, %v8972_v12  ;;  %v6260_v16 = vpack.c.bf16 %v1491_v58, %v1487_v7  ;;  %v439_v33 = vld [vmem:[#allocation3 + $0x198] sm:$0xff]  ;;  %v438_v62 = vld [vmem:[#allocation3 + $0x190] sm:$0xff] }
  0x7f   : > { %8969 = vst [vmem:[#allocation53_spill] sm:$0xff] %v6237_v50  ;;  %v6252_v60 = vsub.f32 %v5993_v8, %v8974_v13  ;;  %8976 = vst [vmem:[#allocation57_spill] sm:$0xff] %v6255_v17  ;;  %v6263_v42 = vsub.f32 %v6021_v39, %v1487_v7  ;;  %v443_v12 = vld [vmem:[#allocation3 + $0x1b8] sm:$0xff]  ;;  %v6268_v8 = vpack.c.bf16 %v638_v41, %v634_v46  ;;  %v8986_v39 = vld [vmem:[#allocation37_spill] sm:$0xff] }
  0x80   : > { %8971 = vst [vmem:[#allocation54_spill] sm:$0xff] %v6242_v53  ;;  %8973 = vst [vmem:[#allocation55_spill] sm:$0xff] %v6247_v21  ;;  %v436_v21 = vld [vmem:[#allocation3 + $0x180] sm:$0xff]  ;;  %v6266_v53 = vsub.f32 %v6032_v26, %v1491_v58  ;;  %v6271_v13 = vsub.f32 %v6034_v34, %v634_v46  ;;  %v6274_v29 = vsub.f32 %v8983_v19, %v638_v41  ;;  %4795 = vmatprep.subr.bf16.mxu1 %v6260_v16  ;;  %v445_v17 = vld [vmem:[#allocation3 + $0x1c8] sm:$0xff] }
  0x81   : > { %8975 = vst [vmem:[#allocation56_spill] sm:$0xff] %v6252_v60  ;;  %8977 = vst [vmem:[#allocation58_spill] sm:$0xff] %v6258_v18  ;;  %v442_v18 = vld [vmem:[#allocation3 + $0x1b0] sm:$0xff]  ;;  %v6277_v7 = vpack.c.bf16 %v1493_v27, %v1489_v38  ;;  %v6283_v58 = vsub.f32 %v6044_v40, %v1493_v27  ;;  %v640_v26 = vand.u32 4294901760, %v437_v14  ;;  %4605 = vmatpush1.bf16.msra.mxu0 %v6268_v8  ;;  %v644_v46 = vand.u32 4294901760, %v441_v10  ;;  %v444_v60 = vld [vmem:[#allocation3 + $0x1c0] sm:$0xff] }
  0x82   : > { %8978 = vst [vmem:[#allocation59_spill] sm:$0xff] %v6260_v16  ;;  %8979 = vst [vmem:[#allocation60_spill] sm:$0xff] %v6263_v42  ;;  %v6280_v42 = vsub.f32 %v8986_v39, %v1489_v38  ;;  %v1495_v34 = vand.u32 4294901760, %v439_v33  ;;  %v1499_v41 = vand.u32 4294901760, %v443_v12  ;;  %v642_v19 = vand.u32 4294901760, %v436_v21  ;;  %v449_v38 = vld [vmem:[#allocation3 + $0x1e8] sm:$0xff] }
  0x83   : > { %8980 = vst [vmem:[#allocation61_spill] sm:$0xff] %v6266_v53  ;;  %8981 = vst [vmem:[#allocation62_spill] sm:$0xff] %v6268_v8  ;;  %4797 = vmatpush1.bf16.msra.mxu1 %v6277_v7  ;;  %v646_v16 = vand.u32 4294901760, %v440_v54  ;;  %v1501_v53 = vand.u32 4294901760, %v442_v18  ;;  %v6289_v39 = vpack.c.bf16 %v644_v46, %v640_v26  ;;  %v6291_v27 = vsub.f32 %v441_v10, %v644_v46  ;;  %v448_v35 = vld [vmem:[#allocation3 + $0x1e0] sm:$0xff]  ;;  %v450_v59 = vld [vmem:[#allocation3 + $0x1f0] sm:$0xff] }
  0x84   : > { %8982 = vst [vmem:[#allocation63_spill] sm:$0xff] %v6271_v13  ;;  %8984 = vst [vmem:[#allocation36_spill] sm:$0xff] %v6274_v29  ;;  %v6287_v29 = vsub.f32 %v437_v14, %v640_v26  ;;  %v1497_v13 = vand.u32 4294901760, %v438_v62  ;;  %v6293_v40 = vpack.c.bf16 %v1499_v41, %v1495_v34  ;;  %v6295_v8 = vsub.f32 %v439_v33, %v1495_v34  ;;  %v446_v26 = vld [vmem:[#allocation3 + $0x1d0] sm:$0xff] }
  0x85   : > { %8985 = vst [vmem:[#allocation64_spill] sm:$0xff] %v6277_v7  ;;  %8987 = vst [vmem:[#allocation37_spill] sm:$0xff] %v6280_v42  ;;  %v451_v42 = vld [vmem:[#allocation3 + $0x1f8] sm:$0xff]  ;;  %v6297_v50 = vsub.f32 %v443_v12, %v1499_v41  ;;  %v6299_v14 = vpack.c.bf16 %v646_v16, %v642_v19  ;;  %v6301_v7 = vsub.f32 %v436_v21, %v642_v19  ;;  %4607 = vmatprep.subr.bf16.mxu0 %v6289_v39 }
  0x86   : > { %8988 = vst [vmem:[#allocation65_spill] sm:$0xff] %v6283_v58  ;;  %8989 = vst [vmem:[#allocation66_spill] sm:$0xff] %v6287_v29  ;;  %v447_v58 = vld [vmem:[#allocation3 + $0x1d8] sm:$0xff]  ;;  %v6303_v29 = vsub.f32 %v440_v54, %v646_v16  ;;  %4799 = vmatprep.subr.bf16.mxu1 %v6293_v40  ;;  %v6307_v10 = vpack.c.bf16 %v1501_v53, %v1497_v13  ;;  %v6309_v33 = vsub.f32 %v438_v62, %v1497_v13 }
  0x87   : > { %8990 = vst [vmem:[#allocation67_spill] sm:$0xff] %v6289_v39  ;;  %8991 = vst [vmem:[#allocation68_spill] sm:$0xff] %v6291_v27  ;;  %v6311_v46 = vsub.f32 %v442_v18, %v1501_v53  ;;  %v648_v12 = vand.u32 4294901760, %v445_v17  ;;  %4609 = vmatpush1.bf16.msra.mxu0 %v6299_v14  ;;  %v652_v21 = vand.u32 4294901760, %v449_v38  ;;  %v1503_v34 = vand.u32 4294901760, %v447_v58 }
  0x88   : > { %8992 = vst [vmem:[#allocation69_spill] sm:$0xff] %v6293_v40  ;;  %8993 = vst [vmem:[#allocation70_spill] sm:$0xff] %v6295_v8  ;;  %v1507_v16 = vand.u32 4294901760, %v451_v42  ;;  %v650_v54 = vand.u32 4294901760, %v444_v60  ;;  %4801 = vmatpush1.bf16.msra.mxu1 %v6307_v10  ;;  %v654_v19 = vand.u32 4294901760, %v448_v35  ;;  %v1505_v39 = vand.u32 4294901760, %v446_v26 }
  0x89   : > { %8994 = vst [vmem:[#allocation71_spill] sm:$0xff] %v6297_v50  ;;  %8995 = vst [vmem:[#allocation72_spill] sm:$0xff] %v6299_v14  ;;  %v6315_v41 = vsub.f32 %v445_v17, %v648_v12  ;;  %v1509_v40 = vand.u32 4294901760, %v450_v59  ;;  %v6319_v13 = vsub.f32 %v449_v38, %v652_v21  ;;  %v6323_v18 = vsub.f32 %v447_v58, %v1503_v34 }
  0x8a   : > { %8996 = vst [vmem:[#allocation73_spill] sm:$0xff] %v6301_v7  ;;  %8997 = vst [vmem:[#allocation74_spill] sm:$0xff] %v6303_v29  ;;  %v6317_v29 = vpack.c.bf16 %v652_v21, %v648_v12  ;;  %v6321_v53 = vpack.c.bf16 %v1507_v16, %v1503_v34  ;;  %v6325_v62 = vsub.f32 %v451_v42, %v1507_v16  ;;  %v8618_v42 = vmov 0.0  }
  0x8b   : > { %8998 = vst [vmem:[#allocation75_spill] sm:$0xff] %v6307_v10  ;;  %8999 = vst [vmem:[#allocation76_spill] sm:$0xff] %v6309_v33  ;;  %v6327_v14 = vpack.c.bf16 %v654_v19, %v650_v54  ;;  %v6331_v10 = vsub.f32 %v448_v35, %v654_v19  ;;  %v6335_v17 = vpack.c.bf16 %v1509_v40, %v1505_v39  ;;  %688 = vmatprep.mubr.f32.mxu0 %v8618_v42 }
  0x8c   : > { %9000 = vst [vmem:[#allocation77_spill] sm:$0xff] %v6311_v46  ;;  %9001 = vst [vmem:[#allocation78_spill] sm:$0xff] %v6317_v29  ;;  %v6329_v46 = vsub.f32 %v444_v60, %v650_v54  ;;  %4611 = vmatprep.subr.bf16.mxu0 %v6317_v29  ;;  %4803 = vmatprep.subr.bf16.mxu1 %v6321_v53  ;;  %v6337_v38 = vsub.f32 %v446_v26, %v1505_v39  ;;  %v8620_v60 = vand.u32 4294901760, %v6055_v25 }
  0x8d   : > { %9002 = vst [vmem:[#allocation79_spill] sm:$0xff] %v6321_v53  ;;  %9003 = vst [vmem:[#allocation80_spill] sm:$0xff] %v6323_v18  ;;  %v6339_v12 = vsub.f32 %v450_v59, %v1509_v40  ;;  %4613 = vmatpush1.bf16.msra.mxu0 %v6327_v14  ;;  %v8621_v35 = vand.u32 4294901760, %v6060_v15  ;;  %v8622_v58 = vand.u32 4294901760, %v6065_v2  ;;  %v8629_v21 = vand.u32 4294901760, %v6070_v11  ;;  %4805 = vmatpush1.bf16.msra.mxu1 %v6335_v17 }
  0x8e   : > { %9004 = vst [vmem:[#allocation81_spill] sm:$0xff] %v6325_v62  ;;  %9005 = vst [vmem:[#allocation82_spill] sm:$0xff] %v6327_v14  ;;  %1543 = vmatprep.mubr.f32.mxu1 %v8618_v42  ;;  %v8636_v59 = vand.u32 4294901760, %v6076_v32  ;;  %v8641_v39 = vand.u32 4294901760, %v6081_v20  ;;  %v8646_v40 = vand.u32 4294901760, %v6086_v3  ;;  %v8647_v26 = vand.u32 4294901760, %v6091_v61 }
  0x8f   : > { %9006 = vst [vmem:[#allocation83_spill] sm:$0xff] %v6329_v46  ;;  %9007 = vst [vmem:[#allocation84_spill] sm:$0xff] %v6331_v10  ;;  %v703_v34 = vsub.f32 %v6055_v25, %v8620_v60  ;;  %v715_v16 = vsub.f32 %v6060_v15, %v8621_v35  ;;  %v1558_v54 = vsub.f32 %v6065_v2, %v8622_v58 }
  0x90   : > { %9008 = vst [vmem:[#allocation85_spill] sm:$0xff] %v6335_v17  ;;  %9009 = vst [vmem:[#allocation86_spill] sm:$0xff] %v6337_v38  ;;  %v1570_v19 = vsub.f32 %v6070_v11, %v8629_v21  ;;  %v709_v42 = vsub.f32 %v6076_v32, %v8636_v59  ;;  %v721_v60 = vsub.f32 %v6081_v20, %v8641_v39  ;;  %v8659_v39 = vand.u32 4294901760, %v6097_v4 }
  0x91   : > { %v1564_v35 = vsub.f32 %v6086_v3, %v8646_v40  ;;  %v1576_v58 = vsub.f32 %v6091_v61, %v8647_v26  ;;  %v704_v17 = vand.u32 4294901760, %v703_v34  ;;  %v716_v14 = vand.u32 4294901760, %v715_v16 }
  0x92   : > { %v1559_v53 = vand.u32 4294901760, %v1558_v54  ;;  %v1571_v21 = vand.u32 4294901760, %v1570_v19  ;;  %v710_v29 = vand.u32 4294901760, %v709_v42  ;;  %v722_v11 = vand.u32 4294901760, %v721_v60 }
  0x93   : > { %v1565_v2 = vand.u32 4294901760, %v1564_v35  ;;  %v1577_v59 = vand.u32 4294901760, %v1576_v58  ;;  %v4614_v32 = vpack.c.bf16 %v716_v14, %v704_v17  ;;  %v8658_v20 = vand.u32 4294901760, %v6102_v5 }
  0x94   : > { %v4806_v15 = vpack.c.bf16 %v1571_v21, %v1559_v53  ;;  %v6379_v25 = vpack.c.bf16 %v722_v11, %v710_v29  ;;  %v8650_v26 = vand.u32 4294901760, %v6107_v6  ;;  %v8649_v34 = vand.u32 4294901760, %v6112_v9 }
  0x95   : > { %v6381_v40 = vpack.c.bf16 %v1577_v59, %v1565_v2  ;;  %4615 = vmatprep.subr.bf16.mxu0 %v4614_v32  ;;  %v727_v42 = vsub.f32 %v6097_v4, %v8659_v39  ;;  %v739_v14 = vsub.f32 %v6102_v5, %v8658_v20  ;;  %v8648_v53 = vand.u32 4294901760, %v6117_v22 }
  0x96   : > { %9010 = vst [vmem:[#allocation87_spill] sm:$0xff] %v6379_v25  ;;  %4807 = vmatprep.subr.bf16.mxu1 %v4806_v15  ;;  %v8651_v11 = vand.u32 4294901760, %v6122_v23  ;;  %v1582_v2 = vsub.f32 %v6107_v6, %v8650_v26  ;;  %v1594_v15 = vsub.f32 %v6112_v9, %v8649_v34  ;;  %v8652_v32 = vand.u32 4294901760, %v6127_v24 }
  0x97   : > { %9011 = vst [vmem:[#allocation88_spill] sm:$0xff] %v6381_v40  ;;  %v8653_v29 = vand.u32 4294901760, %v6132_v28  ;;  %v728_v17 = vand.u32 4294901760, %v727_v42  ;;  %v740_v60 = vand.u32 4294901760, %v739_v14  ;;  %v733_v35 = vsub.f32 %v6117_v22, %v8648_v53 }
  0x98   : > { %v745_v58 = vsub.f32 %v6122_v23, %v8651_v11  ;;  %v1583_v21 = vand.u32 4294901760, %v1582_v2  ;;  %v1595_v59 = vand.u32 4294901760, %v1594_v15  ;;  %v1588_v16 = vsub.f32 %v6127_v24, %v8652_v32 }
  0x99   : > { %v1600_v54 = vsub.f32 %v6132_v28, %v8653_v29  ;;  %v6413_v19 = vpack.c.bf16 %v740_v60, %v728_v17  ;;  %v734_v42 = vand.u32 4294901760, %v733_v35  ;;  %v8655_v53 = vand.u32 4294901760, %v6137_v30 }
  0x9a   : > { %v746_v14 = vand.u32 4294901760, %v745_v58  ;;  %v6416_v34 = vpack.c.bf16 %v1595_v59, %v1583_v21  ;;  %v1589_v26 = vand.u32 4294901760, %v1588_v16  ;;  %v8654_v2 = vand.u32 4294901760, %v6142_v31 }
  0x9b   : > { %9012 = vst [vmem:[#allocation89_spill] sm:$0xff] %v6413_v19  ;;  %v1601_v11 = vand.u32 4294901760, %v1600_v54  ;;  %v751_v32 = vsub.f32 %v6137_v30, %v8655_v53  ;;  %v8656_v29 = vand.u32 4294901760, %v6147_v36  ;;  %v8657_v17 = vand.u32 4294901760, %v6152_v37 }
  0x9c   : > { %9013 = vst [vmem:[#allocation90_spill] sm:$0xff] %v6416_v34  ;;  %v6419_v15 = vpack.c.bf16 %v746_v14, %v734_v42  ;;  %v763_v35 = vsub.f32 %v6142_v31, %v8654_v2  ;;  %v8660_v58 = vand.u32 4294901760, %v6157_v43  ;;  %v8661_v21 = vand.u32 4294901760, %v6162_v44 }
  0x9d   : > { %v6426_v60 = vpack.c.bf16 %v1601_v11, %v1589_v26  ;;  %v752_v59 = vand.u32 4294901760, %v751_v32  ;;  %v1606_v16 = vsub.f32 %v6147_v36, %v8656_v29  ;;  %v1618_v54 = vsub.f32 %v6152_v37, %v8657_v17 }
  0x9e   : > { %9014 = vst [vmem:[#allocation91_spill] sm:$0xff] %v6419_v15  ;;  %v8662_v26 = vand.u32 4294901760, %v6167_v45  ;;  %v764_v11 = vand.u32 4294901760, %v763_v35  ;;  %v757_v42 = vsub.f32 %v6157_v43, %v8660_v58  ;;  %v769_v14 = vsub.f32 %v6162_v44, %v8661_v21 }
  0x9f   : > { %9015 = vst [vmem:[#allocation92_spill] sm:$0xff] %v6426_v60  ;;  %v8665_v32 = vand.u32 4294901760, %v6172_v49  ;;  %v1607_v2 = vand.u32 4294901760, %v1606_v16  ;;  %v1619_v53 = vand.u32 4294901760, %v1618_v54  ;;  %v8664_v17 = vand.u32 4294901760, %v6177_v51 }
  0xa0   : > { %v1612_v29 = vsub.f32 %v6167_v45, %v8662_v26  ;;  %v6451_v20 = vpack.c.bf16 %v764_v11, %v752_v59  ;;  %v758_v35 = vand.u32 4294901760, %v757_v42  ;;  %v770_v39 = vand.u32 4294901760, %v769_v14 }
  0xa1   : > { %v1624_v58 = vsub.f32 %v6172_v49, %v8665_v32  ;;  %v6456_v60 = vpack.c.bf16 %v1619_v53, %v1607_v2  ;;  %v775_v16 = vsub.f32 %v6177_v51, %v8664_v17  ;;  %v8663_v54 = vand.u32 4294901760, %v6182_v52 }
  0xa2   : > { %9016 = vst [vmem:[#allocation93_spill] sm:$0xff] %v6451_v20  ;;  %v1613_v21 = vand.u32 4294901760, %v1612_v29  ;;  %v6462_v26 = vpack.c.bf16 %v770_v39, %v758_v35  ;;  %v8666_v59 = vand.u32 4294901760, %v6187_v56  ;;  %v8667_v11 = vand.u32 4294901760, %v6192_v57 }
  0xa3   : > { %9017 = vst [vmem:[#allocation94_spill] sm:$0xff] %v6456_v60  ;;  %v1625_v15 = vand.u32 4294901760, %v1624_v58  ;;  %v776_v42 = vand.u32 4294901760, %v775_v16  ;;  %v787_v53 = vsub.f32 %v6182_v52, %v8663_v54  ;;  %v8668_v29 = vand.u32 4294901760, %v6197_v63 }
  0xa4   : > { %9018 = vst [vmem:[#allocation95_spill] sm:$0xff] %v6462_v26  ;;  %v8669_v2 = vand.u32 4294901760, %v6202_v0  ;;  %v1630_v39 = vsub.f32 %v6187_v56, %v8666_v59  ;;  %v1642_v58 = vsub.f32 %v6192_v57, %v8667_v11  ;;  %v8670_v35 = vand.u32 4294901760, %v6207_v1  ;;  %v9072_v56 = vld [vmem:[#allocation80_spill] sm:$0xff] }
  0xa5   : > { %v6471_v14 = vpack.c.bf16 %v1625_v15, %v1613_v21  ;;  %v788_v16 = vand.u32 4294901760, %v787_v53  ;;  %v781_v54 = vsub.f32 %v6197_v63, %v8668_v29  ;;  %v8671_v21 = vand.u32 4294901760, %v6212_v55 }
  0xa6   : > { %v793_v15 = vsub.f32 %v6202_v0, %v8669_v2  ;;  %v1631_v17 = vand.u32 4294901760, %v1630_v39  ;;  %v1643_v32 = vand.u32 4294901760, %v1642_v58  ;;  %v1636_v59 = vsub.f32 %v6207_v1, %v8670_v35  ;;  %v4154_v0 = vld [vmem:[%s8497_s6] ss:$0 sm:$0xff] }
  0xa7   : > { %9019 = vst [vmem:[#allocation96_spill] sm:$0xff] %v6471_v14  ;;  %v8672_v11 = vand.u32 4294901760, %v6217_v48  ;;  %v6491_v14 = vpack.c.bf16 %v788_v16, %v776_v42  ;;  %v782_v53 = vand.u32 4294901760, %v781_v54  ;;  %v1648_v29 = vsub.f32 %v6212_v55, %v8671_v21  ;;  %v9023_v42 = vld [vmem:[#allocation51_spill] sm:$0xff]  ;;  %v9024_v54 = vld [vmem:[#allocation52_spill] sm:$0xff]  ;;  %v9026_v21 = vld [vmem:[#allocation54_spill] sm:$0xff] }
  0xa8   : > { %v794_v26 = vand.u32 4294901760, %v793_v15  ;;  %v6496_v60 = vpack.c.bf16 %v1643_v32, %v1631_v17  ;;  %v1637_v2 = vand.u32 4294901760, %v1636_v59  ;;  %v8673_v58 = vand.u32 4294901760, %v6222_v47  ;;  %v9025_v32 = vld [vmem:[#allocation53_spill] sm:$0xff] }
  0xa9   : > { %9020 = vst [vmem:[#allocation97_spill] sm:$0xff] %v6491_v14  ;;  %v799_v39 = vsub.f32 %v6217_v48, %v8672_v11  ;;  %v1649_v20 = vand.u32 4294901760, %v1648_v29  ;;  %v8674_v16 = vand.u32 4294901760, %v9023_v42  ;;  %v8675_v15 = vand.u32 4294901760, %v9024_v54 }
  0xaa   : > { %9021 = vst [vmem:[#allocation98_spill] sm:$0xff] %v6496_v60  ;;  %v6502_v35 = vpack.c.bf16 %v794_v26, %v782_v53  ;;  %v811_v17 = vsub.f32 %v6222_v47, %v8673_v58  ;;  %v8677_v59 = vand.u32 4294901760, %v9025_v32  ;;  %v8679_v60 = vand.u32 4294901760, %v9026_v21  ;;  %v9028_v53 = vld [vmem:[#allocation55_spill] sm:$0xff] }
  0xab   : > { %v800_v14 = vand.u32 4294901760, %v799_v39  ;;  %v6511_v34 = vpack.c.bf16 %v1649_v20, %v1637_v2  ;;  %v1654_v26 = vsub.f32 %v9023_v42, %v8674_v16  ;;  %v1666_v29 = vsub.f32 %v9024_v54, %v8675_v15  ;;  %v9029_v2 = vld [vmem:[#allocation56_spill] sm:$0xff]  ;;  %v9030_v15 = vld [vmem:[#allocation57_spill] sm:$0xff] }
  0xac   : > { %9022 = vst [vmem:[#allocation99_spill] sm:$0xff] %v6502_v35  ;;  %v8681_v39 = vand.u32 4294901760, %v9028_v53  ;;  %v812_v11 = vand.u32 4294901760, %v811_v17  ;;  %v805_v58 = vsub.f32 %v9025_v32, %v8677_v59  ;;  %v817_v20 = vsub.f32 %v9026_v21, %v8679_v60 }
  0xad   : > { %9027 = vst [vmem:[#allocation100_spill] sm:$0xff] %v6511_v34  ;;  %v8683_v34 = vand.u32 4294901760, %v9029_v2  ;;  %v1655_v35 = vand.u32 4294901760, %v1654_v26  ;;  %v1667_v19 = vand.u32 4294901760, %v1666_v29  ;;  %v8685_v40 = vand.u32 4294901760, %v9030_v15  ;;  %v9033_v29 = vld [vmem:[#allocation58_spill] sm:$0xff] }
  0xae   : > { %v1660_v16 = vsub.f32 %v9028_v53, %v8681_v39  ;;  %v6531_v25 = vpack.c.bf16 %v812_v11, %v800_v14  ;;  %v806_v17 = vand.u32 4294901760, %v805_v58  ;;  %v818_v54 = vand.u32 4294901760, %v817_v20  ;;  %v9035_v11 = vld [vmem:[#allocation60_spill] sm:$0xff]  ;;  %v9036_v58 = vld [vmem:[#allocation61_spill] sm:$0xff] }
  0xaf   : > { %v1672_v59 = vsub.f32 %v9029_v2, %v8683_v34  ;;  %v6536_v32 = vpack.c.bf16 %v1667_v19, %v1655_v35  ;;  %v823_v26 = vsub.f32 %v9030_v15, %v8685_v40  ;;  %v8686_v21 = vand.u32 4294901760, %v9033_v29  ;;  %v9037_v35 = vld [vmem:[#allocation63_spill] sm:$0xff]  ;;  %v9038_v34 = vld [vmem:[#allocation36_spill] sm:$0xff] }
  0xb0   : > { %9031 = vst [vmem:[#allocation101_spill] sm:$0xff] %v6531_v25  ;;  %v1661_v60 = vand.u32 4294901760, %v1660_v16  ;;  %v6542_v39 = vpack.c.bf16 %v818_v54, %v806_v17  ;;  %v8688_v14 = vand.u32 4294901760, %v9035_v11  ;;  %v8689_v20 = vand.u32 4294901760, %v9036_v58  ;;  %v9040_v17 = vld [vmem:[#allocation37_spill] sm:$0xff] }
  0xb1   : > { %9032 = vst [vmem:[#allocation102_spill] sm:$0xff] %v6536_v32  ;;  %v1673_v53 = vand.u32 4294901760, %v1672_v59  ;;  %v824_v25 = vand.u32 4294901760, %v823_v26  ;;  %v835_v19 = vsub.f32 %v9033_v29, %v8686_v21  ;;  %v8693_v16 = vand.u32 4294901760, %v9037_v35 }
  0xb2   : > { %9034 = vst [vmem:[#allocation103_spill] sm:$0xff] %v6542_v39  ;;  %v8695_v32 = vand.u32 4294901760, %v9038_v34  ;;  %v1678_v54 = vsub.f32 %v9035_v11, %v8688_v14  ;;  %v1690_v59 = vsub.f32 %v9036_v58, %v8689_v20  ;;  %v8696_v26 = vand.u32 4294901760, %v9040_v17  ;;  %v9042_v20 = vld [vmem:[#allocation66_spill] sm:$0xff] }
  0xb3   : > { %v6551_v2 = vpack.c.bf16 %v1673_v53, %v1661_v60  ;;  %v836_v40 = vand.u32 4294901760, %v835_v19  ;;  %v829_v21 = vsub.f32 %v9037_v35, %v8693_v16  ;;  %v9041_v53 = vld [vmem:[#allocation65_spill] sm:$0xff]  ;;  %v8700_v58 = vand.u32 4294901760, %v9042_v20 }
  0xb4   : > { %v841_v60 = vsub.f32 %v9038_v34, %v8695_v32  ;;  %v1679_v39 = vand.u32 4294901760, %v1678_v54  ;;  %v1691_v29 = vand.u32 4294901760, %v1690_v59  ;;  %v1684_v14 = vsub.f32 %v9040_v17, %v8696_v26  ;;  %v9074_v34 = vld [vmem:[#allocation83_spill] sm:$0xff] }
  0xb5   : > { %9039 = vst [vmem:[#allocation104_spill] sm:$0xff] %v6551_v2  ;;  %v8698_v2 = vand.u32 4294901760, %v9041_v53  ;;  %v6571_v11 = vpack.c.bf16 %v836_v40, %v824_v25  ;;  %v830_v19 = vand.u32 4294901760, %v829_v21  ;;  %v847_v54 = vsub.f32 %v9042_v20, %v8700_v58 }
  0xb6   : > { %v842_v15 = vand.u32 4294901760, %v841_v60  ;;  %v6576_v35 = vpack.c.bf16 %v1691_v29, %v1679_v39  ;;  %v1685_v32 = vand.u32 4294901760, %v1684_v14  ;;  %v8699_v59 = vand.u32 4294901760, %v6291_v27  ;;  %v9046_v14 = vld [vmem:[#allocation74_spill] sm:$0xff] }
  0xb7   : > { %9043 = vst [vmem:[#allocation105_spill] sm:$0xff] %v6571_v11  ;;  %v1696_v16 = vsub.f32 %v9041_v53, %v8698_v2  ;;  %v8701_v25 = vand.u32 4294901760, %v6295_v8  ;;  %v8702_v40 = vand.u32 4294901760, %v6297_v50  ;;  %v848_v21 = vand.u32 4294901760, %v847_v54  ;;  %v9076_v53 = vld [vmem:[#allocation86_spill] sm:$0xff] }
  0xb8   : > { %9044 = vst [vmem:[#allocation106_spill] sm:$0xff] %v6576_v35  ;;  %v6582_v26 = vpack.c.bf16 %v842_v15, %v830_v19  ;;  %v859_v39 = vsub.f32 %v6291_v27, %v8699_v59  ;;  %v8703_v29 = vand.u32 4294901760, %v6301_v7  ;;  %v8706_v60 = vand.u32 4294901760, %v9046_v14 }
  0xb9   : > { %v1697_v17 = vand.u32 4294901760, %v1696_v16  ;;  %v1702_v15 = vsub.f32 %v6295_v8, %v8701_v25  ;;  %v1714_v16 = vsub.f32 %v6297_v50, %v8702_v40  ;;  %v8707_v19 = vand.u32 4294901760, %v6309_v33 }
  0xba   : > { %9045 = vst [vmem:[#allocation107_spill] sm:$0xff] %v6582_v26  ;;  %v860_v54 = vand.u32 4294901760, %v859_v39  ;;  %v853_v59 = vsub.f32 %v6301_v7, %v8703_v29  ;;  %v8711_v40 = vand.u32 4294901760, %v6315_v41 }
  0xbb   : > { %v6591_v2 = vpack.c.bf16 %v1697_v17, %v1685_v32  ;;  %v865_v32 = vsub.f32 %v9046_v14, %v8706_v60  ;;  %v9048_v17 = vld [vmem:[#allocation77_spill] sm:$0xff]  ;;  %v1715_v26 = vand.u32 4294901760, %v1714_v16  ;;  %v1708_v25 = vsub.f32 %v6309_v33, %v8707_v19 }
  0xbc   : > { %v8712_v58 = vand.u32 4294901760, %v9048_v17  ;;  %v6611_v35 = vpack.c.bf16 %v860_v54, %v848_v21  ;;  %v854_v39 = vand.u32 4294901760, %v853_v59  ;;  %v8710_v16 = vand.u32 4294901760, %v6319_v13 }
  0xbd   : > { %9047 = vst [vmem:[#allocation74_spill] sm:$0xff] %v6591_v2  ;;  %v1703_v2 = vand.u32 4294901760, %v1702_v15  ;;  %v866_v11 = vand.u32 4294901760, %v865_v32  ;;  %v1709_v60 = vand.u32 4294901760, %v1708_v25  ;;  %v871_v15 = vsub.f32 %v6315_v41, %v8711_v40 }
  0xbe   : > { %9049 = vst [vmem:[#allocation77_spill] sm:$0xff] %v6611_v35  ;;  %v1720_v29 = vsub.f32 %v9048_v17, %v8712_v58  ;;  %v8713_v21 = vand.u32 4294901760, %v6323_v18  ;;  %v8714_v59 = vand.u32 4294901760, %v6325_v62  ;;  %v8716_v25 = vand.u32 4294901760, %v6331_v10 }
  0xbf   : > { %v6616_v7 = vpack.c.bf16 %v1715_v26, %v1703_v2  ;;  %v6622_v19 = vpack.c.bf16 %v866_v11, %v854_v39  ;;  %v872_v54 = vand.u32 4294901760, %v871_v15  ;;  %v883_v2 = vsub.f32 %v6319_v13, %v8710_v16 }
  0xc0   : > { %v1721_v33 = vand.u32 4294901760, %v1720_v29  ;;  %v8715_v26 = vand.u32 4294901760, %v6329_v46  ;;  %v1726_v11 = vsub.f32 %v6323_v18, %v8713_v21  ;;  %v1738_v29 = vsub.f32 %v6325_v62, %v8714_v59  ;;  %v9053_v59 = vld [vmem:[#allocation39_spill] sm:$0xff]  ;;  %v9058_v18 = vld [vmem:[#allocation44_spill] sm:$0xff] }
  0xc1   : > { %9050 = vst [vmem:[#allocation108_spill] sm:$0xff] %v6616_v7  ;;  %9051 = vst [vmem:[#allocation109_spill] sm:$0xff] %v6622_v19  ;;  %v8725_v39 = vand.u32 4294901760, %v6337_v38  ;;  %v884_v15 = vand.u32 4294901760, %v883_v2  ;;  %v9057_v62 = vld [vmem:[#allocation43_spill] sm:$0xff] }
  0xc2   : > { %v6631_v32 = vpack.c.bf16 %v1721_v33, %v1709_v60  ;;  %v877_v16 = vsub.f32 %v6329_v46, %v8715_v26  ;;  %v889_v33 = vsub.f32 %v6331_v10, %v8716_v25  ;;  %v8728_v60 = vand.u32 4294901760, %v6339_v12  ;;  %v9077_v46 = vld [vmem:[#allocation15_spill] sm:$0xff] }
  0xc3   : > { %v1727_v40 = vand.u32 4294901760, %v1726_v11  ;;  %v1739_v58 = vand.u32 4294901760, %v1738_v29  ;;  %v1732_v21 = vsub.f32 %v6337_v38, %v8725_v39  ;;  %v6652_v2 = vpack.c.bf16 %v884_v15, %v872_v54  ;;  %v9055_v11 = vld [vmem:[#allocation41_spill] sm:$0xff]  ;;  %v9056_v29 = vld [vmem:[#allocation42_spill] sm:$0xff]  ;;  %v9059_v15 = vld [vmem:[#allocation52_spill] sm:$0xff] }
  0xc4   : > { %9052 = vst [vmem:[#allocation110_spill] sm:$0xff] %v6631_v32  ;;  %v9054_v32 = vld [vmem:[#allocation40_spill] sm:$0xff]  ;;  %v878_v7 = vand.u32 4294901760, %v877_v16  ;;  %v890_v35 = vand.u32 4294901760, %v889_v33  ;;  %v1744_v26 = vsub.f32 %v6339_v12, %v8728_v60  ;;  %v9061_v33 = vld [vmem:[#allocation54_spill] sm:$0xff] }
  0xc5   : > { %v6657_v25 = vpack.c.bf16 %v1739_v58, %v1727_v40  ;;  %v1733_v10 = vand.u32 4294901760, %v1732_v21  ;;  %v9070_v58 = vld [vmem:[#allocation73_spill] sm:$0xff]  ;;  %v9071_v16 = vld [vmem:[#allocation76_spill] sm:$0xff] }
  0xc6   : > { %v6663_v38 = vpack.c.bf16 %v890_v35, %v878_v7  ;;  %v1745_v19 = vand.u32 4294901760, %v1744_v26  ;;  %v4155_v26 = vld [vmem:[%s8498_s7] ss:$0 sm:$0xff] }
  0xc8   : > { %v6677_v35 = vpack.c.bf16 %v1745_v19, %v1733_v10  ;;  %v9073_v10 = vld [vmem:[#allocation81_spill] sm:$0xff]  ;;  %v9075_v19 = vld [vmem:[#allocation84_spill] sm:$0xff] }
  0xeb   : > { %v576_v20 = vpop.xlane.xlu0 %575 }
  0xec   : > { %v578_v54 = vmul.f32 0.0078125, %v576_v20 }
  0xee   : > { %v583_v50 = vmul.f32 %v578_v54, %v578_v54  ;;  %v586_v63 = vsub.f32 %v9077_v46, %v578_v54  ;;  %v9087_v54 = vand.u32 4294901760, %v6319_v13 }
  0xef   : > { %v581_v8 = vpop.xlane.xlu0 %580 }
  0xf0   : > { %v582_v39 = vmul.f32 0.0078125, %v581_v8  ;;  %v9080_v8 = vand.u32 4294901760, %v9070_v58 }
  0xf2   : > { %v584_v27 = vsub.f32 %v582_v39, %v583_v50  ;;  %v9083_v39 = vand.u32 4294901760, %v9071_v16 }
  0xf4   : > { %v585_v7 = vmax.f32 %v584_v27, 0.0  ;;  %v9081_v27 = vand.u32 4294901760, %v9046_v14 }
  0xf6   : > { %v587_v60 = vadd.f32 1e-05, %v585_v7  ;;  %v6741_v46 = vpack.c.bf16 %v9081_v27, %v9080_v8  ;;  %v9092_v27 = vand.u32 4294901760, %v9074_v34 }
  0xf8   : > { %5439 = vrsqrt.f32 %v587_v60  ;;  %9082 = vst [vmem:[#allocation41_spill] sm:$0xff] %v6741_v46  ;;  %v9113_v46 = vld [vmem:[#allocation101_spill] sm:$0xff] }
 0x102   : > { %v5440_v21 = vpop.eup %5439 }
 0x103   : > { %v589_v1 = vmul.f32 %v5440_v21, %v586_v63  ;;  %v9084_v63 = vand.u32 4294901760, %v9048_v17 }
 0x105   : > { %v590_v20 = vmul.f32 %v4154_v0, %v589_v1  ;;  %v6747_v60 = vpack.c.bf16 %v9084_v63, %v9083_v39  ;;  %v9086_v1 = vand.u32 4294901760, %v6315_v41  ;;  %v9093_v39 = vand.u32 4294901760, %v9075_v19 }
 0x107   : > { %v6732_v40 = vadd.f32 %v4155_v26, %v590_v20  ;;  %9085 = vst [vmem:[#allocation42_spill] sm:$0xff] %v6747_v60  ;;  %v6757_v21 = vpack.c.bf16 %v9087_v54, %v9086_v1  ;;  %v9089_v26 = vand.u32 4294901760, %v9072_v56  ;;  %v9090_v20 = vand.u32 4294901760, %v9073_v10 }
 0x108   : > { %v6772_v63 = vpack.c.bf16 %v9093_v39, %v9092_v27  ;;  %v9096_v1 = vand.u32 4294901760, %v6339_v12  ;;  %v9101_v27 = vld [vmem:[#allocation90_spill] sm:$0xff]  ;;  %v9102_v39 = vmov 0.0  }
 0x109   : > { %9078 = vst [vmem:[#allocation39_spill] sm:$0xff] %v6732_v40  ;;  %v6735_v50 = vand.u32 4294901760, %v6732_v40  ;;  %9088 = vst [vmem:[#allocation43_spill] sm:$0xff] %v6757_v21  ;;  %v6766_v8 = vpack.c.bf16 %v9090_v20, %v9089_v26  ;;  %v9098_v26 = vld [vmem:[#allocation87_spill] sm:$0xff]  ;;  %v9099_v20 = vld [vmem:[#allocation88_spill] sm:$0xff] }
 0x10a   : > { %9094 = vst [vmem:[#allocation73_spill] sm:$0xff] %v6772_v63  ;;  %v9112_v63 = vld [vmem:[#allocation100_spill] sm:$0xff] }
 0x10b   : > { %9079 = vst [vmem:[#allocation40_spill] sm:$0xff] %v6735_v50  ;;  %v6751_v0 = vsub.f32 %v6732_v40, %v6735_v50  ;;  %9091 = vst [vmem:[#allocation44_spill] sm:$0xff] %v6766_v8  ;;  %v9095_v40 = vand.u32 4294901760, %v9076_v53  ;;  %v9100_v8 = vld [vmem:[#allocation89_spill] sm:$0xff] }
 0x10d   : > { %v6760_v7 = vand.u32 4294901760, %v6751_v0  ;;  %v6778_v54 = vpack.c.bf16 %v9096_v1, %v9095_v40  ;;  %v9103_v40 = vld [vmem:[#allocation91_spill] sm:$0xff]  ;;  %v9104_v1 = vld [vmem:[#allocation92_spill] sm:$0xff] }
 0x10f   : > { %9097 = vst [vmem:[#allocation76_spill] sm:$0xff] %v6778_v54  ;;  %v692_v21 = vsub.f32 %v6751_v0, %v6760_v7  ;;  %v9105_v54 = vld [vmem:[#allocation93_spill] sm:$0xff] }
 0x111   : > { %v693_v60 = vand.u32 4294901760, %v692_v21  ;;  %v9106_v21 = vld [vmem:[#allocation94_spill] sm:$0xff] }
 0x113   : > { %694 = vmatmul.mubr.f32.vlgmr.msra.gmra.mrb[0].mxu0 %v693_v60  ;;  %1549 = vmatmul.mubr.f32.vlgmr.msra.gmra.mrb[0].mxu1 %v693_v60  ;;  %v9107_v60 = vld [vmem:[#allocation95_spill] sm:$0xff] }
 0x114   : > { %4617 = vmatpush1.bf16.msra.mxu0 %v9098_v26  ;;  %4809 = vmatpush1.bf16.msra.mxu1 %v9099_v20  ;;  %v9108_v26 = vld [vmem:[#allocation96_spill] sm:$0xff]  ;;  %v9109_v20 = vld [vmem:[#allocation97_spill] sm:$0xff] }
 0x115   : > { %4619 = vmatprep.subr.bf16.mxu0 %v9100_v8  ;;  %4811 = vmatprep.subr.bf16.mxu1 %v9101_v27  ;;  %v9110_v8 = vld [vmem:[#allocation98_spill] sm:$0xff]  ;;  %v9111_v27 = vld [vmem:[#allocation99_spill] sm:$0xff] }
 0x116   : > { %924 = vmatprep.mubr.f32.mxu0 %v9102_v39  ;;  %1779 = vmatprep.mubr.f32.mxu1 %v9102_v39 }
 0x118   : > { %4621 = vmatpush1.bf16.msra.mxu0 %v9103_v40  ;;  %4813 = vmatpush1.bf16.msra.mxu1 %v9104_v1  ;;  %v9114_v40 = vld [vmem:[#allocation102_spill] sm:$0xff]  ;;  %v9115_v1 = vld [vmem:[#allocation103_spill] sm:$0xff] }
 0x119   : > { %4623 = vmatprep.subr.bf16.mxu0 %v9105_v54  ;;  %4815 = vmatprep.subr.bf16.mxu1 %v9106_v21  ;;  %v9116_v54 = vld [vmem:[#allocation104_spill] sm:$0xff]  ;;  %v9117_v21 = vld [vmem:[#allocation105_spill] sm:$0xff] }
 0x11c   : > { %4625 = vmatpush1.bf16.msra.mxu0 %v9107_v60  ;;  %4817 = vmatpush1.bf16.msra.mxu1 %v9108_v26  ;;  %v9118_v60 = vld [vmem:[#allocation106_spill] sm:$0xff]  ;;  %v9119_v26 = vld [vmem:[#allocation107_spill] sm:$0xff] }
 0x11d   : > { %4627 = vmatprep.subr.bf16.mxu0 %v9109_v20  ;;  %4819 = vmatprep.subr.bf16.mxu1 %v9110_v8  ;;  %v9120_v20 = vld [vmem:[#allocation74_spill] sm:$0xff]  ;;  %v9121_v8 = vld [vmem:[#allocation77_spill] sm:$0xff] }
 0x120   : > { %4629 = vmatpush1.bf16.msra.mxu0 %v9111_v27  ;;  %4821 = vmatpush1.bf16.msra.mxu1 %v9112_v63  ;;  %v9122_v27 = vld [vmem:[#allocation108_spill] sm:$0xff]  ;;  %v9123_v63 = vld [vmem:[#allocation109_spill] sm:$0xff] }
 0x121   : > { %4631 = vmatprep.subr.bf16.mxu0 %v9113_v46  ;;  %4823 = vmatprep.subr.bf16.mxu1 %v9114_v40  ;;  %v9124_v46 = vld [vmem:[#allocation110_spill] sm:$0xff]  ;;  %v9125_v40 = vpack.c.bf16 %v9054_v32, %v9053_v59 }
 0x124   : > { %4633 = vmatpush1.bf16.msra.mxu0 %v9115_v1  ;;  %4825 = vmatpush1.bf16.msra.mxu1 %v9116_v54  ;;  %v9126_v1 = vpack.c.bf16 %v9056_v29, %v9055_v11  ;;  %v9131_v54 = vpack.c.bf16 %v6122_v23, %v6117_v22 }
 0x125   : > { %4635 = vmatprep.subr.bf16.mxu0 %v9117_v21  ;;  %4827 = vmatprep.subr.bf16.mxu1 %v9118_v60  ;;  %v9132_v21 = vpack.c.bf16 %v6132_v28, %v6127_v24  ;;  %v9133_v60 = vpack.c.bf16 %v6142_v31, %v6137_v30 }
 0x128   : > { %4637 = vmatpush1.bf16.msra.mxu0 %v9119_v26  ;;  %4829 = vmatpush1.bf16.msra.mxu1 %v9120_v20  ;;  %v9134_v26 = vpack.c.bf16 %v6152_v37, %v6147_v36  ;;  %v9135_v20 = vpack.c.bf16 %v6162_v44, %v6157_v43 }
 0x129   : > { %4639 = vmatprep.subr.bf16.mxu0 %v9121_v8  ;;  %4831 = vmatprep.subr.bf16.mxu1 %v9122_v27  ;;  %v9136_v8 = vpack.c.bf16 %v6172_v49, %v6167_v45  ;;  %v9137_v27 = vpack.c.bf16 %v6182_v52, %v6177_v51 }
 0x12c   : > { %4641 = vmatpush1.bf16.msra.mxu0 %v9123_v63  ;;  %4833 = vmatpush1.bf16.msra.mxu1 %v9124_v46  ;;  %v9138_v63 = vld [vmem:[#allocation45_spill] sm:$0xff] }
 0x12d   : > { %4643 = vmatprep.subr.bf16.mxu0 %v6652_v2  ;;  %4835 = vmatprep.subr.bf16.mxu1 %v6657_v25  ;;  %v9127_v2 = vpack.c.bf16 %v9058_v18, %v9057_v62  ;;  %v9129_v25 = vpack.c.bf16 %v6102_v5, %v6097_v4  ;;  %v9139_v46 = vpack.c.bf16 %v6192_v57, %v9138_v63 }
 0x130   : > { %4645 = vmatpush1.bf16.msra.mxu0 %v6663_v38  ;;  %4837 = vmatpush1.bf16.msra.mxu1 %v6677_v35  ;;  %v9128_v38 = vpack.c.bf16 %v6091_v61, %v6086_v3  ;;  %v9130_v35 = vpack.c.bf16 %v6112_v9, %v6107_v6 }
 0x131   : > { %4647 = vmatprep.subr.bf16.mxu0 %v9125_v40  ;;  %4839 = vmatprep.subr.bf16.mxu1 %v9126_v1  ;;  %v9140_v40 = vld [vmem:[#allocation47_spill] sm:$0xff]  ;;  %v9141_v1 = vld [vmem:[#allocation46_spill] sm:$0xff] }
 0x133   : > { %926 = vmatmul.mubr.f32.vlgmr.msra.gmra.mrb[0].mxu0 %v6735_v50  ;;  %1781 = vmatmul.mubr.f32.vlgmr.msra.gmra.mrb[0].mxu1 %v6735_v50  ;;  %v9156_v50 = vld [vmem:[#allocation60_spill] sm:$0xff] }
 0x134   : > { %4649 = vmatpush1.bf16.msra.mxu0 %v9127_v2  ;;  %4841 = vmatpush1.bf16.msra.mxu1 %v9128_v38  ;;  %v9142_v2 = vpack.c.bf16 %v9140_v40, %v9141_v1  ;;  %v9143_v38 = vld [vmem:[#allocation48_spill] sm:$0xff] }
 0x135   : > { %4651 = vmatprep.subr.bf16.mxu0 %v9129_v25  ;;  %4843 = vmatprep.subr.bf16.mxu1 %v9130_v35  ;;  %v9144_v25 = vpack.c.bf16 %v6212_v55, %v9143_v38  ;;  %v9145_v35 = vpack.c.bf16 %v6222_v47, %v6217_v48  ;;  %v9159_v48 = vld [vmem:[#allocation63_spill] sm:$0xff] }
 0x136   : > { %1060 = vmatprep.mubr.f32.mxu0 %v9102_v39  ;;  %1915 = vmatprep.mubr.f32.mxu1 %v9102_v39 }
 0x138   : > { %4653 = vmatpush1.bf16.msra.mxu0 %v9131_v54  ;;  %4845 = vmatpush1.bf16.msra.mxu1 %v9132_v21  ;;  %v9146_v54 = vpack.c.bf16 %v9059_v15, %v9023_v42  ;;  %v9147_v21 = vld [vmem:[#allocation53_spill] sm:$0xff] }
 0x139   : > { %4655 = vmatprep.subr.bf16.mxu0 %v9133_v60  ;;  %4847 = vmatprep.subr.bf16.mxu1 %v9134_v26  ;;  %v9148_v60 = vpack.c.bf16 %v9061_v33, %v9147_v21  ;;  %v9149_v26 = vld [vmem:[#allocation56_spill] sm:$0xff]  ;;  %v9162_v42 = vld [vmem:[#allocation37_spill] sm:$0xff]  ;;  %v9165_v21 = vld [vmem:[#allocation66_spill] sm:$0xff] }
 0x13c   : > { %4657 = vmatpush1.bf16.msra.mxu0 %v9135_v20  ;;  %4849 = vmatpush1.bf16.msra.mxu1 %v9136_v8  ;;  %v9150_v20 = vld [vmem:[#allocation55_spill] sm:$0xff] }
 0x13d   : > { %4659 = vmatprep.subr.bf16.mxu0 %v9137_v27  ;;  %4851 = vmatprep.subr.bf16.mxu1 %v9139_v46  ;;  %v9151_v8 = vpack.c.bf16 %v9149_v26, %v9150_v20  ;;  %v9152_v27 = vld [vmem:[#allocation58_spill] sm:$0xff]  ;;  %v9153_v46 = vld [vmem:[#allocation57_spill] sm:$0xff] }
 0x13e   : > { %v9168_v20 = vld [vmem:[#allocation70_spill] sm:$0xff] }
 0x140   : > { %4661 = vmatpush1.bf16.msra.mxu0 %v9142_v2  ;;  %4853 = vmatpush1.bf16.msra.mxu1 %v9144_v25  ;;  %v9154_v2 = vpack.c.bf16 %v9152_v27, %v9153_v46  ;;  %v9155_v25 = vld [vmem:[#allocation61_spill] sm:$0xff] }
 0x141   : > { %4663 = vmatprep.subr.bf16.mxu0 %v9145_v35  ;;  %4855 = vmatprep.subr.bf16.mxu1 %v9146_v54  ;;  %v9157_v47 = vpack.c.bf16 %v9155_v25, %v9156_v50  ;;  %v9158_v35 = vld [vmem:[#allocation36_spill] sm:$0xff]  ;;  %v9161_v54 = vld [vmem:[#allocation65_spill] sm:$0xff] }
 0x142   : > { %v9160_v15 = vpack.c.bf16 %v9158_v35, %v9159_v48  ;;  %v9163_v33 = vpack.c.bf16 %v9161_v54, %v9162_v42 }
 0x144   : > { %4665 = vmatpush1.bf16.msra.mxu0 %v9148_v60  ;;  %4857 = vmatpush1.bf16.msra.mxu1 %v9151_v8  ;;  %v9164_v60 = vld [vmem:[#allocation68_spill] sm:$0xff]  ;;  %v9167_v8 = vld [vmem:[#allocation71_spill] sm:$0xff] }
 0x145   : > { %4667 = vmatprep.subr.bf16.mxu0 %v9154_v2  ;;  %4859 = vmatprep.subr.bf16.mxu1 %v9157_v47  ;;  %v9166_v26 = vpack.c.bf16 %v9164_v60, %v9165_v21  ;;  %v9169_v27 = vpack.c.bf16 %v9167_v8, %v9168_v20  ;;  %v9170_v2 = vpack.c.bf16 %v9046_v14, %v9070_v58  ;;  %v9176_v58 = vld [vmem:[#allocation16_spill] sm:$0xff] }
 0x146   : > { %v9171_v47 = vpack.c.bf16 %v9048_v17, %v9071_v16  ;;  %v9175_v14 = vpack.c.bf16 %v6339_v12, %v9076_v53  ;;  %v9177_v17 = vld [vmem:[#allocation17_spill] sm:$0xff]  ;;  %v9182_v12 = vld [vmem:[#allocation22_spill] sm:$0xff]  ;;  %v9183_v53 = vld [vmem:[#allocation23_spill] sm:$0xff] }
 0x147   : > { %v9184_v16 = vld [vmem:[#allocation24_spill] sm:$0xff] }
 0x148   : > { %4669 = vmatpush1.bf16.msra.mxu0 %v9160_v15  ;;  %4861 = vmatpush1.bf16.msra.mxu1 %v9163_v33  ;;  %v9172_v15 = vpack.c.bf16 %v6319_v13, %v6315_v41  ;;  %v9173_v33 = vpack.c.bf16 %v9073_v10, %v9072_v56  ;;  %v9178_v41 = vld [vmem:[#allocation18_spill] sm:$0xff]  ;;  %v9179_v56 = vld [vmem:[#allocation19_spill] sm:$0xff]  ;;  %v9180_v13 = vld [vmem:[#allocation20_spill] sm:$0xff] }
 0x149   : > { %4671 = vmatprep.subr.bf16.mxu0 %v9166_v26  ;;  %4863 = vmatprep.subr.bf16.mxu1 %v9169_v27  ;;  %v9174_v26 = vpack.c.bf16 %v9075_v19, %v9074_v34  ;;  %v9181_v34 = vld [vmem:[#allocation21_spill] sm:$0xff]  ;;  %v9186_v19 = vld [vmem:[#allocation26_spill] sm:$0xff]  ;;  %v9188_v27 = vld [vmem:[#allocation28_spill] sm:$0xff] }
 0x14a   : > { %v9185_v10 = vld [vmem:[#allocation25_spill] sm:$0xff] }
 0x14c   : > { %4673 = vmatpush1.bf16.msra.mxu0 %v9170_v2  ;;  %4865 = vmatpush1.bf16.msra.mxu1 %v9171_v47  ;;  %v9189_v2 = vld [vmem:[#allocation29_spill] sm:$0xff]  ;;  %v9190_v47 = vld [vmem:[#allocation30_spill] sm:$0xff] }
 0x14d   : > { %4675 = vmatprep.subr.bf16.mxu0 %v9172_v15  ;;  %4867 = vmatprep.subr.bf16.mxu1 %v9173_v33  ;;  %v9191_v15 = vld [vmem:[#allocation31_spill] sm:$0xff]  ;;  %v9192_v33 = vld [vmem:[#allocation32_spill] sm:$0xff] }
 0x150   : > { %4677 = vmatpush1.bf16.msra.mxu0 %v9174_v26  ;;  %4869 = vmatpush1.bf16.msra.mxu1 %v9175_v14  ;;  %v9193_v26 = vld [vmem:[#allocation33_spill] sm:$0xff]  ;;  %v9194_v14 = vld [vmem:[#allocation34_spill] sm:$0xff] }
 0x151   : > { %4679 = vmatprep.subr.bf16.mxu0 %v9176_v58  ;;  %4871 = vmatprep.subr.bf16.mxu1 %v9177_v17 }
 0x153   : > { %1063 = vmatmul.mubr.f32.vlgmr.msra.gmra.mrb[0].mxu0 %v6751_v0  ;;  %1918 = vmatmul.mubr.f32.vlgmr.msra.gmra.mrb[0].mxu1 %v6751_v0  ;;  %v9187_v0 = vld [vmem:[#allocation27_spill] sm:$0xff] }
 0x154   : > { %4681 = vmatpush1.bf16.msra.mxu0 %v9178_v41  ;;  %4873 = vmatpush1.bf16.msra.mxu1 %v9179_v56 }
 0x155   : > { %4683 = vmatprep.subr.bf16.mxu0 %v9180_v13  ;;  %4875 = vmatprep.subr.bf16.mxu1 %v9181_v34 }
 0x156   : > { %1165 = vmatprep.mubr.f32.mxu0 %v9102_v39  ;;  %2020 = vmatprep.mubr.f32.mxu1 %v9102_v39 }
 0x158   : > { %4685 = vmatpush1.bf16.msra.mxu0 %v9182_v12  ;;  %4877 = vmatpush1.bf16.msra.mxu1 %v9183_v53  ;;  %v9210_v53 = vld [vmem:[#allocation82_spill] sm:$0xff] }
 0x159   : > { %4687 = vmatprep.subr.bf16.mxu0 %v9184_v16  ;;  %4879 = vmatprep.subr.bf16.mxu1 %v9185_v10  ;;  %v9195_v16 = vld [vmem:[#allocation35_spill] sm:$0xff]  ;;  %v9196_v10 = vld [vmem:[#allocation38_spill] sm:$0xff] }
 0x15c   : > { %4689 = vmatpush1.bf16.msra.mxu0 %v9186_v19  ;;  %4881 = vmatpush1.bf16.msra.mxu1 %v9187_v0  ;;  %v9197_v19 = vld [vmem:[#allocation59_spill] sm:$0xff]  ;;  %v9198_v0 = vld [vmem:[#allocation62_spill] sm:$0xff] }
 0x15d   : > { %4691 = vmatprep.subr.bf16.mxu0 %v9188_v27  ;;  %4883 = vmatprep.subr.bf16.mxu1 %v9189_v2  ;;  %v9199_v27 = vld [vmem:[#allocation64_spill] sm:$0xff]  ;;  %v9200_v2 = vld [vmem:[#allocation67_spill] sm:$0xff] }
 0x160   : > { %4693 = vmatpush1.bf16.msra.mxu0 %v9190_v47  ;;  %4885 = vmatpush1.bf16.msra.mxu1 %v9191_v15  ;;  %v9201_v47 = vld [vmem:[#allocation69_spill] sm:$0xff]  ;;  %v9202_v15 = vld [vmem:[#allocation72_spill] sm:$0xff] }
 0x161   : > { %4695 = vmatprep.subr.bf16.mxu0 %v9192_v33  ;;  %4887 = vmatprep.subr.bf16.mxu1 %v9193_v26  ;;  %v9203_v33 = vld [vmem:[#allocation75_spill] sm:$0xff]  ;;  %v9204_v26 = vld [vmem:[#allocation78_spill] sm:$0xff] }
 0x164   : > { %4697 = vmatpush1.bf16.msra.mxu0 %v9194_v14  ;;  %4889 = vmatpush1.bf16.msra.mxu1 %v9195_v16  ;;  %v9205_v14 = vld [vmem:[#allocation79_spill] sm:$0xff] }
 0x165   : > { %4699 = vmatprep.subr.bf16.mxu0 %v9196_v10  ;;  %4891 = vmatprep.subr.bf16.mxu1 %v9197_v19  ;;  %v9206_v10 = vand.u32 4294901760, %v9053_v59  ;;  %v9207_v19 = vand.u32 4294901760, %v9054_v32  ;;  %v9215_v59 = vand.u32 4294901760, %v6091_v61  ;;  %v9221_v61 = vand.u32 4294901760, %v6122_v23 }
 0x166   : > { %v9228_v23 = vand.u32 4294901760, %v6157_v43 }
 0x167   : > { %v4710_v16 = vpack.c.bf16 %v9207_v19, %v9206_v10  ;;  %v9218_v19 = vand.u32 4294901760, %v6107_v6  ;;  %v9224_v6 = vand.u32 4294901760, %v6137_v30  ;;  %v9230_v30 = vand.u32 4294901760, %v6167_v45 }
 0x168   : > { %4701 = vmatpush1.bf16.msra.mxu0 %v9198_v0  ;;  %4893 = vmatpush1.bf16.msra.mxu1 %v9199_v27  ;;  %v9208_v0 = vand.u32 4294901760, %v9055_v11  ;;  %v9209_v27 = vand.u32 4294901760, %v9056_v29  ;;  %v9216_v11 = vand.u32 4294901760, %v6097_v4  ;;  %v9217_v29 = vand.u32 4294901760, %v6102_v5 }
 0x169   : > { %4703 = vmatprep.subr.bf16.mxu0 %v9200_v2  ;;  %4895 = vmatprep.subr.bf16.mxu1 %v9201_v47  ;;  %v9211_v47 = vld [vmem:[#allocation85_spill] sm:$0xff]  ;;  %v9222_v4 = vand.u32 4294901760, %v6127_v24  ;;  %v9223_v5 = vand.u32 4294901760, %v6132_v28  ;;  %v9229_v24 = vand.u32 4294901760, %v6162_v44  ;;  %v9236_v44 = vand.u32 4294901760, %v9141_v1 }
 0x16a   : > { %v4902_v2 = vpack.c.bf16 %v9209_v27, %v9208_v0  ;;  %v4714_v10 = vpack.c.bf16 %v9217_v29, %v9216_v11  ;;  %v9219_v0 = vand.u32 4294901760, %v6112_v9  ;;  %v9225_v9 = vand.u32 4294901760, %v6142_v31 }
 0x16b   : > { %v4720_v28 = vpack.c.bf16 %v9229_v24, %v9228_v23  ;;  %v9231_v31 = vand.u32 4294901760, %v6172_v49  ;;  %v9237_v45 = vand.u32 4294901760, %v9140_v40  ;;  %v9248_v40 = vld [vmem:[#allocation53_spill] sm:$0xff]  ;;  %v9260_v23 = vand.u32 4294901760, %v9155_v25 }
 0x16c   : > { %4705 = vmatpush1.bf16.msra.mxu0 %v9202_v15  ;;  %4897 = vmatpush1.bf16.msra.mxu1 %v9203_v33  ;;  %v9212_v33 = vand.u32 4294901760, %v9057_v62  ;;  %v4906_v62 = vpack.c.bf16 %v9219_v0, %v9218_v19  ;;  %v4718_v27 = vpack.c.bf16 %v9225_v9, %v9224_v6  ;;  %v9246_v0 = vld [vmem:[#allocation52_spill] sm:$0xff]  ;;  %v9256_v9 = vand.u32 4294901760, %v9153_v46 }
 0x16d   : > { %4707 = vmatprep.subr.bf16.mxu0 %v9204_v26  ;;  %4899 = vmatprep.subr.bf16.mxu1 %v9205_v14  ;;  %v9213_v26 = vand.u32 4294901760, %v9058_v18  ;;  %v9214_v14 = vand.u32 4294901760, %v6086_v3  ;;  %v9220_v3 = vand.u32 4294901760, %v6117_v22  ;;  %v4724_v49 = vpack.c.bf16 %v9237_v45, %v9236_v44 }
 0x16f   : > { %v4712_v15 = vpack.c.bf16 %v9213_v26, %v9212_v33  ;;  %v4904_v32 = vpack.c.bf16 %v9215_v59, %v9214_v14  ;;  %v4716_v18 = vpack.c.bf16 %v9221_v61, %v9220_v3  ;;  %v9234_v26 = vand.u32 4294901760, %v9138_v63  ;;  %v9242_v63 = vld [vmem:[#allocation50_spill] sm:$0xff] }
 0x170   : > { %4709 = vmatpush1.bf16.msra.mxu0 %v9210_v53  ;;  %4901 = vmatpush1.bf16.msra.mxu1 %v9211_v47  ;;  %v9235_v14 = vand.u32 4294901760, %v6192_v57  ;;  %v9238_v59 = vand.u32 4294901760, %v9143_v38  ;;  %v9243_v29 = vand.u32 4294901760, %v9242_v63  ;;  %v9249_v3 = vand.u32 4294901760, %v9248_v40  ;;  %v9250_v38 = vld [vmem:[#allocation54_spill] sm:$0xff] }
 0x171   : > { %4711 = vmatprep.subr.bf16.mxu0 %v4710_v16  ;;  %4903 = vmatprep.subr.bf16.mxu1 %v4902_v2  ;;  %v4908_v16 = vpack.c.bf16 %v9223_v5, %v9222_v4  ;;  %v9227_v2 = vand.u32 4294901760, %v6152_v37  ;;  %v9233_v37 = vand.u32 4294901760, %v6182_v52  ;;  %v9240_v52 = vld [vmem:[#allocation49_spill] sm:$0xff]  ;;  %v9251_v61 = vand.u32 4294901760, %v9250_v38  ;;  %v9254_v5 = vld [vmem:[#allocation56_spill] sm:$0xff] }
 0x172   : > { %v4914_v43 = vpack.c.bf16 %v9235_v14, %v9234_v26  ;;  %v9241_v11 = vand.u32 4294901760, %v9240_v52  ;;  %v9268_v26 = vand.u32 4294901760, %v9167_v8  ;;  %v9272_v14 = vld [vmem:[#allocation44_spill] sm:$0xff] }
 0x173   : > { %1169 = vmatmul.mubr.f32.vlgmr.msra.gmra.mrb[0].mxu0 %v6760_v7  ;;  %2024 = vmatmul.mubr.f32.vlgmr.msra.gmra.mrb[0].mxu1 %v6760_v7  ;;  %v9226_v7 = vand.u32 4294901760, %v6147_v36  ;;  %v9232_v36 = vand.u32 4294901760, %v6177_v51  ;;  %v9274_v8 = vld [vmem:[#allocation76_spill] sm:$0xff] }
 0x174   : > { %4713 = vmatpush1.bf16.msra.mxu0 %v4712_v15  ;;  %4905 = vmatpush1.bf16.msra.mxu1 %v4904_v32  ;;  %v4912_v15 = vpack.c.bf16 %v9231_v31, %v9230_v30  ;;  %v9239_v32 = vand.u32 4294901760, %v6212_v55  ;;  %v4726_v57 = vpack.c.bf16 %v9243_v29, %v9241_v11  ;;  %v4728_v55 = vpack.c.bf16 %v9251_v61, %v9249_v3  ;;  %v7082_v52 = vld [vmem:[#allocation6 + $0x18] sm:$0xff] }
 0x175   : > { %4715 = vmatprep.subr.bf16.mxu0 %v4714_v10  ;;  %4907 = vmatprep.subr.bf16.mxu1 %v4906_v62  ;;  %v4910_v22 = vpack.c.bf16 %v9227_v2, %v9226_v7  ;;  %v4722_v33 = vpack.c.bf16 %v9233_v37, %v9232_v36  ;;  %v9244_v10 = vld [vmem:[#allocation51_spill] sm:$0xff]  ;;  %v9247_v62 = vand.u32 4294901760, %v9246_v0  ;;  %v9262_v30 = vand.u32 4294901760, %v9158_v35  ;;  %v9270_v35 = vld [vmem:[#allocation42_spill] sm:$0xff]  ;;  %v9275_v11 = vld [vmem:[#allocation40_spill] sm:$0xff] }
 0x176   : > { %1335 = vmatprep.mubr.f32.mxu0 %v9102_v39  ;;  %2190 = vmatprep.mubr.f32.mxu1 %v9102_v39  ;;  %v4916_v51 = vpack.c.bf16 %v9239_v32, %v9238_v59  ;;  %v9245_v19 = vand.u32 4294901760, %v9244_v10  ;;  %v9264_v36 = vand.u32 4294901760, %v9161_v54  ;;  %v9265_v37 = vand.u32 4294901760, %v9165_v21  ;;  %v9271_v54 = vld [vmem:[#allocation43_spill] sm:$0xff]  ;;  %v7062_v21 = vld [vmem:[#allocation6 + $0x80] sm:$0xff]  ;;  %v7078_v32 = vld [vmem:[#allocation6 + $0x98] sm:$0xff] }
 0x177   : > { %v2355_v44 = vand.u32 4294901760, %v7062_v21  ;;  %v7076_v59 = vld [vmem:[#allocation6 + $0x90] sm:$0xff]  ;;  %v2364_v29 = vand.u32 4294901760, %v7078_v32  ;;  %v2316_v10 = vand.u32 4294901760, %v7082_v52 }
 0x178   : > { %4717 = vmatpush1.bf16.msra.mxu0 %v4716_v18  ;;  %4909 = vmatpush1.bf16.msra.mxu1 %v4908_v16  ;;  %v4918_v1 = vpack.c.bf16 %v9247_v62, %v9245_v19  ;;  %v9252_v18 = vld [vmem:[#allocation55_spill] sm:$0xff]  ;;  %v9255_v16 = vand.u32 4294901760, %v9254_v5  ;;  %v2361_v63 = vand.u32 4294901760, %v7076_v59  ;;  %v9277_v62 = vld [vmem:[#allocation24_spill] sm:$0xff] }
 0x179   : > { %4719 = vmatprep.subr.bf16.mxu0 %v4718_v27  ;;  %4911 = vmatprep.subr.bf16.mxu1 %v4910_v22  ;;  %v9253_v4 = vand.u32 4294901760, %v9252_v18  ;;  %v9257_v27 = vld [vmem:[#allocation58_spill] sm:$0xff]  ;;  %v9259_v22 = vand.u32 4294901760, %v9156_v50  ;;  %v9266_v50 = vand.u32 4294901760, %v9164_v60  ;;  %v7142_v38 = vsub.f32 %v7082_v52, %v2316_v10 }
 0x17a   : > { %v9258_v7 = vand.u32 4294901760, %v9257_v27  ;;  %v7064_v60 = vld [vmem:[#allocation6 + $0x88] sm:$0xff]  ;;  %v7123_v0 = vsub.f32 %v7076_v59, %v2361_v63  ;;  %v9281_v27 = vld [vmem:[#allocation28_spill] sm:$0xff] }
 0x17b   : > { %v4920_v6 = vpack.c.bf16 %v9255_v16, %v9253_v4  ;;  %v4922_v24 = vpack.c.bf16 %v9260_v23, %v9259_v22  ;;  %v4734_v25 = vpack.c.bf16 %v9266_v50, %v9265_v37  ;;  %v2358_v45 = vand.u32 4294901760, %v7064_v60  ;;  %v9279_v18 = vld [vmem:[#allocation26_spill] sm:$0xff]  ;;  %v9280_v4 = vld [vmem:[#allocation27_spill] sm:$0xff] }
 0x17c   : > { %4721 = vmatpush1.bf16.msra.mxu0 %v4720_v28  ;;  %4913 = vmatpush1.bf16.msra.mxu1 %v4912_v15  ;;  %v4730_v2 = vpack.c.bf16 %v9258_v7, %v9256_v9  ;;  %v9261_v28 = vand.u32 4294901760, %v9159_v48  ;;  %v9263_v15 = vand.u32 4294901760, %v9162_v42  ;;  %v9269_v42 = vld [vmem:[#allocation41_spill] sm:$0xff]  ;;  %v8757_v16 = vand.u32 4294901760, %v7123_v0  ;;  %v7152_v9 = vld [vmem:[#allocation6 + $0xa8] sm:$0xff]  ;;  %v9284_v37 = vld [vmem:[#allocation31_spill] sm:$0xff] }
 0x17d   : > { %4723 = vmatprep.subr.bf16.mxu0 %v4722_v33  ;;  %4915 = vmatprep.subr.bf16.mxu1 %v4914_v43  ;;  %v9267_v33 = vand.u32 4294901760, %v9168_v20  ;;  %v9273_v20 = vld [vmem:[#allocation73_spill] sm:$0xff] }
 0x17e   : > { %v4732_v31 = vpack.c.bf16 %v9262_v30, %v9261_v28  ;;  %v4924_v46 = vpack.c.bf16 %v9264_v36, %v9263_v15  ;;  %v7068_v43 = vld [vmem:[#allocation6] sm:$0xff]  ;;  %v7171_v36 = vld [vmem:[#allocation6 + $0x28] sm:$0xff] }
 0x17f   : > { %v4926_v48 = vpack.c.bf16 %v9268_v26, %v9267_v33  ;;  %v9282_v7 = vld [vmem:[#allocation29_spill] sm:$0xff]  ;;  %v7184_v26 = vld [vmem:[#allocation6 + $0xb0] sm:$0xff] }
 0x180   : > { %4725 = vmatpush1.bf16.msra.mxu0 %v4724_v49  ;;  %4917 = vmatpush1.bf16.msra.mxu1 %v4916_v51  ;;  %v7074_v49 = vld [vmem:[#allocation6 + $0x8] sm:$0xff]  ;;  %v7080_v51 = vld [vmem:[#allocation6 + $0x10] sm:$0xff]  ;;  %v7169_v15 = vld [vmem:[#allocation6 + $0x20] sm:$0xff] }
 0x181   : > { %4727 = vmatprep.subr.bf16.mxu0 %v4726_v57  ;;  %4919 = vmatprep.subr.bf16.mxu1 %v4918_v1  ;;  %v7097_v57 = vsub.f32 %v7062_v21, %v2355_v44 }
 0x183   : > { %v8761_v1 = vand.u32 4294901760, %v7097_v57 }
 0x184   : > { %4729 = vmatpush1.bf16.msra.mxu0 %v4728_v55  ;;  %4921 = vmatpush1.bf16.msra.mxu1 %v4920_v6  ;;  %v7145_v55 = vld [vmem:[#allocation6 + $0xa0] sm:$0xff] }
 0x185   : > { %4731 = vmatprep.subr.bf16.mxu0 %v4730_v2  ;;  %4923 = vmatprep.subr.bf16.mxu1 %v4922_v24  ;;  %v2534_v2 = vsub.f32 %v7097_v57, %v8761_v1  ;;  %v8754_v24 = vand.u32 4294901760, %v7142_v38  ;;  %v2367_v28 = vand.u32 4294901760, %v7145_v55 }
 0x188   : > { %4733 = vmatpush1.bf16.msra.mxu0 %v4732_v31  ;;  %4925 = vmatpush1.bf16.msra.mxu1 %v4924_v46  ;;  %v2370_v31 = vand.u32 4294901760, %v7152_v9  ;;  %v9283_v46 = vld [vmem:[#allocation30_spill] sm:$0xff] }
 0x189   : > { %4735 = vmatprep.subr.bf16.mxu0 %v4734_v25  ;;  %4927 = vmatprep.subr.bf16.mxu1 %v4926_v48  ;;  %v2548_v25 = vsub.f32 %v7123_v0, %v8757_v16  ;;  %v7186_v48 = vld [vmem:[#allocation6 + $0xb8] sm:$0xff] }
 0x18c   : > { %4737 = vmatpush1.bf16.msra.mxu0 %v9269_v42  ;;  %4929 = vmatpush1.bf16.msra.mxu1 %v9270_v35  ;;  %v9285_v42 = vld [vmem:[#allocation32_spill] sm:$0xff]  ;;  %v9286_v35 = vld [vmem:[#allocation33_spill] sm:$0xff] }
 0x18d   : > { %4739 = vmatprep.subr.bf16.mxu0 %v9271_v54  ;;  %4931 = vmatprep.subr.bf16.mxu1 %v9272_v14  ;;  %v2535_v54 = vand.u32 4294901760, %v2534_v2  ;;  %v9287_v2 = vld [vmem:[#allocation34_spill] sm:$0xff] }
 0x190   : > { %4741 = vmatpush1.bf16.msra.mxu0 %v9273_v20  ;;  %4933 = vmatpush1.bf16.msra.mxu1 %v9274_v8  ;;  %v2443_v8 = vsub.f32 %v7142_v38, %v8754_v24  ;;  %v7214_v24 = vld [vmem:[#allocation6 + $0x38] sm:$0xff] }
 0x191   : > { %4743 = vmatprep.subr.bf16.mxu0 %v9176_v58  ;;  %4935 = vmatprep.subr.bf16.mxu1 %v9177_v17  ;;  %v2307_v58 = vand.u32 4294901760, %v7068_v43  ;;  %v2310_v17 = vand.u32 4294901760, %v7074_v49 }
 0x193   : > { %1337 = vmatmul.mubr.f32.vlgmr.msra.gmra.mrb[0].mxu0 %v9275_v11  ;;  %2192 = vmatmul.mubr.f32.vlgmr.msra.gmra.mrb[0].mxu1 %v9275_v11  ;;  %v7118_v19 = vsub.f32 %v7074_v49, %v2310_v17 }
 0x194   : > { %4745 = vmatpush1.bf16.msra.mxu0 %v9178_v41  ;;  %4937 = vmatpush1.bf16.msra.mxu1 %v9179_v56  ;;  %v7102_v41 = vsub.f32 %v7064_v60, %v2358_v45  ;;  %v2313_v56 = vand.u32 4294901760, %v7080_v51  ;;  %v7274_v60 = vld [vmem:[#allocation6 + $0x48] sm:$0xff] }
 0x195   : > { %4747 = vmatprep.subr.bf16.mxu0 %v9180_v13  ;;  %4939 = vmatprep.subr.bf16.mxu1 %v9181_v34  ;;  %v7111_v13 = vsub.f32 %v7068_v43, %v2307_v58  ;;  %v9276_v34 = vld [vmem:[#allocation23_spill] sm:$0xff]  ;;  %v8758_v5 = vand.u32 4294901760, %v7118_v19 }
 0x196   : > { %1439 = vmatprep.mubr.f32.mxu0 %v9102_v39  ;;  %2294 = vmatprep.mubr.f32.mxu1 %v9102_v39  ;;  %v7128_v39 = vsub.f32 %v7078_v32, %v2364_v29  ;;  %v8760_v40 = vand.u32 4294901760, %v7102_v41  ;;  %v7137_v3 = vsub.f32 %v7080_v51, %v2313_v56 }
 0x197   : > { %v8759_v61 = vand.u32 4294901760, %v7111_v13  ;;  %v2429_v50 = vsub.f32 %v7118_v19, %v8758_v5 }
 0x198   : > { %4749 = vmatpush1.bf16.msra.mxu0 %v9182_v12  ;;  %4941 = vmatpush1.bf16.msra.mxu1 %v9276_v34  ;;  %v9278_v12 = vld [vmem:[#allocation25_spill] sm:$0xff]  ;;  %v8756_v6 = vand.u32 4294901760, %v7128_v39  ;;  %v2541_v22 = vsub.f32 %v7102_v41, %v8760_v40  ;;  %v8755_v23 = vand.u32 4294901760, %v7137_v3  ;;  %v7199_v34 = vsub.f32 %v7145_v55, %v2367_v28 }
 0x199   : > { %4751 = vmatprep.subr.bf16.mxu0 %v9277_v62  ;;  %4943 = vmatprep.subr.bf16.mxu1 %v9278_v12  ;;  %v2422_v30 = vsub.f32 %v7111_v13, %v8759_v61  ;;  %v8765_v62 = vand.u32 4294901760, %v7169_v15  ;;  %v8763_v12 = vand.u32 4294901760, %v7171_v36  ;;  %v2444_v61 = vand.u32 4294901760, %v2443_v8  ;;  %v9292_v8 = vld [vmem:[#allocation64_spill] sm:$0xff] }
 0x19a   : > { %v2555_v33 = vsub.f32 %v7128_v39, %v8756_v6  ;;  %v2542_v14 = vand.u32 4294901760, %v2541_v22  ;;  %v2436_v20 = vsub.f32 %v7137_v3, %v8755_v23  ;;  %v9288_v22 = vld [vmem:[#allocation35_spill] sm:$0xff]  ;;  %v9289_v23 = vld [vmem:[#allocation38_spill] sm:$0xff]  ;;  %v8767_v40 = vand.u32 4294901760, %v7199_v34 }
 0x19b   : > { %v9290_v6 = vld [vmem:[#allocation59_spill] sm:$0xff] }
 0x19c   : > { %4753 = vmatpush1.bf16.msra.mxu0 %v9279_v18  ;;  %4945 = vmatpush1.bf16.msra.mxu1 %v9280_v4  ;;  %v7206_v18 = vsub.f32 %v7152_v9, %v2370_v31  ;;  %v8762_v4 = vand.u32 4294901760, %v7184_v26  ;;  %v7218_v16 = vpack.c.bf16 %v2542_v14, %v2535_v54  ;;  %v2437_v5 = vand.u32 4294901760, %v2436_v20  ;;  %v9291_v20 = vld [vmem:[#allocation62_spill] sm:$0xff] }
 0x19d   : > { %4755 = vmatprep.subr.bf16.mxu0 %v9281_v27  ;;  %4947 = vmatprep.subr.bf16.mxu1 %v9282_v7  ;;  %v8764_v27 = vand.u32 4294901760, %v7186_v48  ;;  %v7210_v7 = vld [vmem:[#allocation6 + $0x30] sm:$0xff]  ;;  %v8768_v14 = vand.u32 4294901760, %v7214_v24  ;;  %v9312_v9 = vand.u32 4294901760, %v7171_v36 }
 0x19f   : > { %v7245_v54 = vsub.f32 %v7186_v48, %v8764_v27  ;;  %v9294_v27 = vld [vmem:[#allocation69_spill] sm:$0xff] }
 0x1a0   : > { %4757 = vmatpush1.bf16.msra.mxu0 %v9283_v46  ;;  %4949 = vmatpush1.bf16.msra.mxu1 %v9284_v37  ;;  %v2423_v46 = vand.u32 4294901760, %v2422_v30  ;;  %v2430_v37 = vand.u32 4294901760, %v2429_v50  ;;  %v7229_v30 = vsub.f32 %v7171_v36, %v8763_v12  ;;  %v7232_v50 = vld [vmem:[#allocation6 + $0xc0] sm:$0xff]  ;;  %v9293_v12 = vld [vmem:[#allocation67_spill] sm:$0xff] }
 0x1a1   : > { %4759 = vmatprep.subr.bf16.mxu0 %v9285_v42  ;;  %4951 = vmatprep.subr.bf16.mxu1 %v9286_v35  ;;  %v2549_v42 = vand.u32 4294901760, %v2548_v25  ;;  %v2556_v35 = vand.u32 4294901760, %v2555_v33  ;;  %v8766_v25 = vand.u32 4294901760, %v7206_v18  ;;  %v7240_v33 = vsub.f32 %v7184_v26, %v8762_v4 }
 0x1a2   : > { %v7258_v4 = vpack.c.bf16 %v2358_v45, %v2355_v44  ;;  %v2562_v44 = vsub.f32 %v7199_v34, %v8767_v40  ;;  %v8772_v43 = vand.u32 4294901760, %v7229_v30 }
 0x1a3   : > { %v7252_v1 = vpack.c.bf16 %v2556_v35, %v2549_v42  ;;  %v7272_v42 = vld [vmem:[#allocation6 + $0x40] sm:$0xff]  ;;  %v9296_v35 = vld [vmem:[#allocation72_spill] sm:$0xff] }
 0x1a4   : > { %4761 = vmatpush1.bf16.msra.mxu0 %v9287_v2  ;;  %4953 = vmatpush1.bf16.msra.mxu1 %v9288_v22  ;;  %v7224_v2 = vsub.f32 %v7169_v15, %v8765_v62  ;;  %v7250_v22 = vpack.c.bf16 %v2430_v37, %v2423_v46  ;;  %v7262_v62 = vpack.c.bf16 %v2444_v61, %v2437_v5  ;;  %v8771_v37 = vand.u32 4294901760, %v7232_v50 }
 0x1a5   : > { %4763 = vmatprep.subr.bf16.mxu0 %v9289_v23  ;;  %4955 = vmatprep.subr.bf16.mxu1 %v9290_v6  ;;  %v8769_v23 = vand.u32 4294901760, %v7210_v7  ;;  %v7234_v6 = vld [vmem:[#allocation6 + $0xc8] sm:$0xff]  ;;  %v7268_v46 = vpack.c.bf16 %v2310_v17, %v2307_v58  ;;  %v7286_v58 = vld [vmem:[#allocation6 + $0xd0] sm:$0xff]  ;;  %v7288_v17 = vld [vmem:[#allocation6 + $0xd8] sm:$0xff]  ;;  %v2569_v61 = vsub.f32 %v7206_v18, %v8766_v25  ;;  %v8773_v5 = vand.u32 4294901760, %v7240_v33 }
 0x1a6   : > { %v8770_v21 = vand.u32 4294901760, %v7234_v6  ;;  %v8775_v45 = vand.u32 4294901760, %v7224_v2  ;;  %v7312_v25 = vpack.c.bf16 %v2316_v10, %v2313_v56  ;;  %v8777_v40 = vand.u32 4294901760, %v7272_v42 }
 0x1a7   : > { %v7284_v49 = vsub.f32 %v7210_v7, %v8769_v23  ;;  %v9298_v23 = vld [vmem:[#allocation78_spill] sm:$0xff]  ;;  %v7321_v59 = vsub.f32 %v7232_v50, %v8771_v37  ;;  %v8778_v51 = vand.u32 4294901760, %v7286_v58  ;;  %v8779_v52 = vand.u32 4294901760, %v7288_v17 }
 0x1a8   : > { %4765 = vmatpush1.bf16.msra.mxu0 %v9291_v20  ;;  %4957 = vmatpush1.bf16.msra.mxu1 %v9292_v8  ;;  %v9297_v20 = vld [vmem:[#allocation75_spill] sm:$0xff]  ;;  %v7306_v8 = vpack.c.bf16 %v2364_v29, %v2361_v63  ;;  %v7326_v32 = vsub.f32 %v7234_v6, %v8770_v21  ;;  %v7332_v29 = vld [vmem:[#allocation6 + $0x58] sm:$0xff]  ;;  %v2563_v56 = vand.u32 4294901760, %v2562_v44  ;;  %v2450_v10 = vsub.f32 %v7224_v2, %v8775_v45 }
 0x1a9   : > { %4767 = vmatprep.subr.bf16.mxu0 %v9293_v12  ;;  %4959 = vmatprep.subr.bf16.mxu1 %v9294_v27  ;;  %v8774_v12 = vand.u32 4294901760, %v7245_v54  ;;  %v7298_v27 = vsub.f32 %v7214_v24, %v8768_v14  ;;  %v8776_v14 = vand.u32 4294901760, %v7274_v60  ;;  %9300 = vst [vmem:[#allocation81_spill] sm:$0xff] %v7321_v59  ;;  %v7330_v63 = vld [vmem:[#allocation6 + $0x50] sm:$0xff]  ;;  %v2576_v21 = vsub.f32 %v7240_v33, %v8773_v5 }
 0x1aa   : > { %9301 = vst [vmem:[#allocation83_spill] sm:$0xff] %v7326_v32  ;;  %v8782_v5 = vand.u32 4294901760, %v7330_v63  ;;  %v7369_v45 = vsub.f32 %v7286_v58, %v8778_v51 }
 0x1ab   : > { %9295 = vst [vmem:[#allocation80_spill] sm:$0xff] %v7298_v27  ;;  %v2583_v37 = vsub.f32 %v7245_v54, %v8774_v12  ;;  %v8780_v44 = vand.u32 4294901760, %v7298_v27 }
 0x1ac   : > { %4769 = vmatpush1.bf16.msra.mxu0 %v9296_v35  ;;  %4961 = vmatpush1.bf16.msra.mxu1 %v9297_v20  ;;  %v9299_v35 = vld [vmem:[#allocation79_spill] sm:$0xff]  ;;  %v8781_v20 = vand.u32 4294901760, %v7284_v49  ;;  %9304 = vst [vmem:[#allocation15_spill] sm:$0xff] %v7369_v45 }
 0x1ad   : > { %4771 = vmatprep.subr.bf16.mxu0 %v9298_v23  ;;  %4963 = vmatprep.subr.bf16.mxu1 %v9299_v35  ;;  %v2457_v23 = vsub.f32 %v7229_v30, %v8772_v43  ;;  %v2570_v35 = vand.u32 4294901760, %v2569_v61  ;;  %v7353_v43 = vsub.f32 %v7272_v42, %v8777_v40  ;;  %v7358_v61 = vsub.f32 %v7274_v60, %v8776_v14 }
 0x1ae   : > { %v7374_v14 = vsub.f32 %v7288_v17, %v8779_v52  ;;  %v2451_v40 = vand.u32 4294901760, %v2450_v10  ;;  %v2584_v52 = vand.u32 4294901760, %v2583_v37  ;;  %v2471_v10 = vsub.f32 %v7298_v27, %v8780_v44 }
 0x1af   : > { %9302 = vst [vmem:[#allocation84_spill] sm:$0xff] %v7353_v43  ;;  %9303 = vst [vmem:[#allocation86_spill] sm:$0xff] %v7358_v61  ;;  %v2458_v12 = vand.u32 4294901760, %v2457_v23  ;;  %v5006_v51 = vpack.c.bf16 %v2570_v35, %v2563_v56  ;;  %v8790_v23 = vand.u32 4294901760, %v7369_v45 }
 0x1b0   : > { %4773 = vmatpush1.bf16.msra.mxu0 %v9210_v53  ;;  %4965 = vmatpush1.bf16.msra.mxu1 %v9211_v47  ;;  %9305 = vst [vmem:[#allocation87_spill] sm:$0xff] %v7374_v14  ;;  %v7383_v47 = vpack.c.bf16 %v2370_v31, %v2367_v28  ;;  %v2577_v53 = vand.u32 4294901760, %v2576_v21  ;;  %v7397_v28 = vsub.f32 %v7330_v63, %v8782_v5  ;;  %v9310_v21 = vand.u32 4294901760, %v7326_v32 }
 0x1b1   : > { %4999 = vmatprep.subr.bf16.mxu1 %v7218_v16  ;;  %4967 = vmatprep.subr.bf16.mxu0 %v7258_v4  ;;  %v2464_v16 = vsub.f32 %v7284_v49, %v8781_v20  ;;  %v8789_v35 = vand.u32 4294901760, %v7374_v14  ;;  %v5008_v44 = vpack.c.bf16 %v2458_v12, %v2451_v40  ;;  %v2472_v5 = vand.u32 4294901760, %v2471_v10 }
 0x1b2   : > { %9306 = vst [vmem:[#allocation88_spill] sm:$0xff] %v7397_v28  ;;  %v2597_v56 = vsub.f32 %v7326_v32, %v9310_v21  ;;  %v9315_v40 = vand.u32 4294901760, %v7353_v43  ;;  %v9317_v10 = vand.u32 4294901760, %v7210_v7 }
 0x1b3   : > { %1441 = vmatmul.mubr.f32.vlgmr.msra.gmra.mrb[0].mxu0 %v9275_v11  ;;  %2296 = vmatmul.mubr.f32.vlgmr.msra.gmra.mrb[0].mxu1 %v9275_v11  ;;  %v9307_v11 = vand.u32 4294901760, %v7332_v29  ;;  %v2465_v20 = vand.u32 4294901760, %v2464_v16 }
 0x1b4   : > { %5001 = vmatpush3.bf16.msra.mxu1 %v7250_v22  ;;  %4969 = vmatpush3.bf16.msra.mxu0 %v7268_v46  ;;  %v9309_v22 = vand.u32 4294901760, %v7321_v59  ;;  %v2478_v12 = vsub.f32 %v7353_v43, %v9315_v40  ;;  %v9321_v43 = vand.u32 4294901760, %v7234_v6 }
 0x1b5   : > { %v7402_v31 = vsub.f32 %v7332_v29, %v9307_v11  ;;  %5003 = vmatprep.subr.bf16.mxu1 %v7252_v1  ;;  %4971 = vmatprep.subr.bf16.mxu0 %v7306_v8  ;;  %v5010_v11 = vpack.c.bf16 %v2584_v52, %v2577_v53  ;;  %v9311_v1 = vand.u32 4294901760, %v7169_v15  ;;  %v9316_v15 = vand.u32 4294901760, %v7358_v61 }
 0x1b6   : > { %v2590_v37 = vsub.f32 %v7321_v59, %v9309_v22  ;;  %v9313_v22 = vand.u32 4294901760, %v7184_v26  ;;  %v9314_v59 = vand.u32 4294901760, %v7186_v48  ;;  %v8788_v52 = vand.u32 4294901760, %v7397_v28 }
 0x1b7   : > { %9308 = vst [vmem:[#allocation89_spill] sm:$0xff] %v7402_v31  ;;  %v7418_v55 = vpack.c.bf16 %v9312_v9, %v9311_v1  ;;  %v2485_v36 = vsub.f32 %v7358_v61, %v9316_v15  ;;  %v8787_v26 = vand.u32 4294901760, %v7402_v31  ;;  %v2611_v53 = vsub.f32 %v7374_v14, %v8789_v35  ;;  %v7458_v15 = vld [vmem:[#allocation6 + $0xe0] sm:$0xff] }
 0x1b8   : > { %v7424_v27 = vpack.c.bf16 %v9314_v59, %v9313_v22  ;;  %5005 = vmatpush3.bf16.msra.mxu1 %v7262_v62  ;;  %4973 = vmatpush3.bf16.msra.mxu0 %v7312_v25  ;;  %v2591_v48 = vand.u32 4294901760, %v2590_v37  ;;  %v2598_v59 = vand.u32 4294901760, %v2597_v56  ;;  %v2604_v62 = vsub.f32 %v7369_v45, %v8790_v23 }
 0x1b9   : > { %5007 = vmatprep.subr.bf16.mxu1 %v5006_v51  ;;  %4975 = vmatprep.subr.bf16.mxu0 %v7383_v47  ;;  %v5012_v16 = vpack.c.bf16 %v2472_v5, %v2465_v20  ;;  %v9318_v9 = vand.u32 4294901760, %v7214_v24  ;;  %v2479_v51 = vand.u32 4294901760, %v2478_v12  ;;  %v2486_v37 = vand.u32 4294901760, %v2485_v36 }
 0x1ba   : > { %v2492_v56 = vsub.f32 %v7397_v28, %v8788_v52  ;;  %v2499_v1 = vsub.f32 %v7402_v31, %v8787_v26  ;;  %v5014_v5 = vpack.c.bf16 %v2598_v59, %v2591_v48  ;;  %v2605_v24 = vand.u32 4294901760, %v2604_v62  ;;  %v464_v59 = vld [vmem:[#allocation6 + $0x60] sm:$0xff]  ;;  %v465_v62 = vld [vmem:[#allocation6 + $0x68] sm:$0xff] }
 0x1bb   : > { %v7447_v21 = vpack.c.bf16 %v9318_v9, %v9317_v10  ;;  %v2612_v7 = vand.u32 4294901760, %v2611_v53  ;;  %v5016_v20 = vpack.c.bf16 %v2486_v37, %v2479_v51  ;;  %v2391_v36 = vand.u32 4294901760, %v7458_v15 }
 0x1bc   : > { %5009 = vmatpush3.bf16.msra.mxu1 %v5008_v44  ;;  %4977 = vmatpush3.bf16.msra.mxu0 %v7418_v55  ;;  %v2493_v44 = vand.u32 4294901760, %v2492_v56  ;;  %v2500_v22 = vand.u32 4294901760, %v2499_v1  ;;  %v2343_v53 = vand.u32 4294901760, %v464_v59  ;;  %v482_v56 = vld [vmem:[#allocation6 + $0xf0] sm:$0xff]  ;;  %v483_v1 = vld [vmem:[#allocation6 + $0xf8] sm:$0xff] }
 0x1bd   : > { %9319 = vst [vmem:[#allocation90_spill] sm:$0xff] %v7447_v21  ;;  %5011 = vmatprep.subr.bf16.mxu1 %v5010_v11  ;;  %4979 = vmatprep.subr.bf16.mxu0 %v7424_v27  ;;  %v5018_v40 = vpack.c.bf16 %v2612_v7, %v2605_v24  ;;  %v7460_v11 = vld [vmem:[#allocation6 + $0xe8] sm:$0xff]  ;;  %v7465_v10 = vsub.f32 %v7458_v15, %v2391_v36  ;;  %v2397_v7 = vand.u32 4294901760, %v482_v56 }
 0x1be   : > { %v5020_v12 = vpack.c.bf16 %v2500_v22, %v2493_v44  ;;  %v2394_v48 = vand.u32 4294901760, %v7460_v11  ;;  %v7470_v51 = vsub.f32 %v464_v59, %v2343_v53  ;;  %v466_v44 = vld [vmem:[#allocation6 + $0x70] sm:$0xff]  ;;  %v467_v22 = vld [vmem:[#allocation6 + $0x78] sm:$0xff] }
 0x1bf   : > { %v2349_v15 = vand.u32 4294901760, %v466_v44  ;;  %v7484_v26 = vsub.f32 %v482_v56, %v2397_v7 }
 0x1c0   : > { %5013 = vmatpush3.bf16.msra.mxu1 %v5012_v16  ;;  %4981 = vmatpush3.bf16.msra.mxu0 %v7447_v21  ;;  %v2346_v16 = vand.u32 4294901760, %v465_v62  ;;  %v7468_v9 = vsub.f32 %v7460_v11, %v2394_v48  ;;  %v2352_v11 = vand.u32 4294901760, %v467_v22 }
 0x1c1   : > { %5015 = vmatprep.subr.bf16.mxu1 %v5014_v5  ;;  %v8795_v5 = vand.u32 4294901760, %v7465_v10  ;;  %v7494_v31 = vsub.f32 %v466_v44, %v2349_v15 }
 0x1c2   : > { %v7472_v37 = vsub.f32 %v465_v62, %v2346_v16  ;;  %v8798_v24 = vand.u32 4294901760, %v7468_v9  ;;  %v7496_v28 = vsub.f32 %v467_v22, %v2352_v11  ;;  %v9323_v22 = vand.u32 4294901760, %v7272_v42 }
 0x1c3   : > { %v2618_v59 = vsub.f32 %v7465_v10, %v8795_v5  ;;  %v8810_v61 = vand.u32 4294901760, %v7494_v31 }
 0x1c4   : > { %5017 = vmatpush3.bf16.msra.mxu1 %v5016_v20  ;;  %v2400_v20 = vand.u32 4294901760, %v483_v1  ;;  %v2625_v62 = vsub.f32 %v7468_v9, %v8798_v24  ;;  %v8812_v24 = vand.u32 4294901760, %v7484_v26  ;;  %v8809_v6 = vand.u32 4294901760, %v7496_v28 }
 0x1c5   : > { %5019 = vmatprep.subr.bf16.mxu1 %v5018_v40  ;;  %v8803_v40 = vand.u32 4294901760, %v7470_v51  ;;  %v2619_v5 = vand.u32 4294901760, %v2618_v59  ;;  %v9324_v59 = vand.u32 4294901760, %v7274_v60  ;;  %v2520_v42 = vsub.f32 %v7494_v31, %v8810_v61  ;;  %v9343_v61 = vld [vmem:[#allocation81_spill] sm:$0xff] }
 0x1c6   : > { %v7486_v52 = vsub.f32 %v483_v1, %v2400_v20  ;;  %v2626_v14 = vand.u32 4294901760, %v2625_v62  ;;  %v9326_v60 = vand.u32 4294901760, %v7286_v58 }
 0x1c7   : > { %v2506_v35 = vsub.f32 %v7470_v51, %v8803_v40  ;;  %v9320_v40 = vand.u32 4294901760, %v7232_v50  ;;  %v7511_v62 = vpack.c.bf16 %v9324_v59, %v9323_v22  ;;  %v7542_v59 = vpack.c.bf16 %v2394_v48, %v2391_v36  ;;  %v7638_v48 = vld [vmem:[#allocation6 + $0x1f8] sm:$0xff] }
 0x1c8   : > { %5021 = vmatpush3.bf16.msra.mxu1 %v5020_v12  ;;  %v8808_v12 = vand.u32 4294901760, %v7472_v37  ;;  %v8811_v56 = vand.u32 4294901760, %v7486_v52  ;;  %v5022_v44 = vpack.c.bf16 %v2626_v14, %v2619_v5  ;;  %v2527_v5 = vsub.f32 %v7496_v28, %v8809_v6  ;;  %v7625_v6 = vld [vmem:[#allocation6 + $0x1e8] sm:$0xff]  ;;  %9348 = vst [vmem:[#allocation74_spill] sm:$0xff] %v7638_v48 }
 0x1c9   : > { %v2507_v1 = vand.u32 4294901760, %v2506_v35  ;;  %v7505_v32 = vpack.c.bf16 %v9321_v43, %v9320_v40  ;;  %9325 = vst [vmem:[#allocation92_spill] sm:$0xff] %v7511_v62  ;;  %v9329_v40 = vand.u32 4294901760, %v7330_v63  ;;  %9332 = vst [vmem:[#allocation95_spill] sm:$0xff] %v7542_v59  ;;  %v7549_v63 = vpack.c.bf16 %v2400_v20, %v2397_v7  ;;  %v7632_v7 = vld [vmem:[#allocation6 + $0x168] sm:$0xff] }
 0x1ca   : > { %v2513_v23 = vsub.f32 %v7472_v37, %v8808_v12  ;;  %5023 = vmatprep.subr.bf16.mxu1 %v5022_v44  ;;  %v2639_v50 = vsub.f32 %v7486_v52, %v8811_v56  ;;  %v2521_v44 = vand.u32 4294901760, %v2520_v42  ;;  %v2528_v58 = vand.u32 4294901760, %v2527_v5  ;;  %9342 = vst [vmem:[#allocation104_spill] sm:$0xff] %v7625_v6  ;;  %v9344_v56 = vld [vmem:[#allocation83_spill] sm:$0xff]  ;;  %9346 = vst [vmem:[#allocation106_spill] sm:$0xff] %v7632_v7 }
 0x1cb   : > { %9322 = vst [vmem:[#allocation91_spill] sm:$0xff] %v7505_v32  ;;  %4983 = vmatprep.subr.bf16.mxu0 %v7505_v32  ;;  %9334 = vst [vmem:[#allocation97_spill] sm:$0xff] %v7549_v63  ;;  %v5030_v36 = vpack.c.bf16 %v7102_v41, %v7097_v57  ;;  %v518_v20 = vlaneseq }
 0x1cc   : > { %v2514_v45 = vand.u32 4294901760, %v2513_v23  ;;  %v2632_v23 = vsub.f32 %v7484_v26, %v8812_v24  ;;  %4985 = vmatpush3.bf16.msra.mxu0 %v7511_v62  ;;  %v2640_v35 = vand.u32 4294901760, %v2639_v50  ;;  %v7571_v50 = vld [vmem:[%s8494_s3] sm:$0xf]  ;;  %v5046_v24 = vpack.c.bf16 %v9344_v56, %v9343_v61 }
 0x1ce   : > { %v5024_v12 = vpack.c.bf16 %v2514_v45, %v2507_v1  ;;  %v2633_v14 = vand.u32 4294901760, %v2632_v23  ;;  %v9327_v45 = vand.u32 4294901760, %v7288_v17  ;;  %v5028_v17 = vpack.c.bf16 %v2528_v58, %v2521_v44 }
 0x1cf   : > { %v7544_v23 = vpack.c.bf16 %v2346_v16, %v2343_v53  ;;  %v7653_v53 = vld [vmem:[#allocation6 + $0x170] sm:$0xff] }
 0x1d0   : > { %5025 = vmatpush3.bf16.msra.mxu1 %v5024_v12  ;;  %v7529_v43 = vpack.c.bf16 %v9327_v45, %v9326_v60  ;;  %v9330_v12 = vand.u32 4294901760, %v7332_v29  ;;  %v5026_v22 = vpack.c.bf16 %v2640_v35, %v2633_v14  ;;  %v7551_v29 = vpack.c.bf16 %v2352_v11, %v2349_v15  ;;  %9353 = vst [vmem:[#allocation77_spill] sm:$0xff] %v7653_v53 }
 0x1d1   : > { %9333 = vst [vmem:[#allocation96_spill] sm:$0xff] %v7544_v23  ;;  %v7565_v15 = vshrl.u32 %v518_v20, 7 }
 0x1d2   : > { %9328 = vst [vmem:[#allocation93_spill] sm:$0xff] %v7529_v43  ;;  %v7538_v1 = vpack.c.bf16 %v9330_v12, %v9329_v40  ;;  %4987 = vmatprep.subr.bf16.mxu0 %v7529_v43  ;;  %5027 = vmatprep.subr.bf16.mxu1 %v5026_v22 }
 0x1d3   : > { %v520_v11 = vsub.s32 0, %v7565_v15  ;;  %v524_v14 = vsub.s32 1, %v7565_v15 }
 0x1d4   : > { %9331 = vst [vmem:[#allocation94_spill] sm:$0xff] %v7538_v1  ;;  %4989 = vmatpush3.bf16.msra.mxu0 %v7538_v1  ;;  %5029 = vmatpush3.bf16.msra.mxu1 %v5028_v17 }
 0x1d5   : > { %4991 = vmatprep.subr.bf16.mxu0 %v7542_v59  ;;  %5063 = vmatprep.subr.bf16.mxu1 %v7258_v4  ;;  %v521_v42 = vrot.slane %v7571_v50, %v520_v11  ;;  %v525_v60 = vrot.slane %v7571_v50, %v524_v14 }
 0x1d8   : > { %4993 = vmatpush3.bf16.msra.mxu0 %v7544_v23 }
 0x1d9   : > { %4995 = vmatprep.subr.bf16.mxu0 %v7549_v63 }
 0x1dc   : > { %4997 = vmatpush3.bf16.msra.mxu0 %v7551_v29 }
 0x1dd   : > { %5031 = vmatprep.subr.bf16.mxu0 %v5030_v36 }
 0x286   : > { %v1442_v45 = vpop.f32.mrb[0].mxu0  ;;  %v7576_v35 = vpop.f32.mrb[0].mxu1 }
 0x287   : > { %9335 = vst [vmem:[#allocation98_spill] sm:$0xff] %v7576_v35  ;;  %v5350_v5 = vadd.f32 %v1442_v45, %v521_v42  ;;  %v1444_v40 = vpop.f32.mrb[1].mxu0  ;;  %v7578_v12 = vpop.f32.mrb[1].mxu1 }
 0x288   : > { %9336 = vst [vmem:[#allocation99_spill] sm:$0xff] %v7578_v12  ;;  %v5351_v44 = vadd.f32 %v1444_v40, %v525_v60  ;;  %v5032_v40 = vpack.c.bf16 %v7118_v19, %v7111_v13 }
 0x289   : > { %v2302_v22 = vmax.f32 %v5350_v5, 0.0 }
 0x28a   : > { %v2303_v58 = vmax.f32 %v5351_v44, 0.0 }
 0x28b   : > { %v7580_v17 = vand.u32 4294901760, %v2302_v22 }
 0x28c   : > { %v7582_v36 = vand.u32 4294901760, %v2303_v58 }
 0x28d   : > { %9337 = vst [vmem:[#allocation100_spill] sm:$0xff] %v7580_v17  ;;  %v7585_v20 = vsub.f32 %v2302_v22, %v7580_v17  ;;  %v5034_v22 = vpack.c.bf16 %v7128_v39, %v7123_v0 }
 0x28e   : > { %v2403_v11 = vsub.f32 %v2303_v58, %v7582_v36  ;;  %2643 = vmatprep.mubr.f32.mxu1 %v7582_v36  ;;  %v5036_v58 = vpack.c.bf16 %v7142_v38, %v7137_v3 }
 0x28f   : > { %v8813_v14 = vand.u32 4294901760, %v7585_v20  ;;  %2645 = vmatmul.mubr.f32.vlgmr.msra.gmra.mrb[2].mxu1 %v7580_v17 }
 0x290   : > { %5065 = vmatpush3.bf16.msra.mxu1 %v7268_v46  ;;  %v2404_v42 = vand.u32 4294901760, %v2403_v11 }
 0x291   : > { %v2411_v60 = vsub.f32 %v7585_v20, %v8813_v14  ;;  %5067 = vmatprep.subr.bf16.mxu1 %v7306_v8  ;;  %v7636_v14 = vld [vmem:[#allocation6 + $0x1f0] sm:$0xff] }
 0x292   : > { %2887 = vmatprep.mubr.f32.mxu1 %v2404_v42  ;;  %v2405_v45 = vsub.f32 %v2403_v11, %v2404_v42  ;;  %v5038_v42 = vpack.c.bf16 %v7206_v18, %v7199_v34  ;;  %9347 = vst [vmem:[#allocation107_spill] sm:$0xff] %v7636_v14 }
 0x293   : > { %v2412_v44 = vand.u32 4294901760, %v2411_v60  ;;  %v5040_v60 = vpack.c.bf16 %v7229_v30, %v7224_v2 }
 0x294   : > { %5069 = vmatpush3.bf16.msra.mxu1 %v7312_v25  ;;  %v2406_v5 = vand.u32 4294901760, %v2405_v45  ;;  %v5042_v45 = vpack.c.bf16 %v7245_v54, %v7240_v33 }
 0x295   : > { %5071 = vmatprep.subr.bf16.mxu1 %v7383_v47 }
 0x296   : > { %2407 = vmatprep.mubr.f32.mxu0 %v2406_v5  ;;  %v7614_v5 = vld [vmem:[#allocation6 + $0x150] sm:$0xff] }
 0x297   : > { %2413 = vmatmul.mubr.f32.vlgmr.msra.gmra.mrb[2].mxu0 %v2412_v44  ;;  %9338 = vst [vmem:[#allocation101_spill] sm:$0xff] %v7614_v5  ;;  %v9351_v35 = vand.u32 4294901760, %v7614_v5 }
 0x298   : > { %5033 = vmatpush3.bf16.msra.mxu0 %v5032_v40  ;;  %5073 = vmatpush3.bf16.msra.mxu1 %v7418_v55  ;;  %v9340_v40 = vld [vmem:[#allocation80_spill] sm:$0xff] }
 0x299   : > { %2780 = vmatprep.mubr.f32.mxu0 %v2403_v11  ;;  %5035 = vmatprep.subr.bf16.mxu0 %v5034_v22  ;;  %v7616_v11 = vld [vmem:[#allocation6 + $0x158] sm:$0xff]  ;;  %v5044_v44 = vpack.c.bf16 %v9340_v40, %v7284_v49  ;;  %v7646_v17 = vsub.f32 %v7614_v5, %v9351_v35  ;;  %v9360_v35 = vld [vmem:[#allocation89_spill] sm:$0xff] }
 0x29a   : > { %5075 = vmatprep.subr.bf16.mxu1 %v7424_v27  ;;  %9339 = vst [vmem:[#allocation102_spill] sm:$0xff] %v7616_v11  ;;  %v9359_v5 = vld [vmem:[#allocation88_spill] sm:$0xff] }
 0x29c   : > { %5037 = vmatpush3.bf16.msra.mxu0 %v5036_v58  ;;  %5077 = vmatpush3.bf16.msra.mxu1 %v7447_v21  ;;  %v9350_v58 = vld [vmem:[#allocation86_spill] sm:$0xff]  ;;  %v5052_v21 = vpack.c.bf16 %v9360_v35, %v9359_v5  ;;  %v7767_v35 = vld [vmem:[#allocation6 + $0x198] sm:$0xff] }
 0x29d   : > { %5039 = vmatprep.subr.bf16.mxu0 %v5038_v42  ;;  %5079 = vmatprep.subr.bf16.mxu1 %v7505_v32  ;;  %v7623_v42 = vld [vmem:[#allocation6 + $0x1e0] sm:$0xff] }
 0x29e   : > { %9341 = vst [vmem:[#allocation103_spill] sm:$0xff] %v7623_v42 }
 0x2a0   : > { %5041 = vmatpush3.bf16.msra.mxu0 %v5040_v60  ;;  %5081 = vmatpush3.bf16.msra.mxu1 %v7511_v62  ;;  %v7630_v60 = vld [vmem:[#allocation6 + $0x160] sm:$0xff]  ;;  %v7655_v62 = vld [vmem:[#allocation6 + $0x178] sm:$0xff] }
 0x2a1   : > { %5043 = vmatprep.subr.bf16.mxu0 %v5042_v45  ;;  %5083 = vmatprep.subr.bf16.mxu1 %v7529_v43  ;;  %9345 = vst [vmem:[#allocation105_spill] sm:$0xff] %v7630_v60  ;;  %v9349_v45 = vld [vmem:[#allocation84_spill] sm:$0xff]  ;;  %v9352_v43 = vand.u32 4294901760, %v7616_v11  ;;  %9354 = vst [vmem:[#allocation108_spill] sm:$0xff] %v7655_v62 }
 0x2a2   : > { %v5048_v22 = vpack.c.bf16 %v9350_v58, %v9349_v45 }
 0x2a3   : > { %v7651_v16 = vsub.f32 %v7616_v11, %v9352_v43  ;;  %v9357_v43 = vand.u32 4294901760, %v7623_v42 }
 0x2a4   : > { %5045 = vmatpush3.bf16.msra.mxu0 %v5044_v44  ;;  %5085 = vmatpush3.bf16.msra.mxu1 %v7538_v1  ;;  %v9355_v44 = vld [vmem:[#allocation15_spill] sm:$0xff] }
 0x2a5   : > { %5047 = vmatprep.subr.bf16.mxu0 %v5046_v24  ;;  %5087 = vmatprep.subr.bf16.mxu1 %v7542_v59  ;;  %v9356_v1 = vld [vmem:[#allocation87_spill] sm:$0xff]  ;;  %v7667_v11 = vsub.f32 %v7623_v42, %v9357_v43  ;;  %v9358_v24 = vand.u32 4294901760, %v7625_v6  ;;  %v7682_v42 = vld [vmem:[#allocation6 + $0x180] sm:$0xff]  ;;  %v9365_v43 = vand.u32 4294901760, %v7638_v48 }
 0x2a6   : > { %v5050_v32 = vpack.c.bf16 %v9356_v1, %v9355_v44  ;;  %v9364_v44 = vand.u32 4294901760, %v7636_v14 }
 0x2a7   : > { %v7672_v59 = vsub.f32 %v7625_v6, %v9358_v24  ;;  %v9361_v24 = vand.u32 4294901760, %v7630_v60  ;;  %v7694_v6 = vld [vmem:[#allocation6 + $0x188] sm:$0xff] }
 0x2a8   : > { %5049 = vmatpush3.bf16.msra.mxu0 %v5048_v22  ;;  %5089 = vmatpush3.bf16.msra.mxu1 %v7544_v23  ;;  %v9362_v22 = vand.u32 4294901760, %v7632_v7 }
 0x2a9   : > { %5051 = vmatprep.subr.bf16.mxu0 %v5050_v32  ;;  %5091 = vmatprep.subr.bf16.mxu1 %v7549_v63  ;;  %v7687_v1 = vsub.f32 %v7630_v60, %v9361_v24  ;;  %v7699_v32 = vsub.f32 %v7636_v14, %v9364_v44  ;;  %v7704_v63 = vsub.f32 %v7638_v48, %v9365_v43  ;;  %v9366_v24 = vand.u32 4294901760, %v7646_v17 }
 0x2aa   : > { %v7692_v12 = vsub.f32 %v7632_v7, %v9362_v22  ;;  %v9367_v60 = vand.u32 4294901760, %v7651_v16  ;;  %v7712_v22 = vld [vmem:[#allocation6 + $0x100] sm:$0xff]  ;;  %v7714_v7 = vld [vmem:[#allocation6 + $0x108] sm:$0xff]  ;;  %v9369_v14 = vand.u32 4294901760, %v7653_v53  ;;  %v9371_v43 = vand.u32 4294901760, %v7655_v62 }
 0x2ab   : > { %v9377_v44 = vand.u32 4294901760, %v7585_v20 }
 0x2ac   : > { %9363 = vst [vmem:[#allocation109_spill] sm:$0xff] %v7692_v12  ;;  %v7710_v23 = vpack.c.bf16 %v9367_v60, %v9366_v24  ;;  %v7721_v5 = vsub.f32 %v7653_v53, %v9369_v14  ;;  %v7726_v48 = vsub.f32 %v7655_v62, %v9371_v43  ;;  %5053 = vmatpush3.bf16.msra.mxu0 %v5052_v21  ;;  %v9374_v43 = vand.u32 4294901760, %v7667_v11  ;;  %v7749_v14 = vld [vmem:[#allocation6 + $0x190] sm:$0xff] }
 0x2ad   : > { %5093 = vmatpush3.bf16.msra.mxu1 %v7551_v29  ;;  %v9373_v24 = vpack.c.bf16 %v7468_v9, %v7465_v10  ;;  %v9375_v21 = vand.u32 4294901760, %v7672_v59  ;;  %v9381_v62 = vpack.c.bf16 %v7472_v37, %v7470_v51  ;;  %v9384_v53 = vand.u32 4294901760, %v7699_v32 }
 0x2ae   : > { %9368 = vst [vmem:[#allocation110_spill] sm:$0xff] %v7710_v23  ;;  %9370 = vst [vmem:[#allocation45_spill] sm:$0xff] %v7721_v5  ;;  %5127 = vmatprep.subr.bf16.mxu1 %v7258_v4  ;;  %v9383_v4 = vand.u32 4294901760, %v7102_v41  ;;  %v9390_v41 = vand.u32 4294901760, %v7694_v6 }
 0x2af   : > { %9372 = vst [vmem:[#allocation47_spill] sm:$0xff] %v7726_v48  ;;  %5055 = vmatprep.subr.bf16.mxu0 %v9373_v24  ;;  %v7741_v23 = vpack.c.bf16 %v9375_v21, %v9374_v43  ;;  %v9378_v43 = vand.u32 4294901760, %v7687_v1  ;;  %v9379_v21 = vand.u32 4294901760, %v7692_v12 }
 0x2b0   : > { %2891 = vmatmul.mubr.f32.vlgmr.msra.gmra.mrb[4].mxu1 %v9377_v44  ;;  %5057 = vmatpush3.bf16.msra.mxu0 %v9381_v62  ;;  %v9382_v44 = vand.u32 4294901760, %v7097_v57  ;;  %v9387_v62 = vpack.c.bf16 %v7486_v52, %v7484_v26 }
 0x2b1   : > { %9376 = vst [vmem:[#allocation46_spill] sm:$0xff] %v7741_v23  ;;  %v7757_v60 = vpack.c.bf16 %v9379_v21, %v9378_v43  ;;  %5129 = vmatpush3.bf16.msra.mxu1 %v7268_v46  ;;  %v9385_v23 = vand.u32 4294901760, %v7704_v63  ;;  %3161 = vmatprep.mubr.f32.mxu1 %v7582_v36  ;;  %v9388_v46 = vand.u32 4294901760, %v7682_v42  ;;  %v9392_v43 = vand.u32 4294901760, %v7721_v5 }
 0x2b2   : > { %v5094_v24 = vpack.c.bf16 %v9383_v4, %v9382_v44  ;;  %5059 = vmatprep.subr.bf16.mxu0 %v9387_v62  ;;  %v7787_v4 = vsub.f32 %v7694_v6, %v9390_v41  ;;  %5131 = vmatprep.subr.bf16.mxu1 %v7306_v8  ;;  %v9395_v21 = vand.u32 4294901760, %v7712_v22  ;;  %v9397_v62 = vand.u32 4294901760, %v7714_v7 }
 0x2b3   : > { %9380 = vst [vmem:[#allocation48_spill] sm:$0xff] %v7757_v60  ;;  %v7773_v12 = vpack.c.bf16 %v9385_v23, %v9384_v53  ;;  %v7782_v57 = vsub.f32 %v7682_v42, %v9388_v46  ;;  %v9393_v23 = vand.u32 4294901760, %v7726_v48  ;;  %v9399_v8 = vpack.c.bf16 %v7496_v28, %v7494_v31 }
 0x2b4   : > { %9391 = vst [vmem:[#allocation60_spill] sm:$0xff] %v7787_v4  ;;  %v7799_v44 = vsub.f32 %v7712_v22, %v9395_v21  ;;  %v7804_v46 = vsub.f32 %v7714_v7, %v9397_v62  ;;  %v9401_v21 = vand.u32 4294901760, %v7118_v19  ;;  %v9402_v41 = vand.u32 4294901760, %v7123_v0 }
 0x2b5   : > { %9386 = vst [vmem:[#allocation57_spill] sm:$0xff] %v7773_v12  ;;  %9389 = vst [vmem:[#allocation61_spill] sm:$0xff] %v7782_v57  ;;  %v7793_v53 = vpack.c.bf16 %v9393_v23, %v9392_v43  ;;  %v7807_v12 = vld [vmem:[#allocation6 + $0x110] sm:$0xff]  ;;  %v532_v43 = vsub.s32 3, %v7565_v15  ;;  %5061 = vmatpush3.bf16.msra.mxu0 %v9399_v8  ;;  %5133 = vmatpush3.bf16.msra.mxu1 %v7312_v25  ;;  %v9400_v23 = vand.u32 4294901760, %v7111_v13  ;;  %v9403_v60 = vand.u32 4294901760, %v7128_v39 }
 0x2b6   : > { %9396 = vst [vmem:[#allocation63_spill] sm:$0xff] %v7799_v44  ;;  %9398 = vst [vmem:[#allocation65_spill] sm:$0xff] %v7804_v46  ;;  %5095 = vmatprep.subr.bf16.mxu0 %v5094_v24  ;;  %5135 = vmatprep.subr.bf16.mxu1 %v7383_v47  ;;  %v8841_v48 = vand.u32 4294901760, %v7782_v57  ;;  %v8840_v5 = vand.u32 4294901760, %v7787_v4  ;;  %v9404_v19 = vand.u32 4294901760, %v7749_v14  ;;  %v7834_v47 = vld [vmem:[#allocation6 + $0x118] sm:$0xff] }
 0x2b7   : > { %9394 = vst [vmem:[#allocation36_spill] sm:$0xff] %v7793_v53  ;;  %v5096_v62 = vpack.c.bf16 %v9401_v21, %v9400_v23  ;;  %v5098_v53 = vpack.c.bf16 %v9403_v60, %v9402_v41  ;;  %v9406_v0 = vand.u32 4294901760, %v7767_v35  ;;  %v533_v60 = vrot.slane %v7571_v50, %v532_v43  ;;  %v7852_v25 = vld [vmem:[#allocation6 + $0x1a0] sm:$0xff]  ;;  %v7854_v8 = vld [vmem:[#allocation6 + $0x1a8] sm:$0xff] }
 0x2b8   : > { %v7832_v24 = vsub.f32 %v7749_v14, %v9404_v19  ;;  %2783 = vmatmul.mubr.f32.vlgmr.msra.gmra.mrb[4].mxu0 %v7585_v20  ;;  %v9408_v41 = vand.u32 4294901760, %v7137_v3  ;;  %v9409_v23 = vand.u32 4294901760, %v7142_v38  ;;  %v9410_v19 = vand.u32 4294901760, %v7199_v34 }
 0x2b9   : > { %v7840_v39 = vsub.f32 %v7767_v35, %v9406_v0  ;;  %5097 = vmatpush3.bf16.msra.mxu0 %v5096_v62  ;;  %3057 = vmatprep.mubr.f32.mxu0 %v7582_v36  ;;  %v9411_v13 = vand.u32 4294901760, %v7206_v18  ;;  %v3396_v36 = vsub.f32 %v7782_v57, %v8841_v48  ;;  %v3403_v3 = vsub.f32 %v7787_v4, %v8840_v5 }
 0x2ba   : > { %9405 = vst [vmem:[#allocation37_spill] sm:$0xff] %v7832_v24  ;;  %v5100_v21 = vpack.c.bf16 %v9409_v23, %v9408_v41  ;;  %5137 = vmatpush3.bf16.msra.mxu1 %v7418_v55  ;;  %5099 = vmatprep.subr.bf16.mxu0 %v5098_v53  ;;  %v8842_v38 = vand.u32 4294901760, %v7834_v47  ;;  %v9412_v34 = vand.u32 4294901760, %v7807_v12  ;;  %v9414_v55 = vand.u32 4294901760, %v7224_v2 }
 0x2bb   : > { %9407 = vst [vmem:[#allocation68_spill] sm:$0xff] %v7840_v39  ;;  %v5102_v20 = vpack.c.bf16 %v9411_v13, %v9410_v19  ;;  %5139 = vmatprep.subr.bf16.mxu1 %v7424_v27  ;;  %v9415_v53 = vand.u32 4294901760, %v7229_v30  ;;  %v9416_v62 = vand.u32 4294901760, %v7799_v44  ;;  %v9417_v0 = vand.u32 4294901760, %v7804_v46  ;;  %v9426_v30 = vld [vmem:[#allocation15_spill] sm:$0xff] }
 0x2bc   : > { %v7867_v18 = vsub.f32 %v7807_v12, %v9412_v34  ;;  %v9418_v19 = vand.u32 4294901760, %v7240_v33  ;;  %v9419_v34 = vand.u32 4294901760, %v7245_v54  ;;  %v9423_v48 = vand.u32 4294901760, %v9344_v56 }
 0x2bd   : > { %v5104_v43 = vpack.c.bf16 %v9415_v53, %v9414_v55  ;;  %v3284_v13 = vsub.f32 %v7799_v44, %v9416_v62  ;;  %v3291_v41 = vsub.f32 %v7804_v46, %v9417_v0  ;;  %5101 = vmatpush3.bf16.msra.mxu0 %v5100_v21  ;;  %v9420_v53 = vand.u32 4294901760, %v7284_v49  ;;  %v9428_v55 = vld [vmem:[#allocation87_spill] sm:$0xff]  ;;  %v7908_v49 = vld [vmem:[#allocation6 + $0x120] sm:$0xff] }
 0x2be   : > { %9413 = vst [vmem:[#allocation66_spill] sm:$0xff] %v7867_v18  ;;  %v5106_v27 = vpack.c.bf16 %v9419_v34, %v9418_v19  ;;  %v9421_v62 = vand.u32 4294901760, %v9340_v40  ;;  %v9422_v0 = vand.u32 4294901760, %v9343_v61  ;;  %v9424_v54 = vand.u32 4294901760, %v9349_v45  ;;  %v9430_v40 = vld [vmem:[#allocation90_spill] sm:$0xff]  ;;  %5103 = vmatprep.subr.bf16.mxu0 %v5102_v20 }
 0x2bf   : > { %v9425_v19 = vand.u32 4294901760, %v9350_v58  ;;  %v9427_v2 = vand.u32 4294901760, %v9426_v30  ;;  %v9429_v21 = vand.u32 4294901760, %v9428_v55  ;;  %5141 = vmatpush3.bf16.msra.mxu1 %v9430_v40  ;;  %v3397_v61 = vand.u32 4294901760, %v3396_v36  ;;  %v7917_v45 = vld [vmem:[#allocation6 + $0x128] sm:$0xff]  ;;  %v7919_v30 = vld [vmem:[#allocation6 + $0x1b0] sm:$0xff] }
 0x2c0   : > { %v5108_v5 = vpack.c.bf16 %v9421_v62, %v9420_v53  ;;  %v5110_v33 = vpack.c.bf16 %v9423_v48, %v9422_v0  ;;  %v3404_v56 = vand.u32 4294901760, %v3403_v3  ;;  %v7915_v58 = vsub.f32 %v7834_v47, %v8842_v38  ;;  %v9433_v53 = vld [vmem:[#allocation91_spill] sm:$0xff] }
 0x2c1   : > { %v7900_v34 = vpack.c.bf16 %v9425_v19, %v9424_v54  ;;  %v7906_v23 = vpack.c.bf16 %v9429_v21, %v9427_v2  ;;  %v9432_v2 = vld [vmem:[#allocation99_spill] sm:$0xff]  ;;  %5143 = vmatprep.subr.bf16.mxu1 %v9433_v53  ;;  %v3285_v62 = vand.u32 4294901760, %v3284_v13  ;;  %v3292_v20 = vand.u32 4294901760, %v3291_v41  ;;  %v7942_v41 = vld [vmem:[#allocation6 + $0x1b8] sm:$0xff]  ;;  %5105 = vmatpush3.bf16.msra.mxu0 %v5104_v43 }
 0x2c2   : > { %9431 = vst [vmem:[#allocation71_spill] sm:$0xff] %v7915_v58  ;;  %v7922_v55 = vadd.f32 %v9432_v2, %v533_v60  ;;  %v9434_v36 = vand.u32 4294901760, %v7832_v24  ;;  %v9435_v0 = vand.u32 4294901760, %v7840_v39  ;;  %v9436_v19 = vand.u32 4294901760, %v7852_v25  ;;  %v9440_v2 = vld [vmem:[#allocation88_spill] sm:$0xff]  ;;  %5107 = vmatprep.subr.bf16.mxu0 %v5106_v27 }
 0x2c3   : > { %v9438_v60 = vand.u32 4294901760, %v7854_v8  ;;  %v9441_v53 = vand.u32 4294901760, %v9440_v2  ;;  %v9444_v48 = vand.u32 4294901760, %v7465_v10  ;;  %v9446_v13 = vld [vmem:[#allocation92_spill] sm:$0xff]  ;;  %v7959_v43 = vpack.c.bf16 %v3404_v56, %v3397_v61  ;;  %v7978_v56 = vld [vmem:[#allocation6 + $0x130] sm:$0xff] }
 0x2c4   : > { %v3410_v3 = vsub.f32 %v7832_v24, %v9434_v36  ;;  %v3417_v54 = vsub.f32 %v7840_v39, %v9435_v0  ;;  %v7934_v21 = vsub.f32 %v7852_v25, %v9436_v19  ;;  %v9442_v36 = vld [vmem:[#allocation89_spill] sm:$0xff]  ;;  %v9445_v19 = vand.u32 4294901760, %v7468_v9  ;;  %5145 = vmatpush3.bf16.msra.mxu1 %v9446_v13 }
 0x2c5   : > { %v7939_v40 = vsub.f32 %v7854_v8, %v9438_v60  ;;  %v9443_v38 = vand.u32 4294901760, %v9442_v36  ;;  %v8849_v60 = vand.u32 4294901760, %v7917_v45  ;;  %v8847_v24 = vand.u32 4294901760, %v7919_v30  ;;  %5109 = vmatpush3.bf16.msra.mxu0 %v5108_v5 }
 0x2c6   : > { %9437 = vst [vmem:[#allocation70_spill] sm:$0xff] %v7934_v21  ;;  %v7954_v39 = vpack.c.bf16 %v9445_v19, %v9444_v48  ;;  %v9447_v2 = vand.u32 4294901760, %v7470_v51  ;;  %v9449_v10 = vand.u32 4294901760, %v7867_v18  ;;  %v8848_v48 = vand.u32 4294901760, %v7915_v58  ;;  %v9450_v19 = vld [vmem:[#allocation93_spill] sm:$0xff]  ;;  %5111 = vmatprep.subr.bf16.mxu0 %v5110_v33 }
 0x2c7   : > { %9439 = vst [vmem:[#allocation16_spill] sm:$0xff] %v7939_v40  ;;  %v7948_v0 = vpack.c.bf16 %v9443_v38, %v9441_v53  ;;  %v9448_v38 = vand.u32 4294901760, %v7472_v37  ;;  %v2305_v36 = vmax.f32 %v7922_v55, 0.0  ;;  %5147 = vmatprep.subr.bf16.mxu1 %v9450_v19  ;;  %v7975_v27 = vpack.c.bf16 %v3292_v20, %v3285_v62  ;;  %v7980_v37 = vld [vmem:[#allocation6 + $0x138] sm:$0xff]  ;;  %v7989_v19 = vld [vmem:[#allocation6 + $0x1c0] sm:$0xff]  ;;  %v7991_v62 = vld [vmem:[#allocation6 + $0x1c8] sm:$0xff] }
 0x2c8   : > { %v7970_v9 = vsub.f32 %v7867_v18, %v9449_v10  ;;  %v3411_v61 = vand.u32 4294901760, %v3410_v3  ;;  %v3418_v13 = vand.u32 4294901760, %v3417_v54  ;;  %v9451_v10 = vand.u32 4294901760, %v7908_v49 }
 0x2c9   : > { %v7965_v53 = vpack.c.bf16 %v9448_v38, %v9447_v2  ;;  %v9453_v20 = vand.u32 4294901760, %v7484_v26  ;;  %v9454_v3 = vand.u32 4294901760, %v7486_v52  ;;  %v9455_v54 = vand.u32 4294901760, %v7494_v31  ;;  %v9459_v26 = vld [vmem:[#allocation94_spill] sm:$0xff]  ;;  %5113 = vmatpush3.bf16.msra.mxu0 %v7900_v34 }
 0x2ca   : > { %v7987_v55 = vsub.f32 %v7908_v49, %v9451_v10  ;;  %v9456_v38 = vand.u32 4294901760, %v7496_v28  ;;  %v8008_v10 = vsub.f32 %v7917_v45, %v8849_v60  ;;  %v8013_v5 = vsub.f32 %v7919_v30, %v8847_v24  ;;  %5149 = vmatpush3.bf16.msra.mxu1 %v9459_v26  ;;  %v9461_v24 = vld [vmem:[#allocation95_spill] sm:$0xff]  ;;  %5115 = vmatprep.subr.bf16.mxu0 %v7906_v23 }
 0x2cb   : > { %v7997_v51 = vpack.c.bf16 %v9454_v3, %v9453_v20  ;;  %v3299_v52 = vand.u32 4294901760, %v7970_v9  ;;  %v3305_v28 = vsub.f32 %v7915_v58, %v8848_v48  ;;  %v8022_v20 = vld [vmem:[#allocation6 + $0x140] sm:$0xff]  ;;  %v8024_v3 = vld [vmem:[#allocation6 + $0x148] sm:$0xff]  ;;  %5151 = vmatprep.subr.bf16.mxu1 %v9461_v24  ;;  %v9462_v33 = vand.u32 4294901760, %v7942_v41  ;;  %v8036_v60 = vld [vmem:[#allocation6 + $0x1d0] sm:$0xff] }
 0x2cc   : > { %9452 = vst [vmem:[#allocation17_spill] sm:$0xff] %v7987_v55  ;;  %v8003_v2 = vpack.c.bf16 %v9456_v38, %v9455_v54  ;;  %9457 = vst [vmem:[#allocation18_spill] sm:$0xff] %v8008_v10  ;;  %v8026_v54 = vand.u32 4294901760, %v2305_v36  ;;  %v8038_v38 = vld [vmem:[#allocation6 + $0x1d8] sm:$0xff]  ;;  %v5194_v31 = vpack.c.bf16 %v3418_v13, %v3411_v61  ;;  %v9465_v58 = vand.u32 4294901760, %v7934_v21 }
 0x2cd   : > { %9458 = vst [vmem:[#allocation19_spill] sm:$0xff] %v8013_v5  ;;  %9460 = vst [vmem:[#allocation20_spill] sm:$0xff] %v8024_v3  ;;  %v8032_v9 = vsub.f32 %v7942_v41, %v9462_v33  ;;  %v9466_v24 = vand.u32 4294901760, %v7939_v40  ;;  %v9467_v13 = vld [vmem:[#allocation96_spill] sm:$0xff]  ;;  %v9469_v33 = vand.u32 4294901760, %v7980_v37  ;;  %v9471_v26 = vand.u32 4294901760, %v7989_v19  ;;  %5117 = vmatpush3.bf16.msra.mxu0 %v7948_v0 }
 0x2ce   : > { %9463 = vst [vmem:[#allocation21_spill] sm:$0xff] %v8036_v60  ;;  %9464 = vst [vmem:[#allocation22_spill] sm:$0xff] %v8038_v38  ;;  %v3424_v18 = vsub.f32 %v7934_v21, %v9465_v58  ;;  %5153 = vmatpush3.bf16.msra.mxu1 %v9467_v13  ;;  %v9468_v58 = vand.u32 4294901760, %v7978_v56  ;;  %v8067_v61 = vsub.f32 %v2305_v36, %v8026_v54  ;;  %v9470_v13 = vld [vmem:[#allocation97_spill] sm:$0xff]  ;;  %v3306_v48 = vand.u32 4294901760, %v3305_v28 }
 0x2cf   : > { %v3431_v46 = vsub.f32 %v7939_v40, %v9466_v24  ;;  %v8062_v34 = vsub.f32 %v7980_v37, %v9469_v33  ;;  %5155 = vmatprep.subr.bf16.mxu1 %v9470_v13  ;;  %v9472_v40 = vand.u32 4294901760, %v7991_v62  ;;  %v9473_v36 = vand.u32 4294901760, %v7987_v55  ;;  %5119 = vmatprep.subr.bf16.mxu0 %v7954_v39 }
 0x2d0   : > { %v8057_v24 = vsub.f32 %v7978_v56, %v9468_v58  ;;  %v8074_v58 = vsub.f32 %v7989_v19, %v9471_v26  ;;  %v3425_v21 = vand.u32 4294901760, %v3424_v18  ;;  %v9474_v13 = vand.u32 4294901760, %v8008_v10 }
 0x2d1   : > { %v8079_v33 = vsub.f32 %v7991_v62, %v9472_v40  ;;  %v3432_v44 = vand.u32 4294901760, %v3431_v46  ;;  %v3312_v4 = vsub.f32 %v7987_v55, %v9473_v36  ;;  %v9475_v26 = vand.u32 4294901760, %v8013_v5  ;;  %5121 = vmatpush3.bf16.msra.mxu0 %v7965_v53 }
 0x2d2   : > { %v3319_v23 = vsub.f32 %v8008_v10, %v9474_v13  ;;  %v9476_v40 = vand.u32 4294901760, %v8022_v20  ;;  %v9477_v46 = vand.u32 4294901760, %v8024_v3  ;;  %5157 = vmatpush3.bf16.msra.mxu1 %v7551_v29  ;;  %v9478_v13 = vand.u32 4294901760, %v8036_v60  ;;  %5123 = vmatprep.subr.bf16.mxu0 %v7997_v51 }
 0x2d3   : > { %v3438_v57 = vsub.f32 %v8013_v5, %v9475_v26  ;;  %5191 = vmatprep.subr.bf16.mxu1 %v7959_v43  ;;  %v9480_v39 = vand.u32 4294901760, %v8032_v9  ;;  %v8875_v0 = vand.u32 4294901760, %v8079_v33  ;;  %v5196_v10 = vpack.c.bf16 %v3306_v48, %v3299_v52  ;;  %v9483_v43 = vld [vmem:[#allocation100_spill] sm:$0xff] }
 0x2d4   : > { %v8094_v28 = vsub.f32 %v8022_v20, %v9476_v40  ;;  %v8099_v18 = vsub.f32 %v8024_v3, %v9477_v46  ;;  %v8108_v26 = vsub.f32 %v8036_v60, %v9478_v13  ;;  %v9479_v40 = vand.u32 4294901760, %v8038_v38 }
 0x2d5   : > { %v3445_v46 = vsub.f32 %v8032_v9, %v9480_v39  ;;  %v9481_v13 = vand.u32 4294901760, %v7682_v42  ;;  %v9482_v55 = vand.u32 4294901760, %v7694_v6  ;;  %3163 = vmatmul.mubr.f32.vlgmr.msra.gmra.mrb[6].mxu1 %v9483_v43  ;;  %v3320_v29 = vand.u32 4294901760, %v3319_v23  ;;  %5125 = vmatpush3.bf16.msra.mxu0 %v8003_v2 }
 0x2d6   : > { %v8113_v5 = vsub.f32 %v8038_v38, %v9479_v40  ;;  %v5198_v40 = vpack.c.bf16 %v3432_v44, %v3425_v21  ;;  %v3313_v38 = vand.u32 4294901760, %v3312_v4  ;;  %v3439_v3 = vand.u32 4294901760, %v3438_v57  ;;  %5193 = vmatpush3.bf16.msra.mxu1 %v7975_v27  ;;  %3505 = vmatprep.mubr.f32.mxu1 %v8026_v54 }
 0x2d7   : > { %v8126_v60 = vpack.c.bf16 %v9482_v55, %v9481_v13  ;;  %v3339_v39 = vand.u32 4294901760, %v8094_v28  ;;  %v3346_v36 = vand.u32 4294901760, %v8099_v18  ;;  %v9484_v6 = vand.u32 4294901760, %v8057_v24  ;;  %5195 = vmatprep.subr.bf16.mxu1 %v5194_v31 }
 0x2d8   : > { %v9485_v4 = vand.u32 4294901760, %v8062_v34  ;;  %v3465_v21 = vand.u32 4294901760, %v8108_v26  ;;  %v3472_v57 = vand.u32 4294901760, %v8113_v5  ;;  %v9486_v53 = vand.u32 4294901760, %v8067_v61  ;;  %3059 = vmatmul.mubr.f32.vlgmr.msra.gmra.mrb[6].mxu0 %v9483_v43 }
 0x2d9   : > { %v3326_v42 = vsub.f32 %v8057_v24, %v9484_v6  ;;  %v3446_v27 = vand.u32 4294901760, %v3445_v46  ;;  %v9487_v55 = vand.u32 4294901760, %v8074_v58  ;;  %v3459_v23 = vsub.f32 %v8079_v33, %v8875_v0  ;;  %5159 = vmatprep.subr.bf16.mxu0 %v8126_v60 }
 0x2da   : > { %v3333_v44 = vsub.f32 %v8062_v34, %v9485_v4  ;;  %v3267_v48 = vsub.f32 %v8067_v61, %v9486_v53  ;;  %v528_v13 = vsub.s32 2, %v7565_v15  ;;  %v9488_v6 = vand.u32 4294901760, %v7712_v22  ;;  %5197 = vmatpush3.bf16.msra.mxu1 %v5196_v10 }
 0x2db   : > { %v3452_v52 = vsub.f32 %v8074_v58, %v9487_v55  ;;  %v9489_v51 = vand.u32 4294901760, %v7714_v7  ;;  %v5200_v4 = vpack.c.bf16 %v3320_v29, %v3313_v38  ;;  %v9490_v46 = vand.u32 4294901760, %v7749_v14  ;;  %5199 = vmatprep.subr.bf16.mxu1 %v5198_v40 }
 0x2dc   : > { %v9491_v53 = vand.u32 4294901760, %v7767_v35  ;;  %v3340_v0 = vsub.f32 %v8094_v28, %v3339_v39  ;;  %v3347_v15 = vsub.f32 %v8099_v18, %v3346_v36  ;;  %v3327_v7 = vand.u32 4294901760, %v3326_v42 }
 0x2dd   : > { %v8157_v31 = vpack.c.bf16 %v9489_v51, %v9488_v6  ;;  %v3334_v22 = vand.u32 4294901760, %v3333_v44  ;;  %v3466_v14 = vsub.f32 %v8108_v26, %v3465_v21  ;;  %v3473_v35 = vsub.f32 %v8113_v5, %v3472_v57 }
 0x2de   : > { %v8164_v55 = vpack.c.bf16 %v9491_v53, %v9490_v46  ;;  %v3268_v2 = vand.u32 4294901760, %v3267_v48  ;;  %v5202_v38 = vpack.c.bf16 %v3446_v27, %v3439_v3  ;;  %v3453_v29 = vand.u32 4294901760, %v3452_v52  ;;  %5201 = vmatpush3.bf16.msra.mxu1 %v5200_v4 }
 0x2df   : > { %v3460_v6 = vand.u32 4294901760, %v3459_v23  ;;  %v529_v51 = vrot.slane %v7571_v50, %v528_v13  ;;  %v9492_v10 = vand.u32 4294901760, %v7807_v12  ;;  %v9493_v42 = vand.u32 4294901760, %v7834_v47  ;;  %5161 = vmatpush3.bf16.msra.mxu0 %v8157_v31 }
 0x2e0   : > { %3269 = vmatprep.mubr.f32.mxu0 %v3268_v2  ;;  %v3341_v46 = vand.u32 4294901760, %v3340_v0  ;;  %v3348_v53 = vand.u32 4294901760, %v3347_v15  ;;  %v9494_v40 = vand.u32 4294901760, %v7646_v17  ;;  %v9495_v48 = vand.u32 4294901760, %v7651_v16  ;;  %5163 = vmatprep.subr.bf16.mxu0 %v8164_v55 }
 0x2e1   : > { %v8185_v44 = vpack.c.bf16 %v9493_v42, %v9492_v10  ;;  %v5204_v12 = vpack.c.bf16 %v3334_v22, %v3327_v7  ;;  %v9496_v47 = vand.u32 4294901760, %v7852_v25  ;;  %v9497_v43 = vand.u32 4294901760, %v7854_v8  ;;  %5203 = vmatprep.subr.bf16.mxu1 %v5202_v38 }
 0x2e2   : > { %v3354_v3 = vsub.f32 %v7646_v17, %v9494_v40  ;;  %v3361_v50 = vsub.f32 %v7651_v16, %v9495_v48  ;;  %v3467_v0 = vand.u32 4294901760, %v3466_v14  ;;  %v3474_v52 = vand.u32 4294901760, %v3473_v35 }
 0x2e3   : > { %v8199_v27 = vpack.c.bf16 %v9497_v43, %v9496_v47  ;;  %v5206_v23 = vpack.c.bf16 %v3460_v6, %v3453_v29  ;;  %v9498_v13 = vand.u32 4294901760, %v7667_v11  ;;  %v9499_v2 = vand.u32 4294901760, %v7672_v59  ;;  %5165 = vmatpush3.bf16.msra.mxu0 %v8185_v44  ;;  %5205 = vmatpush3.bf16.msra.mxu1 %v5204_v12 }
 0x2e4   : > { %v9500_v7 = vand.u32 4294901760, %v7908_v49  ;;  %v9501_v25 = vand.u32 4294901760, %v7917_v45  ;;  %v9502_v8 = vand.u32 4294901760, %v7919_v30  ;;  %v9503_v14 = vand.u32 4294901760, %v7942_v41  ;;  %v9505_v49 = vld [vmem:[#allocation98_spill] sm:$0xff]  ;;  %v9506_v30 = vld [vmem:[#allocation109_spill] sm:$0xff] }
 0x2e5   : > { %v3480_v15 = vsub.f32 %v7667_v11, %v9498_v13  ;;  %v3487_v4 = vsub.f32 %v7672_v59, %v9499_v2  ;;  %v5208_v38 = vpack.c.bf16 %v3348_v53, %v3341_v46  ;;  %v3355_v29 = vand.u32 4294901760, %v3354_v3  ;;  %5167 = vmatprep.subr.bf16.mxu0 %v8199_v27  ;;  %5207 = vmatprep.subr.bf16.mxu1 %v5206_v23 }
 0x2e6   : > { %v8211_v22 = vpack.c.bf16 %v9501_v25, %v9500_v7  ;;  %v8217_v35 = vpack.c.bf16 %v9503_v14, %v9502_v8  ;;  %v3362_v6 = vand.u32 4294901760, %v3361_v50  ;;  %v9504_v10 = vand.u32 4294901760, %v7687_v1  ;;  %v9514_v25 = vld [vmem:[#allocation45_spill] sm:$0xff] }
 0x2e7   : > { %v5352_v40 = vadd.f32 %v9505_v49, %v529_v51  ;;  %v5210_v45 = vpack.c.bf16 %v3474_v52, %v3467_v0  ;;  %v9507_v48 = vand.u32 4294901760, %v9506_v30  ;;  %v3481_v47 = vand.u32 4294901760, %v3480_v15  ;;  %5209 = vmatpush3.bf16.msra.mxu1 %v5208_v38  ;;  %v9519_v38 = vld [vmem:[#allocation20_spill] sm:$0xff] }
 0x2e8   : > { %v3368_v42 = vsub.f32 %v7687_v1, %v9504_v10  ;;  %v3488_v43 = vand.u32 4294901760, %v3487_v4  ;;  %v9508_v46 = vand.u32 4294901760, %v7699_v32  ;;  %v9509_v3 = vand.u32 4294901760, %v7704_v63  ;;  %5169 = vmatpush3.bf16.msra.mxu0 %v8211_v22 }
 0x2e9   : > { %v3375_v41 = vsub.f32 %v9506_v30, %v9507_v48  ;;  %v9510_v51 = vand.u32 4294901760, %v7978_v56  ;;  %v9511_v12 = vand.u32 4294901760, %v7980_v37  ;;  %v5212_v52 = vpack.c.bf16 %v3362_v6, %v3355_v29  ;;  %5171 = vmatprep.subr.bf16.mxu0 %v8217_v35  ;;  %v9516_v37 = vld [vmem:[#allocation47_spill] sm:$0xff]  ;;  %5211 = vmatprep.subr.bf16.mxu1 %v5210_v45 }
 0x2ea   : > { %v3494_v53 = vsub.f32 %v7699_v32, %v9508_v46  ;;  %v3501_v50 = vsub.f32 %v7704_v63, %v9509_v3  ;;  %v9512_v23 = vand.u32 4294901760, %v7989_v19  ;;  %v9513_v13 = vand.u32 4294901760, %v7991_v62 }
 0x2eb   : > { %v8239_v0 = vpack.c.bf16 %v9511_v12, %v9510_v51  ;;  %v3369_v2 = vand.u32 4294901760, %v3368_v42  ;;  %v2304_v4 = vmax.f32 %v5352_v40, 0.0  ;;  %v3376_v7 = vand.u32 4294901760, %v3375_v41  ;;  %v9521_v40 = vld [vmem:[#allocation21_spill] sm:$0xff]  ;;  %v9523_v41 = vld [vmem:[#allocation22_spill] sm:$0xff]  ;;  %5213 = vmatpush3.bf16.msra.mxu1 %v5212_v52 }
 0x2ec   : > { %v8245_v15 = vpack.c.bf16 %v9513_v13, %v9512_v23  ;;  %v9515_v8 = vand.u32 4294901760, %v9514_v25  ;;  %v9517_v14 = vand.u32 4294901760, %v9516_v37  ;;  %v5214_v19 = vpack.c.bf16 %v3488_v43, %v3481_v47  ;;  %v9527_v12 = vld [vmem:[#allocation102_spill] sm:$0xff] }
 0x2ed   : > { %v3495_v6 = vand.u32 4294901760, %v3494_v53  ;;  %v3502_v62 = vand.u32 4294901760, %v3501_v50  ;;  %5173 = vmatpush3.bf16.msra.mxu0 %v8239_v0  ;;  %v9518_v10 = vand.u32 4294901760, %v8022_v20  ;;  %v9520_v42 = vand.u32 4294901760, %v9519_v38  ;;  %v9525_v53 = vld [vmem:[#allocation101_spill] sm:$0xff] }
 0x2ee   : > { %v3382_v56 = vsub.f32 %v9514_v25, %v9515_v8  ;;  %v3389_v29 = vsub.f32 %v9516_v37, %v9517_v14  ;;  %v9522_v48 = vand.u32 4294901760, %v9521_v40  ;;  %v9524_v46 = vand.u32 4294901760, %v9523_v41  ;;  %5175 = vmatprep.subr.bf16.mxu0 %v8245_v15  ;;  %5215 = vmatprep.subr.bf16.mxu1 %v5214_v19  ;;  %v9533_v19 = vld [vmem:[#allocation105_spill] sm:$0xff] }
 0x2ef   : > { %v8259_v49 = vpack.c.bf16 %v9520_v42, %v9518_v10  ;;  %v8267_v51 = vand.u32 4294901760, %v2304_v4  ;;  %v5216_v45 = vpack.c.bf16 %v3376_v7, %v3369_v2  ;;  %v5218_v20 = vpack.c.bf16 %v3502_v62, %v3495_v6  ;;  %v9529_v2 = vld [vmem:[#allocation103_spill] sm:$0xff]  ;;  %v9535_v62 = vld [vmem:[#allocation106_spill] sm:$0xff] }
 0x2f0   : > { %v8265_v3 = vpack.c.bf16 %v9524_v46, %v9522_v48  ;;  %v3383_v47 = vand.u32 4294901760, %v3382_v56  ;;  %v3390_v43 = vand.u32 4294901760, %v3389_v29  ;;  %v9526_v50 = vand.u32 4294901760, %v9525_v53  ;;  %v9531_v56 = vld [vmem:[#allocation104_spill] sm:$0xff]  ;;  %v9537_v42 = vld [vmem:[#allocation107_spill] sm:$0xff]  ;;  %v9539_v48 = vld [vmem:[#allocation74_spill] sm:$0xff] }
 0x2f1   : > { %5177 = vmatpush3.bf16.msra.mxu0 %v8259_v49  ;;  %v9528_v23 = vand.u32 4294901760, %v9527_v12  ;;  %v8278_v8 = vsub.f32 %v2304_v4, %v8267_v51  ;;  %5217 = vmatpush3.bf16.msra.mxu1 %v5216_v45  ;;  %v9530_v7 = vand.u32 4294901760, %v9529_v2  ;;  %v9532_v14 = vand.u32 4294901760, %v9531_v56  ;;  %v9541_v45 = vld [vmem:[#allocation77_spill] sm:$0xff] }
 0x2f2   : > { %5179 = vmatprep.subr.bf16.mxu0 %v8265_v3  ;;  %v5220_v52 = vpack.c.bf16 %v3390_v43, %v3383_v47  ;;  %5219 = vmatprep.subr.bf16.mxu1 %v5218_v20  ;;  %v9534_v6 = vand.u32 4294901760, %v9533_v19  ;;  %v9536_v10 = vand.u32 4294901760, %v9535_v62  ;;  %v9538_v40 = vand.u32 4294901760, %v9537_v42  ;;  %v9543_v43 = vld [vmem:[#allocation108_spill] sm:$0xff]  ;;  %v9549_v56 = vld [vmem:[#allocation65_spill] sm:$0xff]  ;;  %v9552_v42 = vld [vmem:[#allocation66_spill] sm:$0xff] }
 0x2f3   : > { %v8275_v13 = vpack.c.bf16 %v9528_v23, %v9526_v50  ;;  %v8285_v29 = vpack.c.bf16 %v9532_v14, %v9530_v7  ;;  %v3272_v4 = vand.u32 4294901760, %v8278_v8  ;;  %v9540_v41 = vand.u32 4294901760, %v9539_v48  ;;  %v9546_v23 = vld [vmem:[#allocation61_spill] sm:$0xff]  ;;  %v9548_v7 = vld [vmem:[#allocation63_spill] sm:$0xff]  ;;  %v9551_v62 = vld [vmem:[#allocation68_spill] sm:$0xff] }
 0x2f4   : > { %v8292_v38 = vpack.c.bf16 %v9536_v10, %v9534_v6  ;;  %v9542_v47 = vand.u32 4294901760, %v9541_v45  ;;  %v9544_v20 = vand.u32 4294901760, %v9543_v43  ;;  %v9545_v12 = vand.u32 4294901760, %v8067_v61  ;;  %v9550_v6 = vld [vmem:[#allocation37_spill] sm:$0xff]  ;;  %v9555_v45 = vld [vmem:[#allocation16_spill] sm:$0xff] }
 0x2f5   : > { %5181 = vmatpush3.bf16.msra.mxu0 %v8275_v13  ;;  %5221 = vmatpush3.bf16.msra.mxu1 %v5220_v52  ;;  %v8301_v46 = vpack.c.bf16 %v9540_v41, %v9538_v40  ;;  %v3273_v50 = vsub.f32 %v8278_v8, %v3272_v4  ;;  %v9547_v52 = vld [vmem:[#allocation60_spill] sm:$0xff]  ;;  %v5224_v14 = vpack.c.bf16 %v9549_v56, %v9548_v7  ;;  %v9553_v40 = vld [vmem:[#allocation71_spill] sm:$0xff]  ;;  %v9554_v41 = vld [vmem:[#allocation70_spill] sm:$0xff] }
 0x2f6   : > { %5183 = vmatprep.subr.bf16.mxu0 %v8285_v29  ;;  %5255 = vmatprep.subr.bf16.mxu1 %v8126_v60  ;;  %v8309_v53 = vpack.c.bf16 %v9544_v20, %v9542_v47  ;;  %v5222_v2 = vpack.c.bf16 %v9547_v52, %v9546_v23  ;;  %v5226_v10 = vpack.c.bf16 %v9551_v62, %v9550_v6  ;;  %v9556_v43 = vld [vmem:[#allocation17_spill] sm:$0xff]  ;;  %v9557_v20 = vld [vmem:[#allocation18_spill] sm:$0xff] }
 0x2f7   : > { %v3274_v19 = vand.u32 4294901760, %v3273_v50  ;;  %v5228_v48 = vpack.c.bf16 %v9553_v40, %v9552_v42  ;;  %v5230_v47 = vpack.c.bf16 %v9555_v45, %v9554_v41  ;;  %v5232_v50 = vpack.c.bf16 %v9557_v20, %v9556_v43 }
 0x2f8   : > { %3507 = vmatmul.mubr.f32.vlgmr.msra.gmra.mrb[8].mxu1 %v8267_v51 }
 0x2f9   : > { %5185 = vmatpush3.bf16.msra.mxu0 %v8292_v38  ;;  %5257 = vmatpush3.bf16.msra.mxu1 %v8157_v31 }
 0x2fa   : > { %3749 = vmatprep.mubr.f32.mxu1 %v9545_v12  ;;  %5187 = vmatprep.subr.bf16.mxu0 %v8301_v46  ;;  %v9558_v12 = vld [vmem:[#allocation19_spill] sm:$0xff] }
 0x2fb   : > { %5259 = vmatprep.subr.bf16.mxu1 %v8164_v55 }
 0x2fd   : > { %5189 = vmatpush3.bf16.msra.mxu0 %v8309_v53  ;;  %5261 = vmatpush3.bf16.msra.mxu1 %v8185_v44 }
 0x2fe   : > { %5223 = vmatprep.subr.bf16.mxu0 %v5222_v2  ;;  %5263 = vmatprep.subr.bf16.mxu1 %v8199_v27  ;;  %v5236_v2 = vpack.c.bf16 %v8062_v34, %v8057_v24 }
 0x300   : > { %3275 = vmatmul.mubr.f32.vlgmr.msra.gmra.mrb[8].mxu0 %v3274_v19  ;;  %v5240_v19 = vpack.c.bf16 %v8099_v18, %v8094_v28  ;;  %v9581_v28 = vld [vmem:[#allocation36_spill] sm:$0xff] }
 0x301   : > { %5225 = vmatpush3.bf16.msra.mxu0 %v5224_v14  ;;  %3642 = vmatprep.mubr.f32.mxu0 %v8067_v61  ;;  %v5234_v61 = vpack.c.bf16 %v8032_v9, %v9558_v12  ;;  %v5238_v14 = vpack.c.bf16 %v8079_v33, %v8074_v58 }
 0x302   : > { %5265 = vmatpush3.bf16.msra.mxu1 %v8211_v22  ;;  %5227 = vmatprep.subr.bf16.mxu0 %v5226_v10  ;;  %v5242_v10 = vpack.c.bf16 %v8113_v5, %v8108_v26  ;;  %v9580_v5 = vld [vmem:[#allocation57_spill] sm:$0xff] }
 0x303   : > { %5267 = vmatprep.subr.bf16.mxu1 %v8217_v35 }
 0x305   : > { %5229 = vmatpush3.bf16.msra.mxu0 %v5228_v48  ;;  %v5244_v48 = vpack.c.bf16 %v7651_v16, %v7646_v17  ;;  %v5250_v16 = vpack.c.bf16 %v7704_v63, %v7699_v32  ;;  %v5252_v17 = vpack.c.bf16 %v9516_v37, %v9514_v25  ;;  %v9561_v63 = vand.u32 4294901760, %v9548_v7 }
 0x306   : > { %5269 = vmatpush3.bf16.msra.mxu1 %v8239_v0  ;;  %5231 = vmatprep.subr.bf16.mxu0 %v5230_v47  ;;  %v5246_v47 = vpack.c.bf16 %v7672_v59, %v7667_v11  ;;  %v9559_v59 = vand.u32 4294901760, %v9546_v23  ;;  %v9562_v32 = vand.u32 4294901760, %v9549_v56  ;;  %v9566_v37 = vand.u32 4294901760, %v9553_v40 }
 0x307   : > { %5271 = vmatprep.subr.bf16.mxu1 %v8245_v15  ;;  %v9568_v23 = vand.u32 4294901760, %v9555_v45  ;;  %v9571_v7 = vand.u32 4294901760, %v9558_v12 }
 0x309   : > { %5233 = vmatpush3.bf16.msra.mxu0 %v5232_v50  ;;  %v5248_v50 = vpack.c.bf16 %v9506_v30, %v7687_v1  ;;  %v9560_v1 = vand.u32 4294901760, %v9547_v52  ;;  %v9564_v30 = vand.u32 4294901760, %v9551_v62 }
 0x30a   : > { %5273 = vmatpush3.bf16.msra.mxu1 %v8259_v49  ;;  %5235 = vmatprep.subr.bf16.mxu0 %v5234_v61 }
 0x30b   : > { %5275 = vmatprep.subr.bf16.mxu1 %v8265_v3  ;;  %v5286_v11 = vpack.c.bf16 %v9560_v1, %v9559_v59 }
 0x30d   : > { %5237 = vmatpush3.bf16.msra.mxu0 %v5236_v2 }
 0x30e   : > { %5277 = vmatpush3.bf16.msra.mxu1 %v8275_v13  ;;  %5239 = vmatprep.subr.bf16.mxu0 %v5238_v14 }
 0x30f   : > { %5279 = vmatprep.subr.bf16.mxu1 %v8285_v29 }
 0x311   : > { %5241 = vmatpush3.bf16.msra.mxu0 %v5240_v19 }
 0x312   : > { %5281 = vmatpush3.bf16.msra.mxu1 %v8292_v38  ;;  %5243 = vmatprep.subr.bf16.mxu0 %v5242_v10 }
 0x313   : > { %5283 = vmatprep.subr.bf16.mxu1 %v8301_v46 }
 0x315   : > { %5245 = vmatpush3.bf16.msra.mxu0 %v5244_v48 }
 0x316   : > { %5285 = vmatpush3.bf16.msra.mxu1 %v8309_v53  ;;  %5247 = vmatprep.subr.bf16.mxu0 %v5246_v47 }
 0x317   : > { %5319 = vmatprep.subr.bf16.mxu1 %v8126_v60  ;;  %v5288_v60 = vpack.c.bf16 %v9562_v32, %v9561_v63 }
 0x319   : > { %3753 = vmatmul.mubr.f32.vlgmr.msra.gmra.mrb[10].mxu1 %v3272_v4  ;;  %5249 = vmatpush3.bf16.msra.mxu0 %v5248_v50 }
 0x31a   : > { %5321 = vmatpush3.bf16.msra.mxu1 %v8157_v31  ;;  %4023 = vmatprep.mubr.f32.mxu1 %v8026_v54  ;;  %v9563_v31 = vand.u32 4294901760, %v9550_v6  ;;  %v9573_v6 = vand.u32 4294901760, %v8057_v24  ;;  %v5306_v24 = vpack.c.bf16 %v3472_v57, %v3465_v21  ;;  %v4153_v21 = vld [vmem:[%s8496_s5] ss:$0 sm:$0xff] }
 0x31b   : > { %5251 = vmatprep.subr.bf16.mxu0 %v5250_v16  ;;  %5323 = vmatprep.subr.bf16.mxu1 %v8164_v55  ;;  %v9565_v55 = vand.u32 4294901760, %v9552_v42  ;;  %v9575_v42 = vand.u32 4294901760, %v8074_v58  ;;  %v9578_v58 = vld [vmem:[#allocation46_spill] sm:$0xff] }
 0x31c   : > { %v5290_v25 = vpack.c.bf16 %v9564_v30, %v9563_v31 }
 0x31d   : > { %5253 = vmatpush3.bf16.msra.mxu0 %v5252_v17  ;;  %v5292_v4 = vpack.c.bf16 %v9566_v37, %v9565_v55 }
 0x31e   : > { %5325 = vmatpush3.bf16.msra.mxu1 %v8185_v44  ;;  %5287 = vmatprep.subr.bf16.mxu0 %v5286_v11  ;;  %v9567_v44 = vand.u32 4294901760, %v9554_v41 }
 0x31f   : > { %5327 = vmatprep.subr.bf16.mxu1 %v8199_v27  ;;  %v9569_v27 = vand.u32 4294901760, %v9556_v43 }
 0x320   : > { %3645 = vmatmul.mubr.f32.vlgmr.msra.gmra.mrb[10].mxu0 %v8278_v8  ;;  %v5294_v52 = vpack.c.bf16 %v9568_v23, %v9567_v44 }
 0x321   : > { %5289 = vmatpush3.bf16.msra.mxu0 %v5288_v60  ;;  %3919 = vmatprep.mubr.f32.mxu0 %v8026_v54  ;;  %v9570_v54 = vand.u32 4294901760, %v9557_v20 }
 0x322   : > { %5329 = vmatpush3.bf16.msra.mxu1 %v8211_v22  ;;  %5291 = vmatprep.subr.bf16.mxu0 %v5290_v25  ;;  %v9572_v22 = vand.u32 4294901760, %v8032_v9  ;;  %v5304_v9 = vpack.c.bf16 %v3346_v36, %v3339_v39 }
 0x323   : > { %5331 = vmatprep.subr.bf16.mxu1 %v8217_v35  ;;  %v5296_v8 = vpack.c.bf16 %v9570_v54, %v9569_v27  ;;  %v9574_v35 = vand.u32 4294901760, %v8062_v34  ;;  %v9577_v34 = vld [vmem:[#allocation110_spill] sm:$0xff] }
 0x324   : > { %v5298_v56 = vpack.c.bf16 %v9572_v22, %v9571_v7  ;;  %v9582_v22 = vld [vmem:[#allocation39_spill] sm:$0xff] }
 0x325   : > { %5293 = vmatpush3.bf16.msra.mxu0 %v5292_v4  ;;  %v5300_v62 = vpack.c.bf16 %v9574_v35, %v9573_v6 }
 0x326   : > { %5333 = vmatpush3.bf16.msra.mxu1 %v8239_v0  ;;  %5295 = vmatprep.subr.bf16.mxu0 %v5294_v52  ;;  %v9576_v0 = vand.u32 4294901760, %v8079_v33  ;;  %v9579_v33 = vld [vmem:[#allocation48_spill] sm:$0xff] }
 0x327   : > { %5335 = vmatprep.subr.bf16.mxu1 %v8245_v15 }
 0x328   : > { %v5302_v40 = vpack.c.bf16 %v9576_v0, %v9575_v42 }
 0x329   : > { %5297 = vmatpush3.bf16.msra.mxu0 %v5296_v8 }
 0x32a   : > { %5337 = vmatpush3.bf16.msra.mxu1 %v8259_v49  ;;  %5299 = vmatprep.subr.bf16.mxu0 %v5298_v56 }
 0x32b   : > { %5339 = vmatprep.subr.bf16.mxu1 %v8265_v3 }
 0x32d   : > { %5301 = vmatpush3.bf16.msra.mxu0 %v5300_v62 }
 0x32e   : > { %5341 = vmatpush3.bf16.msra.mxu1 %v8275_v13  ;;  %5303 = vmatprep.subr.bf16.mxu0 %v5302_v40 }
 0x32f   : > { %5343 = vmatprep.subr.bf16.mxu1 %v8285_v29 }
 0x331   : > { %5305 = vmatpush3.bf16.msra.mxu0 %v5304_v9 }
 0x332   : > { %5345 = vmatpush3.bf16.msra.mxu1 %v8292_v38  ;;  %5307 = vmatprep.subr.bf16.mxu0 %v5306_v24 }
 0x333   : > { %5347 = vmatprep.subr.bf16.mxu1 %v8301_v46 }
 0x335   : > { %5309 = vmatpush3.bf16.msra.mxu0 %v9577_v34 }
 0x336   : > { %5349 = vmatpush3.bf16.msra.mxu1 %v8309_v53  ;;  %5311 = vmatprep.subr.bf16.mxu0 %v9578_v58 }
 0x339   : > { %4025 = vmatmul.mubr.f32.vlgmr.msra.gmra.mrb[12].mxu1 %v8267_v51  ;;  %5313 = vmatpush3.bf16.msra.mxu0 %v9579_v33 }
 0x33a   : > { %5315 = vmatprep.subr.bf16.mxu0 %v9580_v5  ;;  %v4156_v5 = vld [vmem:[%s8499_s8] ss:$0 sm:$0xff] }
 0x33d   : > { %5317 = vmatpush3.bf16.msra.mxu0 %v9581_v28 }
 0x340   : > { %3921 = vmatmul.mubr.f32.vlgmr.msra.gmra.mrb[12].mxu0 %v8267_v51 }
 0x362   : > { %v4229_v18 = vpop.f32.mrb[2].mxu1 }
 0x363   : > { %v4230_v36 = vpop.f32.mrb[3].mxu1 }
 0x364   : > { %v4231_v26 = vadd.f32 %v4230_v36, %v4229_v18  ;;  %v4157_v18 = vld [vmem:[%s8500_s9] ss:$0 sm:$0xff] }
 0x36a   : > { %v4194_v39 = vpop.f32.mrb[2].mxu0 }
 0x36b   : > { %v4195_v57 = vpop.f32.mrb[3].mxu0 }
 0x36c   : > { %v4196_v15 = vadd.f32 %v4195_v57, %v4194_v39 }
 0x36e   : > { %v2415_v49 = vadd.f32 %v4196_v15, %v4153_v21 }
 0x370   : > { %v2647_v3 = vadd.f32 %v4231_v26, %v2415_v49 }
 0x383   : > { %v4299_v13 = vpop.f32.mrb[4].mxu1 }
 0x384   : > { %v4300_v29 = vpop.f32.mrb[5].mxu1 }
 0x385   : > { %v4301_v38 = vadd.f32 %v4300_v29, %v4299_v13 }
 0x38b   : > { %v4264_v46 = vpop.f32.mrb[4].mxu0 }
 0x38c   : > { %v4265_v53 = vpop.f32.mrb[5].mxu0 }
 0x38d   : > { %v4266_v41 = vadd.f32 %v4265_v53, %v4264_v46 }
 0x38f   : > { %v2785_v45 = vadd.f32 %v4266_v41, %v2647_v3 }
 0x391   : > { %v2893_v51 = vadd.f32 %v4301_v38, %v2785_v45 }
 0x3a8   : > { %v4369_v43 = vpop.f32.mrb[6].mxu1 }
 0x3a9   : > { %v4370_v20 = vpop.f32.mrb[7].mxu1 }
 0x3aa   : > { %v4371_v12 = vadd.f32 %v4370_v20, %v4369_v43 }
 0x3ab   : > { %v4334_v61 = vpop.f32.mrb[6].mxu0 }
 0x3ac   : > { %v4335_v2 = vpop.f32.mrb[7].mxu0 }
 0x3ad   : > { %v4336_v14 = vadd.f32 %v4335_v2, %v4334_v61 }
 0x3af   : > { %v3061_v19 = vadd.f32 %v4336_v14, %v2893_v51 }
 0x3b1   : > { %v3165_v10 = vadd.f32 %v4371_v12, %v3061_v19 }
 0x3cb   : > { %v4439_v48 = vpop.f32.mrb[8].mxu1 }
 0x3cc   : > { %v4440_v47 = vpop.f32.mrb[9].mxu1 }
 0x3cd   : > { %v4441_v50 = vadd.f32 %v4440_v47, %v4439_v48 }
 0x3d3   : > { %v4404_v16 = vpop.f32.mrb[8].mxu0 }
 0x3d4   : > { %v4405_v17 = vpop.f32.mrb[9].mxu0 }
 0x3d5   : > { %v4406_v59 = vadd.f32 %v4405_v17, %v4404_v16 }
 0x3d7   : > { %v3277_v1 = vadd.f32 %v4406_v59, %v3165_v10 }
 0x3d9   : > { %v3509_v11 = vadd.f32 %v4441_v50, %v3277_v1 }
 0x3ec   : > { %v4509_v63 = vpop.f32.mrb[10].mxu1 }
 0x3ed   : > { %v4510_v32 = vpop.f32.mrb[11].mxu1 }
 0x3ee   : > { %v4511_v60 = vadd.f32 %v4510_v32, %v4509_v63 }
 0x3f3   : > { %v4474_v31 = vpop.f32.mrb[10].mxu0 }
 0x3f4   : > { %v4475_v30 = vpop.f32.mrb[11].mxu0 }
 0x3f5   : > { %v4476_v25 = vadd.f32 %v4475_v30, %v4474_v31 }
 0x3f7   : > { %v3647_v55 = vadd.f32 %v4476_v25, %v3509_v11 }
 0x3f9   : > { %v3755_v37 = vadd.f32 %v4511_v60, %v3647_v55 }
 0x40c   : > { %v4579_v4 = vpop.f32.mrb[12].mxu1 }
 0x40d   : > { %v4580_v44 = vpop.f32.mrb[13].mxu1 }
 0x40e   : > { %v4581_v23 = vadd.f32 %v4580_v44, %v4579_v4 }
 0x413   : > { %v4544_v52 = vpop.f32.mrb[12].mxu0 }
 0x414   : > { %v4545_v27 = vpop.f32.mrb[13].mxu0 }
 0x415   : > { %v4546_v54 = vadd.f32 %v4545_v27, %v4544_v52 }
 0x417   : > { %v3923_v8 = vadd.f32 %v4546_v54, %v3755_v37 }
 0x419   : > { %v4027_v7 = vadd.f32 %v4581_v23, %v3923_v8 }
 0x41b   : > { %v4030_v56 = vadd.f32 %v4027_v7, %v9582_v22 }
 0x41d   : > { %4031 = vadd.xlane.f32.xlu1 %v4030_v56  ;;  %v4034_v6 = vmul.f32 %v4030_v56, %v4030_v56 }
 0x421   : > { %4035 = vadd.xlane.f32.xlu1 %v4034_v6 }
 0x4aa   : > { %v4032_v35 = vpop.xlane.xlu1 %4031 }
 0x4ab   : > { %v4033_v62 = vmul.f32 0.0078125, %v4032_v35 }
 0x4ad   : > { %v4038_v0 = vmul.f32 %v4033_v62, %v4033_v62  ;;  %v4041_v58 = vsub.f32 %v4030_v56, %v4033_v62 }
 0x4ae   : > { %v4036_v42 = vpop.xlane.xlu1 %4035 }
 0x4af   : > { %v4037_v40 = vmul.f32 0.0078125, %v4036_v42 }
 0x4b1   : > { %v4039_v9 = vsub.f32 %v4037_v40, %v4038_v0 }
 0x4b3   : > { %v4040_v24 = vmax.f32 %v4039_v9, 0.0 }
 0x4b5   : > { %v4042_v34 = vadd.f32 1e-05, %v4040_v24 }
 0x4b7   : > { %5441 = vrsqrt.f32 %v4042_v34 }
 0x4c1   : > { %v5442_v33 = vpop.eup %5441 }
 0x4c2   : > { %v4044_v28 = vmul.f32 %v5442_v33, %v4041_v58 }
 0x4c4   : > { %v4045_v36 = vmul.f32 %v4156_v5, %v4044_v28 }
 0x4c6   : > { %v4046_v26 = vadd.f32 %v4157_v18, %v4045_v36 }
 0x4c8   : > { %4047 = vst [vmem:[%s381_s21] sm:$0xff] %v4046_v26 }
 0x4c9   : > { %5512 = shalt.err (!%p5509_p11)
}
 0x4ca   : > { %s5513_s12 = scalar_lea.hbm %s8449_s28, 128  ;;  %s5517_s26 = scalar_lea.hbm %s8501_s10, 256 }
 0x4cb   : > { %p5514_p13 = scmp.ne.s32.totalorder %s8449_s28, %s5513_s12  ;;  %p5518_p6 = scmp.lt.u32.totalorder %s8449_s28, %s8501_s10 }
 0x4cc   : > { %p5519_p9 = scmp.lt.u32.totalorder %s5517_s26, %s5513_s12  ;;  %p5521_p12 = scmp.lt.u32.totalorder %s5513_s12, %s8449_s28 }
 0x4cd   : > { %p5515_p0 = pnand %p5514_p13, %p9583_p1 }
 0x4ce   : > { %p5520_p10 = por %p5519_p9, %p5518_p6 }
 0x4cf   : > { %p5516_p5 = pneg %p5515_p0 }
 0x4d0   : > { %p5522_p2 = por %p5521_p12, %p5520_p10 }
 0x4d2   : > { %p5523_p3 = pnand %p5522_p2, %p5516_p5 }
 0x4d4   : > { %5526 = shalt.err (!%p5523_p3)
}
 0x4d5   : > { %5382 = dma.vmem_to_hbm [thread:$0]  (%p9583_p1), %s8451_s22, 128, %s8449_s28, %s4049_s17  }
 0x4d6 PF: > { %p5399_p4 = scmp.ge.s32.totalorder %s5569_s18, 2  ;;  %s4074_s21 = sand.u32 1, %s5557_s15  }
 0x4d7   : > { %p9584_p7 = scmp.ne.s32.totalorder %s8880_s25, 0  ;;  %s4075_s27 = scalar_lea.sflag [#allocation5], %s4074_s21 }
 0x4d9   : > { %p5392_p8 = pnand %p5399_p4, %p9584_p7 }
 0x4db   : > { %5552 = dma.done.wait (!%p5392_p8), %s4075_s27, 128  }
 0x4dc   : > { %5554 = vsyncadd (!%p5392_p8), %s4075_s27, 4294967168  ;;  %s9585_s18 = sld [smem:[#allocation13_spill]]  ;;  %s9586_s30 = sld [smem:[#allocation12_spill]] }
 0x4dd   : > { %s9587_s17 = sld [smem:[#allocation14_spill]]  ;;  %s9588_s15 = smov %s5561_s16 }
 0x4e2   : > { %p23_p11 = scmp.ge.s32.totalorder %s9585_s18, 4   ;;  %s9589_s16 = smov %s9586_s30 }
 0x4e4   :  { %25 = sbr.rel (!%p23_p11) target bundleno = 7 (0x7), region = 104 }
 0x4eb   :  { %4080 = vsyncpa [#allocation4], 1 }
 0x4ec   :  { %4082 = vsyncpa [#allocation4 + $0x1], 1 }
 0x4ed   :  { %4083 = vsyncpa [#allocation7], 1 }
 0x4ee   :  { %4084 = vsyncpa [#allocation5], 1 }
 0x4ef   :  { %4086 = vsyncpa [#allocation5 + $0x1], 1 }

</bundles_post_ra>
